<compile_context>
chip_gen: v6e
topology: v6e:2x2x1
jax: 0.10.0
libtpu: 0.0.40
codegen_flags: <defaults>
</compile_context>

<pallas_src>
import functools

import numpy as np
import jax
import jax.numpy as jnp
from jax.experimental import pallas as pl
from jax.experimental.pallas import tpu as pltpu

# ----------------------------- configuration -------------------------------
N_FFT = 32                      # process_config['mel']['n_fft']
HOP = 8                         # process_config['mel']['hop_length']
WIN = 32                        # process_config['mel']['win_length']
F_BINS = N_FFT // 2 + 1         # win_dim = n_fft/2 + 1 = 17
MSG_LEN = 8                     # msg_length
LSTM_DIM = 16                   # model_config['conv2']['LSTM_dim']
LAYERS_EM = 3                   # model_config['conv2']['layers_EM']
EM_INPUT_DIM = LSTM_DIM + 2     # self.EM_input_dim = 18
LEAK = 0.01                     # nn.LeakyReLU default negative_slope
IM_OFF = 128                    # lane offset of the imaginary DFT half

assert F_BINS <= IM_OFF


# ------------------------ host-side constant tables --------------------------
@functools.lru_cache(maxsize=None)
def _make_constants(T):
    """Data-independent tables for a given frame count T (all linear in T)."""
    F, N = F_BINS, N_FFT
    FP = F + 2                       # padded freq extent (zero border)
    TP = T + 2                       # padded time extent (zero border)
    PP = ((TP * FP + 127) // 128) * 128   # lane-aligned flattened grid size
    l_pad = (T - 1) * HOP + N

    window = (0.5 * (1.0 - np.cos(2.0 * np.pi * np.arange(N) / WIN))).astype(np.float32)

    # forward DFT basis with the hann window folded in; imag half at lane 128
    n = np.arange(N)[:, None].astype(np.float64)
    k = np.arange(F)[None, :].astype(np.float64)
    ang = 2.0 * np.pi * n * k / N
    dft = np.zeros((N, IM_OFF + F), np.float32)
    dft[:, :F] = window[:, None] * np.cos(ang)
    dft[:, IM_OFF:] = -window[:, None] * np.sin(ang)

    # fused inverse (synthesis) basis, window folded: rows [re | zeros | im]
    wk = np.ones(F, np.float64)
    wk[1:-1] = 2.0
    ang2 = 2.0 * np.pi * np.arange(F)[:, None] * np.arange(N)[None, :] / N
    ibasis = np.zeros((IM_OFF + F, N), np.float32)
    ibasis[:F, :] = (wk[:, None] * np.cos(ang2) / N) * window[None, :]
    ibasis[IM_OFF:, :] = (-wk[:, None] * np.sin(ang2) / N) * window[None, :]

    # interior mask of the zero-bordered, lane-flattened (TP*FP -> PP) grid
    bm2 = np.zeros((TP, FP), np.float32)
    bm2[1:T + 1, 1:F + 1] = 1.0
    bmask = np.zeros((1, PP), np.float32)
    bmask[0, :TP * FP] = bm2.reshape(-1)

    # COLA normalisation 1/sum(win^2) (applied in the XLA wrapper)
    wsq = np.zeros(l_pad, np.float32)
    for t in range(T):
        wsq[t * HOP:t * HOP + N] += window * window
    wsqinv = (1.0 / np.maximum(wsq, 1e-8)).astype(np.float32)

    return {"dft": jnp.asarray(dft), "ibasis": jnp.asarray(ibasis),
            "bmask": jnp.asarray(bmask), "wsqinv": jnp.asarray(wsqinv),
            "PP": PP, "FP": FP}


# ------------------------------ fused kernel ---------------------------------
def _build_kernel(T, FP, PP):
    F = F_BINS
    # tap order (ky-major, kx-minor) matches the host-side weight flattening:
    # flat column (ky*3+kx)*Cin + ci  <->  torch conv weight [co, ci, ky, kx].
    shifts = [(kx - 1) * FP + (ky - 1) for ky in range(3) for kx in range(3)]

    def kernel(frames_ref, msg_ref, dft_ref, ibasis_ref, bmask_ref,
               msgw_ref, msgb_ref,
               ew0_ref, eb0_ref, ew1_ref, eb1_ref, ew2_ref, eb2_ref,
               dw0_ref, db0_ref, dw1_ref, db1_ref, dw2_ref, db2_ref,
               slab_ref, fr_ref,
               slab_scr, x9_scr, mw_scr):
        bmask = bmask_ref[...]                                  # (1, PP)

        def conv3x3(parts, w_ref, b_ref, act):
            """3x3 same-conv as ONE matmul: stack the 9 rolled tap copies of
            the (zero-bordered, lane-flattened) input channels into x9_scr,
            then (Cout, K) @ (K, PP).  Borders/tail re-zeroed by bmask."""
            cin = sum(p.shape[0] for p in parts)
            kpad = w_ref.shape[1]                               # ceil8(9*cin)
            for kk, s in enumerate(shifts):
                row = kk * cin
                for part in parts:
                    shifted = part if s == 0 else pltpu.roll(
                        part, shift=(-s) % PP, axis=1)
                    x9_scr[pl.ds(row, part.shape[0]), :] = shifted
                    row += part.shape[0]
            if kpad > 9 * cin:                                  # zero K pad rows
                x9_scr[pl.ds(9 * cin, kpad - 9 * cin), :] = jnp.zeros(
                    (kpad - 9 * cin, PP), jnp.float32)
            acc = jnp.dot(w_ref[...], x9_scr[pl.ds(0, kpad), :],
                          preferred_element_type=jnp.float32)
            acc = acc + b_ref[...]                              # (Cout,1) bcast
            if act:
                acc = jnp.maximum(acc, LEAK * acc)              # LeakyReLU
            return acc * bmask

        # ---------------- STFT (hann window folded into the basis) ----------
        reim = jnp.dot(frames_ref[0], dft_ref[...],
                       preferred_element_type=jnp.float32)      # (T, 128+F)
        re = reim[:, :F]
        im = reim[:, IM_OFF:IM_OFF + F]
        r2 = re * re + im * im + 1e-12
        rinv = jax.lax.rsqrt(r2)                                # EUP
        mag = r2 * rinv                                         # |z|

        # ---------------- Msg_Process: Linear + LeakyReLU -------------------
        m = jnp.dot(msg_ref[0], msgw_ref[...],
                    preferred_element_type=jnp.float32) + msgb_ref[...]
        m = jnp.maximum(m, LEAK * m)                            # (1, F)

        # ------- pack mag / msg rows into the lane-flattened padded grid ----
        slab_scr[...] = jnp.zeros_like(slab_scr)
        for t in range(T):
            p0 = (t + 1) * FP + 1
            slab_scr[pl.ds(0, 1), pl.ds(p0, F)] = mag[t:t + 1, :]
            slab_scr[pl.ds(1, 1), pl.ds(p0, F)] = m
        x0 = slab_scr[pl.ds(0, 1), :]                           # (1, PP)
        wm = slab_scr[pl.ds(1, 1), :]                           # (1, PP)

        # ---------------- EN_spect: 3 x (conv3x3 + LeakyReLU) ---------------
        h = conv3x3([x0], ew0_ref, eb0_ref, True)
        h = conv3x3([h], ew1_ref, eb1_ref, True)
        h = conv3x3([h], ew2_ref, eb2_ref, True)                # (16, PP)

        # ------- concat (folded into the stack) + DE_spect ------------------
        g = conv3x3([h, x0, wm], dw0_ref, db0_ref, True)
        g = conv3x3([g], dw1_ref, db1_ref, True)
        g = conv3x3([g], dw2_ref, db2_ref, False)               # (1, PP)

        slab_ref[0] = g                                         # lane-dense out

        # ------- unpack the watermarked magnitude back to (T, F) ------------
        slab_scr[pl.ds(0, 1), :] = g
        for t in range(T):
            p0 = (t + 1) * FP + 1
            mw_scr[pl.ds(t, 1), :] = slab_scr[pl.ds(0, 1), pl.ds(p0, F)]
        scale = mw_scr[...] * rinv                              # mag_w / |z|

        # ------- iSTFT synthesis frames (fused basis, window folded) --------
        re_w = re * scale                                       # mag_w*cos(ph)
        im_w = im * scale                                       # mag_w*sin(ph)
        reimw = jnp.concatenate(
            [jnp.pad(re_w, ((0, 0), (0, IM_OFF - F))), im_w], axis=1)
        fr_ref[0] = jnp.dot(reimw, ibasis_ref[...],
                            preferred_element_type=jnp.float32)  # (T, N)

    return kernel


# ------------------------------ parameters ----------------------------------
def init_params(key):
    def conv_init(k, cin, cout):
        # Flattened 3x3 conv weights: column (ky*3+kx)*cin + ci corresponds to
        # the torch weight [co, ci, ky, kx]; K zero-padded to a multiple of 8.
        k1, k2 = jax.random.split(k)
        fan_in = 9 * cin
        bound = 1.0 / np.sqrt(fan_in)
        kpad = ((fan_in + 7) // 8) * 8
        w = jax.random.uniform(k1, (cout, fan_in), jnp.float32, -bound, bound)
        w = jnp.pad(w, ((0, 0), (0, kpad - fan_in)))
        b = jax.random.uniform(k2, (cout, 1), jnp.float32, -bound, bound)
        return w, b

    keys = jax.random.split(key, 2 * LAYERS_EM + 1)
    # Spect_Encoder(input_channel=1, latent_dim=LSTM_dim, n_layers=layers_EM)
    en, cin = [], 1
    for i in range(LAYERS_EM):
        en.append(conv_init(keys[i], cin, LSTM_DIM))
        cin = LSTM_DIM
    # Watermark_Embedder(EM_input_dim, LSTM_dim, layers_EM) -> 1 channel out
    de, cin = [], EM_INPUT_DIM
    for i in range(LAYERS_EM):
        cout = 1 if i == LAYERS_EM - 1 else LSTM_DIM
        de.append(conv_init(keys[LAYERS_EM + i], cin, cout))
        cin = cout
    # Msg_Process: Linear(msg_length -> win_dim) + LeakyReLU
    k1, k2 = jax.random.split(keys[-1])
    bound = 1.0 / np.sqrt(MSG_LEN)
    msg_w = jax.random.uniform(k1, (MSG_LEN, F_BINS), jnp.float32, -bound, bound)
    msg_b = jax.random.uniform(k2, (1, F_BINS), jnp.float32, -bound, bound)
    return {"en": en, "de": de, "msg_w": msg_w, "msg_b": msg_b}


# ------------------------------ forward pass ---------------------------------
def encoder_forward(params, x, msg):
    """x: (B, 1, L) waveform; msg: (B, 1, MSG_LEN). Returns (y, watermarked_spect)."""
    B, _, L = x.shape
    assert L % HOP == 0, "audio length must be a multiple of hop_length"
    pad = N_FFT // 2
    T = L // HOP + 1
    l_pad = L + N_FFT
    CH = l_pad // 8                                             # = T + 3

    c = _make_constants(T)
    PP, FP = c["PP"], c["FP"]

    # fixed_STFT.transform framing (center=True reflect pad) done in XLA
    xp = jnp.pad(x[:, 0, :], ((0, 0), (pad, pad)), mode="reflect")
    idx = HOP * np.arange(T)[:, None] + np.arange(N_FFT)[None, :]
    frames = xp[:, idx]                                         # (B, T, N_FFT)

    (ew0, eb0), (ew1, eb1), (ew2, eb2) = params["en"]
    (dw0, db0), (dw1, db1), (dw2, db2) = params["de"]

    inputs = [frames, msg, c["dft"], c["ibasis"], c["bmask"],
              params["msg_w"], params["msg_b"],
              ew0, eb0, ew1, eb1, ew2, eb2,
              dw0, db0, dw1, db1, dw2, db2]

    in_specs = [pl.BlockSpec((1, T, N_FFT), lambda i: (i, 0, 0)),
                pl.BlockSpec((1, 1, MSG_LEN), lambda i: (i, 0, 0))]
    for a in inputs[2:]:                                        # grid-invariant
        zeros = (0,) * a.ndim
        in_specs.append(pl.BlockSpec(a.shape, lambda i, z=zeros: z))

    out_shape = (jax.ShapeDtypeStruct((B, 1, PP), jnp.float32),   # packed slab
                 jax.ShapeDtypeStruct((B, T, N_FFT), jnp.float32))  # synth frames
    out_specs = [pl.BlockSpec((1, 1, PP), lambda i: (i, 0, 0)),
                 pl.BlockSpec((1, T, N_FFT), lambda i: (i, 0, 0))]

    x9_rows = ((9 * EM_INPUT_DIM + 7) // 8) * 8                 # 168
    slab, fr = pl.pallas_call(
        _build_kernel(T, FP, PP),
        out_shape=out_shape,
        grid=(B,),
        in_specs=in_specs,
        out_specs=out_specs,
        scratch_shapes=[pltpu.VMEM((2, PP), jnp.float32),        # packed x0 / wm
                        pltpu.VMEM((x9_rows, PP), jnp.float32),  # stacked taps
                        pltpu.VMEM((T, F_BINS), jnp.float32)],   # unpacked mag_w
        compiler_params=pltpu.CompilerParams(
            dimension_semantics=("parallel",)),
    )(*inputs)

    # ---- unpack the watermarked spectrogram slab (pure layout, XLA side) ----
    TP = T + 2
    sp = slab[:, 0, :TP * FP].reshape(B, TP, FP)[:, 1:T + 1, 1:F_BINS + 1]
    watermarked_spect = jnp.transpose(sp, (0, 2, 1))[:, None, :, :]  # (B,1,F,T)

    # ---- overlap-add (4 shifted adds) + COLA normalisation + trim (XLA) -----
    y_chunks = jnp.zeros((B, CH, 8), jnp.float32)
    for j in range(4):
        piece = fr[:, :, 8 * j:8 * (j + 1)]                      # (B, T, 8)
        y_chunks = y_chunks + jnp.pad(piece, ((0, 0), (j, CH - T - j), (0, 0)))
    y_pad = y_chunks.reshape(B, l_pad) * c["wsqinv"][None, :]
    y = y_pad[:, pad:pad + L][:, None, :]                        # (B, 1, L)
    return y, watermarked_spect


# --------------------------------- main --------------------------------------
if __name__ == "__main__":
    key = jax.random.PRNGKey(0)
    kx, km, kp = jax.random.split(key, 3)

    B, L = 2, 128
    x = 0.1 * jax.random.normal(kx, (B, 1, L), dtype=jnp.float32)
    msg = jax.random.bernoulli(km, 0.5, (B, 1, MSG_LEN)).astype(jnp.float32) * 2.0 - 1.0
    params = init_params(kp)

    fwd = jax.jit(encoder_forward)
    y, wspect = fwd(params, x, msg)
    jax.block_until_ready((y, wspect))

    T_frames = L // HOP + 1
    assert y.shape == (B, 1, L), y.shape
    assert wspect.shape == (B, 1, F_BINS, T_frames), wspect.shape
    assert bool(jnp.all(jnp.isfinite(y))) and bool(jnp.all(jnp.isfinite(wspect)))
    print("KERNEL_OK")
</pallas_src>

<mosaic_0001>
module attributes {stable_mosaic.version = 11 : i64} {
  func.func @kernel(%arg0: i32, %arg1: memref<1x17x32xf32, #tpu.memory_space<vmem>>, %arg2: memref<1x1x8xf32, #tpu.memory_space<vmem>>, %arg3: memref<32x145xf32, #tpu.memory_space<vmem>>, %arg4: memref<145x32xf32, #tpu.memory_space<vmem>>, %arg5: memref<1x384xf32, #tpu.memory_space<vmem>>, %arg6: memref<8x17xf32, #tpu.memory_space<vmem>>, %arg7: memref<1x17xf32, #tpu.memory_space<vmem>>, %arg8: memref<16x16xf32, #tpu.memory_space<vmem>>, %arg9: memref<16x1xf32, #tpu.memory_space<vmem>>, %arg10: memref<16x144xf32, #tpu.memory_space<vmem>>, %arg11: memref<16x1xf32, #tpu.memory_space<vmem>>, %arg12: memref<16x144xf32, #tpu.memory_space<vmem>>, %arg13: memref<16x1xf32, #tpu.memory_space<vmem>>, %arg14: memref<16x168xf32, #tpu.memory_space<vmem>>, %arg15: memref<16x1xf32, #tpu.memory_space<vmem>>, %arg16: memref<16x144xf32, #tpu.memory_space<vmem>>, %arg17: memref<16x1xf32, #tpu.memory_space<vmem>>, %arg18: memref<1x144xf32, #tpu.memory_space<vmem>>, %arg19: memref<1x1xf32, #tpu.memory_space<vmem>>, %arg20: memref<1x1x384xf32, #tpu.memory_space<vmem>>, %arg21: memref<1x17x32xf32, #tpu.memory_space<vmem>>, %arg22: memref<2x384xf32, #tpu.memory_space<vmem>>, %arg23: memref<168x384xf32, #tpu.memory_space<vmem>>, %arg24: memref<17x17xf32, #tpu.memory_space<vmem>>) attributes {dimension_semantics = [#tpu.dimension_semantics<parallel>], iteration_bounds = array<i64: 2>, scalar_prefetch = 0 : i64, scratch_operands = 3 : i64, tpu.core_type = #tpu.core_type<tc>, window_params = [{transform_indices = @transform_0, window_bounds = array<i64: 1, 17, 32>}, {transform_indices = @transform_1, window_bounds = array<i64: 1, 1, 8>}, {pipeline_mode = #tpu.pipeline_mode<synchronous>, transform_indices = @transform_2, window_bounds = array<i64: 32, 145>}, {pipeline_mode = #tpu.pipeline_mode<synchronous>, transform_indices = @transform_3, window_bounds = array<i64: 145, 32>}, {pipeline_mode = #tpu.pipeline_mode<synchronous>, transform_indices = @transform_4, window_bounds = array<i64: 1, 384>}, {pipeline_mode = #tpu.pipeline_mode<synchronous>, transform_indices = @transform_5, window_bounds = array<i64: 8, 17>}, {pipeline_mode = #tpu.pipeline_mode<synchronous>, transform_indices = @transform_6, window_bounds = array<i64: 1, 17>}, {pipeline_mode = #tpu.pipeline_mode<synchronous>, transform_indices = @transform_7, window_bounds = array<i64: 16, 16>}, {pipeline_mode = #tpu.pipeline_mode<synchronous>, transform_indices = @transform_8, window_bounds = array<i64: 16, 1>}, {pipeline_mode = #tpu.pipeline_mode<synchronous>, transform_indices = @transform_9, window_bounds = array<i64: 16, 144>}, {pipeline_mode = #tpu.pipeline_mode<synchronous>, transform_indices = @transform_10, window_bounds = array<i64: 16, 1>}, {pipeline_mode = #tpu.pipeline_mode<synchronous>, transform_indices = @transform_11, window_bounds = array<i64: 16, 144>}, {pipeline_mode = #tpu.pipeline_mode<synchronous>, transform_indices = @transform_12, window_bounds = array<i64: 16, 1>}, {pipeline_mode = #tpu.pipeline_mode<synchronous>, transform_indices = @transform_13, window_bounds = array<i64: 16, 168>}, {pipeline_mode = #tpu.pipeline_mode<synchronous>, transform_indices = @transform_14, window_bounds = array<i64: 16, 1>}, {pipeline_mode = #tpu.pipeline_mode<synchronous>, transform_indices = @transform_15, window_bounds = array<i64: 16, 144>}, {pipeline_mode = #tpu.pipeline_mode<synchronous>, transform_indices = @transform_16, window_bounds = array<i64: 16, 1>}, {pipeline_mode = #tpu.pipeline_mode<synchronous>, transform_indices = @transform_17, window_bounds = array<i64: 1, 144>}, {pipeline_mode = #tpu.pipeline_mode<synchronous>, transform_indices = @transform_18, window_bounds = array<i64: 1, 1>}, {transform_indices = @transform_19, window_bounds = array<i64: 1, 1, 384>}, {transform_indices = @transform_20, window_bounds = array<i64: 1, 17, 32>}]} {
    %c0 = arith.constant 0 : index
    %c0_0 = arith.constant 0 : index
    %0 = vector.load %arg5[%c0, %c0_0] : memref<1x384xf32, #tpu.memory_space<vmem>>, vector<1x384xf32>
    %c0_1 = arith.constant 0 : index
    %c0_2 = arith.constant 0 : index
    %c0_3 = arith.constant 0 : index
    %1 = vector.load %arg1[%c0_1, %c0_2, %c0_3] : memref<1x17x32xf32, #tpu.memory_space<vmem>>, vector<1x17x32xf32>
    %2 = vector.shape_cast %1 : vector<1x17x32xf32> to vector<17x32xf32>
    %c0_4 = arith.constant 0 : index
    %c0_5 = arith.constant 0 : index
    %3 = vector.load %arg3[%c0_4, %c0_5] : memref<32x145xf32, #tpu.memory_space<vmem>>, vector<32x145xf32>
    %cst = arith.constant dense<0.000000e+00> : vector<17x145xf32>
    %4 = tpu.matmul %2, %3, %cst {dimension_numbers = #tpu.dot_dimension_numbers<[1], [0], [0], [1], [0, 0, 1, 1], [], []>} : vector<17x32xf32>, vector<32x145xf32>, vector<17x145xf32> -> vector<17x145xf32>
    %5 = vector.extract_strided_slice %4 {offsets = [0, 0], sizes = [17, 17], strides = [1, 1]} : vector<17x145xf32> to vector<17x17xf32>
    %6 = vector.extract_strided_slice %4 {offsets = [0, 128], sizes = [17, 17], strides = [1, 1]} : vector<17x145xf32> to vector<17x17xf32>
    %7 = arith.mulf %5, %5 : vector<17x17xf32>
    %8 = arith.mulf %6, %6 : vector<17x17xf32>
    %9 = arith.addf %7, %8 : vector<17x17xf32>
    %cst_6 = arith.constant 9.99999996E-13 : f32
    %10 = vector.broadcast %cst_6 : f32 to vector<17x17xf32>
    %11 = arith.addf %9, %10 : vector<17x17xf32>
    %12 = math.rsqrt %11 : vector<17x17xf32>
    %13 = arith.mulf %11, %12 : vector<17x17xf32>
    %c0_7 = arith.constant 0 : index
    %c0_8 = arith.constant 0 : index
    %c0_9 = arith.constant 0 : index
    %14 = vector.load %arg2[%c0_7, %c0_8, %c0_9] : memref<1x1x8xf32, #tpu.memory_space<vmem>>, vector<1x1x8xf32>
    %15 = vector.shape_cast %14 : vector<1x1x8xf32> to vector<1x8xf32>
    %c0_10 = arith.constant 0 : index
    %c0_11 = arith.constant 0 : index
    %16 = vector.load %arg6[%c0_10, %c0_11] : memref<8x17xf32, #tpu.memory_space<vmem>>, vector<8x17xf32>
    %cst_12 = arith.constant dense<0.000000e+00> : vector<1x17xf32>
    %17 = tpu.matmul %15, %16, %cst_12 {dimension_numbers = #tpu.dot_dimension_numbers<[1], [0], [0], [1], [0, 0, 1, 1], [], []>} : vector<1x8xf32>, vector<8x17xf32>, vector<1x17xf32> -> vector<1x17xf32>
    %c0_13 = arith.constant 0 : index
    %c0_14 = arith.constant 0 : index
    %18 = vector.load %arg7[%c0_13, %c0_14] : memref<1x17xf32, #tpu.memory_space<vmem>>, vector<1x17xf32>
    %19 = arith.addf %17, %18 : vector<1x17xf32>
    %cst_15 = arith.constant 0.00999999977 : f32
    %20 = vector.broadcast %cst_15 : f32 to vector<1x17xf32>
    %21 = arith.mulf %20, %19 : vector<1x17xf32>
    %22 = arith.maximumf %19, %21 : vector<1x17xf32>
    %cst_16 = arith.constant 0.000000e+00 : f32
    %23 = vector.broadcast %cst_16 : f32 to vector<2x384xf32>
    %c0_17 = arith.constant 0 : index
    %c0_18 = arith.constant 0 : index
    %24 = vector.load %arg22[%c0_17, %c0_18] : memref<2x384xf32, #tpu.memory_space<vmem>>, vector<2x384xf32>
    tpu.vector_store %arg22[%c0_17, %c0_18], %23 {strides = array<i32>} : memref<2x384xf32, #tpu.memory_space<vmem>>, vector<2x384xf32>,
    %25 = vector.extract_strided_slice %13 {offsets = [0, 0], sizes = [1, 17], strides = [1, 1]} : vector<17x17xf32> to vector<1x17xf32>
    %c0_19 = arith.constant 0 : index
    %c20 = arith.constant 20 : index
    %26 = vector.load %arg22[%c0_19, %c20] : memref<2x384xf32, #tpu.memory_space<vmem>>, vector<1x17xf32>
    tpu.vector_store %arg22[%c0_19, %c20], %25 {strides = array<i32>} : memref<2x384xf32, #tpu.memory_space<vmem>>, vector<1x17xf32>,
    %c1 = arith.constant 1 : index
    %c20_20 = arith.constant 20 : index
    %27 = vector.load %arg22[%c1, %c20_20] : memref<2x384xf32, #tpu.memory_space<vmem>>, vector<1x17xf32>
    tpu.vector_store %arg22[%c1, %c20_20], %22 {strides = array<i32>} : memref<2x384xf32, #tpu.memory_space<vmem>>, vector<1x17xf32>,
    %28 = vector.extract_strided_slice %13 {offsets = [1, 0], sizes = [1, 17], strides = [1, 1]} : vector<17x17xf32> to vector<1x17xf32>
    %c0_21 = arith.constant 0 : index
    %c39 = arith.constant 39 : index
    %29 = vector.load %arg22[%c0_21, %c39] : memref<2x384xf32, #tpu.memory_space<vmem>>, vector<1x17xf32>
    tpu.vector_store %arg22[%c0_21, %c39], %28 {strides = array<i32>} : memref<2x384xf32, #tpu.memory_space<vmem>>, vector<1x17xf32>,
    %c1_22 = arith.constant 1 : index
    %c39_23 = arith.constant 39 : index
    %30 = vector.load %arg22[%c1_22, %c39_23] : memref<2x384xf32, #tpu.memory_space<vmem>>, vector<1x17xf32>
    tpu.vector_store %arg22[%c1_22, %c39_23], %22 {strides = array<i32>} : memref<2x384xf32, #tpu.memory_space<vmem>>, vector<1x17xf32>,
    %31 = vector.extract_strided_slice %13 {offsets = [2, 0], sizes = [1, 17], strides = [1, 1]} : vector<17x17xf32> to vector<1x17xf32>
    %c0_24 = arith.constant 0 : index
    %c58 = arith.constant 58 : index
    %32 = vector.load %arg22[%c0_24, %c58] : memref<2x384xf32, #tpu.memory_space<vmem>>, vector<1x17xf32>
    tpu.vector_store %arg22[%c0_24, %c58], %31 {strides = array<i32>} : memref<2x384xf32, #tpu.memory_space<vmem>>, vector<1x17xf32>,
    %c1_25 = arith.constant 1 : index
    %c58_26 = arith.constant 58 : index
    %33 = vector.load %arg22[%c1_25, %c58_26] : memref<2x384xf32, #tpu.memory_space<vmem>>, vector<1x17xf32>
    tpu.vector_store %arg22[%c1_25, %c58_26], %22 {strides = array<i32>} : memref<2x384xf32, #tpu.memory_space<vmem>>, vector<1x17xf32>,
    %34 = vector.extract_strided_slice %13 {offsets = [3, 0], sizes = [1, 17], strides = [1, 1]} : vector<17x17xf32> to vector<1x17xf32>
    %c0_27 = arith.constant 0 : index
    %c77 = arith.constant 77 : index
    %35 = vector.load %arg22[%c0_27, %c77] : memref<2x384xf32, #tpu.memory_space<vmem>>, vector<1x17xf32>
    tpu.vector_store %arg22[%c0_27, %c77], %34 {strides = array<i32>} : memref<2x384xf32, #tpu.memory_space<vmem>>, vector<1x17xf32>,
    %c1_28 = arith.constant 1 : index
    %c77_29 = arith.constant 77 : index
    %36 = vector.load %arg22[%c1_28, %c77_29] : memref<2x384xf32, #tpu.memory_space<vmem>>, vector<1x17xf32>
    tpu.vector_store %arg22[%c1_28, %c77_29], %22 {strides = array<i32>} : memref<2x384xf32, #tpu.memory_space<vmem>>, vector<1x17xf32>,
    %37 = vector.extract_strided_slice %13 {offsets = [4, 0], sizes = [1, 17], strides = [1, 1]} : vector<17x17xf32> to vector<1x17xf32>
    %c0_30 = arith.constant 0 : index
    %c96 = arith.constant 96 : index
    %38 = vector.load %arg22[%c0_30, %c96] : memref<2x384xf32, #tpu.memory_space<vmem>>, vector<1x17xf32>
    tpu.vector_store %arg22[%c0_30, %c96], %37 {strides = array<i32>} : memref<2x384xf32, #tpu.memory_space<vmem>>, vector<1x17xf32>,
    %c1_31 = arith.constant 1 : index
    %c96_32 = arith.constant 96 : index
    %39 = vector.load %arg22[%c1_31, %c96_32] : memref<2x384xf32, #tpu.memory_space<vmem>>, vector<1x17xf32>
    tpu.vector_store %arg22[%c1_31, %c96_32], %22 {strides = array<i32>} : memref<2x384xf32, #tpu.memory_space<vmem>>, vector<1x17xf32>,
    %40 = vector.extract_strided_slice %13 {offsets = [5, 0], sizes = [1, 17], strides = [1, 1]} : vector<17x17xf32> to vector<1x17xf32>
    %c0_33 = arith.constant 0 : index
    %c115 = arith.constant 115 : index
    %41 = vector.load %arg22[%c0_33, %c115] : memref<2x384xf32, #tpu.memory_space<vmem>>, vector<1x17xf32>
    tpu.vector_store %arg22[%c0_33, %c115], %40 {strides = array<i32>} : memref<2x384xf32, #tpu.memory_space<vmem>>, vector<1x17xf32>,
    %c1_34 = arith.constant 1 : index
    %c115_35 = arith.constant 115 : index
    %42 = vector.load %arg22[%c1_34, %c115_35] : memref<2x384xf32, #tpu.memory_space<vmem>>, vector<1x17xf32>
    tpu.vector_store %arg22[%c1_34, %c115_35], %22 {strides = array<i32>} : memref<2x384xf32, #tpu.memory_space<vmem>>, vector<1x17xf32>,
    %43 = vector.extract_strided_slice %13 {offsets = [6, 0], sizes = [1, 17], strides = [1, 1]} : vector<17x17xf32> to vector<1x17xf32>
    %c0_36 = arith.constant 0 : index
    %c134 = arith.constant 134 : index
    %44 = vector.load %arg22[%c0_36, %c134] : memref<2x384xf32, #tpu.memory_space<vmem>>, vector<1x17xf32>
    tpu.vector_store %arg22[%c0_36, %c134], %43 {strides = array<i32>} : memref<2x384xf32, #tpu.memory_space<vmem>>, vector<1x17xf32>,
    %c1_37 = arith.constant 1 : index
    %c134_38 = arith.constant 134 : index
    %45 = vector.load %arg22[%c1_37, %c134_38] : memref<2x384xf32, #tpu.memory_space<vmem>>, vector<1x17xf32>
    tpu.vector_store %arg22[%c1_37, %c134_38], %22 {strides = array<i32>} : memref<2x384xf32, #tpu.memory_space<vmem>>, vector<1x17xf32>,
    %46 = vector.extract_strided_slice %13 {offsets = [7, 0], sizes = [1, 17], strides = [1, 1]} : vector<17x17xf32> to vector<1x17xf32>
    %c0_39 = arith.constant 0 : index
    %c153 = arith.constant 153 : index
    %47 = vector.load %arg22[%c0_39, %c153] : memref<2x384xf32, #tpu.memory_space<vmem>>, vector<1x17xf32>
    tpu.vector_store %arg22[%c0_39, %c153], %46 {strides = array<i32>} : memref<2x384xf32, #tpu.memory_space<vmem>>, vector<1x17xf32>,
    %c1_40 = arith.constant 1 : index
    %c153_41 = arith.constant 153 : index
    %48 = vector.load %arg22[%c1_40, %c153_41] : memref<2x384xf32, #tpu.memory_space<vmem>>, vector<1x17xf32>
    tpu.vector_store %arg22[%c1_40, %c153_41], %22 {strides = array<i32>} : memref<2x384xf32, #tpu.memory_space<vmem>>, vector<1x17xf32>,
    %49 = vector.extract_strided_slice %13 {offsets = [8, 0], sizes = [1, 17], strides = [1, 1]} : vector<17x17xf32> to vector<1x17xf32>
    %c0_42 = arith.constant 0 : index
    %c172 = arith.constant 172 : index
    %50 = vector.load %arg22[%c0_42, %c172] : memref<2x384xf32, #tpu.memory_space<vmem>>, vector<1x17xf32>
    tpu.vector_store %arg22[%c0_42, %c172], %49 {strides = array<i32>} : memref<2x384xf32, #tpu.memory_space<vmem>>, vector<1x17xf32>,
    %c1_43 = arith.constant 1 : index
    %c172_44 = arith.constant 172 : index
    %51 = vector.load %arg22[%c1_43, %c172_44] : memref<2x384xf32, #tpu.memory_space<vmem>>, vector<1x17xf32>
    tpu.vector_store %arg22[%c1_43, %c172_44], %22 {strides = array<i32>} : memref<2x384xf32, #tpu.memory_space<vmem>>, vector<1x17xf32>,
    %52 = vector.extract_strided_slice %13 {offsets = [9, 0], sizes = [1, 17], strides = [1, 1]} : vector<17x17xf32> to vector<1x17xf32>
    %c0_45 = arith.constant 0 : index
    %c191 = arith.constant 191 : index
    %53 = vector.load %arg22[%c0_45, %c191] : memref<2x384xf32, #tpu.memory_space<vmem>>, vector<1x17xf32>
    tpu.vector_store %arg22[%c0_45, %c191], %52 {strides = array<i32>} : memref<2x384xf32, #tpu.memory_space<vmem>>, vector<1x17xf32>,
    %c1_46 = arith.constant 1 : index
    %c191_47 = arith.constant 191 : index
    %54 = vector.load %arg22[%c1_46, %c191_47] : memref<2x384xf32, #tpu.memory_space<vmem>>, vector<1x17xf32>
    tpu.vector_store %arg22[%c1_46, %c191_47], %22 {strides = array<i32>} : memref<2x384xf32, #tpu.memory_space<vmem>>, vector<1x17xf32>,
    %55 = vector.extract_strided_slice %13 {offsets = [10, 0], sizes = [1, 17], strides = [1, 1]} : vector<17x17xf32> to vector<1x17xf32>
    %c0_48 = arith.constant 0 : index
    %c210 = arith.constant 210 : index
    %56 = vector.load %arg22[%c0_48, %c210] : memref<2x384xf32, #tpu.memory_space<vmem>>, vector<1x17xf32>
    tpu.vector_store %arg22[%c0_48, %c210], %55 {strides = array<i32>} : memref<2x384xf32, #tpu.memory_space<vmem>>, vector<1x17xf32>,
    %c1_49 = arith.constant 1 : index
    %c210_50 = arith.constant 210 : index
    %57 = vector.load %arg22[%c1_49, %c210_50] : memref<2x384xf32, #tpu.memory_space<vmem>>, vector<1x17xf32>
    tpu.vector_store %arg22[%c1_49, %c210_50], %22 {strides = array<i32>} : memref<2x384xf32, #tpu.memory_space<vmem>>, vector<1x17xf32>,
    %58 = vector.extract_strided_slice %13 {offsets = [11, 0], sizes = [1, 17], strides = [1, 1]} : vector<17x17xf32> to vector<1x17xf32>
    %c0_51 = arith.constant 0 : index
    %c229 = arith.constant 229 : index
    %59 = vector.load %arg22[%c0_51, %c229] : memref<2x384xf32, #tpu.memory_space<vmem>>, vector<1x17xf32>
    tpu.vector_store %arg22[%c0_51, %c229], %58 {strides = array<i32>} : memref<2x384xf32, #tpu.memory_space<vmem>>, vector<1x17xf32>,
    %c1_52 = arith.constant 1 : index
    %c229_53 = arith.constant 229 : index
    %60 = vector.load %arg22[%c1_52, %c229_53] : memref<2x384xf32, #tpu.memory_space<vmem>>, vector<1x17xf32>
    tpu.vector_store %arg22[%c1_52, %c229_53], %22 {strides = array<i32>} : memref<2x384xf32, #tpu.memory_space<vmem>>, vector<1x17xf32>,
    %61 = vector.extract_strided_slice %13 {offsets = [12, 0], sizes = [1, 17], strides = [1, 1]} : vector<17x17xf32> to vector<1x17xf32>
    %c0_54 = arith.constant 0 : index
    %c248 = arith.constant 248 : index
    %62 = vector.load %arg22[%c0_54, %c248] : memref<2x384xf32, #tpu.memory_space<vmem>>, vector<1x17xf32>
    tpu.vector_store %arg22[%c0_54, %c248], %61 {strides = array<i32>} : memref<2x384xf32, #tpu.memory_space<vmem>>, vector<1x17xf32>,
    %c1_55 = arith.constant 1 : index
    %c248_56 = arith.constant 248 : index
    %63 = vector.load %arg22[%c1_55, %c248_56] : memref<2x384xf32, #tpu.memory_space<vmem>>, vector<1x17xf32>
    tpu.vector_store %arg22[%c1_55, %c248_56], %22 {strides = array<i32>} : memref<2x384xf32, #tpu.memory_space<vmem>>, vector<1x17xf32>,
    %64 = vector.extract_strided_slice %13 {offsets = [13, 0], sizes = [1, 17], strides = [1, 1]} : vector<17x17xf32> to vector<1x17xf32>
    %c0_57 = arith.constant 0 : index
    %c267 = arith.constant 267 : index
    %65 = vector.load %arg22[%c0_57, %c267] : memref<2x384xf32, #tpu.memory_space<vmem>>, vector<1x17xf32>
    tpu.vector_store %arg22[%c0_57, %c267], %64 {strides = array<i32>} : memref<2x384xf32, #tpu.memory_space<vmem>>, vector<1x17xf32>,
    %c1_58 = arith.constant 1 : index
    %c267_59 = arith.constant 267 : index
    %66 = vector.load %arg22[%c1_58, %c267_59] : memref<2x384xf32, #tpu.memory_space<vmem>>, vector<1x17xf32>
    tpu.vector_store %arg22[%c1_58, %c267_59], %22 {strides = array<i32>} : memref<2x384xf32, #tpu.memory_space<vmem>>, vector<1x17xf32>,
    %67 = vector.extract_strided_slice %13 {offsets = [14, 0], sizes = [1, 17], strides = [1, 1]} : vector<17x17xf32> to vector<1x17xf32>
    %c0_60 = arith.constant 0 : index
    %c286 = arith.constant 286 : index
    %68 = vector.load %arg22[%c0_60, %c286] : memref<2x384xf32, #tpu.memory_space<vmem>>, vector<1x17xf32>
    tpu.vector_store %arg22[%c0_60, %c286], %67 {strides = array<i32>} : memref<2x384xf32, #tpu.memory_space<vmem>>, vector<1x17xf32>,
    %c1_61 = arith.constant 1 : index
    %c286_62 = arith.constant 286 : index
    %69 = vector.load %arg22[%c1_61, %c286_62] : memref<2x384xf32, #tpu.memory_space<vmem>>, vector<1x17xf32>
    tpu.vector_store %arg22[%c1_61, %c286_62], %22 {strides = array<i32>} : memref<2x384xf32, #tpu.memory_space<vmem>>, vector<1x17xf32>,
    %70 = vector.extract_strided_slice %13 {offsets = [15, 0], sizes = [1, 17], strides = [1, 1]} : vector<17x17xf32> to vector<1x17xf32>
    %c0_63 = arith.constant 0 : index
    %c305 = arith.constant 305 : index
    %71 = vector.load %arg22[%c0_63, %c305] : memref<2x384xf32, #tpu.memory_space<vmem>>, vector<1x17xf32>
    tpu.vector_store %arg22[%c0_63, %c305], %70 {strides = array<i32>} : memref<2x384xf32, #tpu.memory_space<vmem>>, vector<1x17xf32>,
    %c1_64 = arith.constant 1 : index
    %c305_65 = arith.constant 305 : index
    %72 = vector.load %arg22[%c1_64, %c305_65] : memref<2x384xf32, #tpu.memory_space<vmem>>, vector<1x17xf32>
    tpu.vector_store %arg22[%c1_64, %c305_65], %22 {strides = array<i32>} : memref<2x384xf32, #tpu.memory_space<vmem>>, vector<1x17xf32>,
    %73 = vector.extract_strided_slice %13 {offsets = [16, 0], sizes = [1, 17], strides = [1, 1]} : vector<17x17xf32> to vector<1x17xf32>
    %c0_66 = arith.constant 0 : index
    %c324 = arith.constant 324 : index
    %74 = vector.load %arg22[%c0_66, %c324] : memref<2x384xf32, #tpu.memory_space<vmem>>, vector<1x17xf32>
    tpu.vector_store %arg22[%c0_66, %c324], %73 {strides = array<i32>} : memref<2x384xf32, #tpu.memory_space<vmem>>, vector<1x17xf32>,
    %c1_67 = arith.constant 1 : index
    %c324_68 = arith.constant 324 : index
    %75 = vector.load %arg22[%c1_67, %c324_68] : memref<2x384xf32, #tpu.memory_space<vmem>>, vector<1x17xf32>
    tpu.vector_store %arg22[%c1_67, %c324_68], %22 {strides = array<i32>} : memref<2x384xf32, #tpu.memory_space<vmem>>, vector<1x17xf32>,
    %c0_69 = arith.constant 0 : index
    %c0_70 = arith.constant 0 : index
    %76 = vector.load %arg22[%c0_69, %c0_70] : memref<2x384xf32, #tpu.memory_space<vmem>>, vector<1x384xf32>
    %c1_71 = arith.constant 1 : index
    %c0_72 = arith.constant 0 : index
    %77 = vector.load %arg22[%c1_71, %c0_72] : memref<2x384xf32, #tpu.memory_space<vmem>>, vector<1x384xf32>
    %c20_i32 = arith.constant 20 : i32
    %78 = tpu.dynamic_rotate %76 by %c20_i32 dim 1 : vector<1x384xf32>, i32 -> vector<1x384xf32>
    %c0_73 = arith.constant 0 : index
    %c0_74 = arith.constant 0 : index
    %79 = vector.load %arg23[%c0_73, %c0_74] : memref<168x384xf32, #tpu.memory_space<vmem>>, vector<1x384xf32>
    tpu.vector_store %arg23[%c0_73, %c0_74], %78 {strides = array<i32>} : memref<168x384xf32, #tpu.memory_space<vmem>>, vector<1x384xf32>,
    %c1_i32 = arith.constant 1 : i32
    %80 = tpu.dynamic_rotate %76 by %c1_i32 dim 1 : vector<1x384xf32>, i32 -> vector<1x384xf32>
    %c1_75 = arith.constant 1 : index
    %c0_76 = arith.constant 0 : index
    %81 = vector.load %arg23[%c1_75, %c0_76] : memref<168x384xf32, #tpu.memory_space<vmem>>, vector<1x384xf32>
    tpu.vector_store %arg23[%c1_75, %c0_76], %80 {strides = array<i32>} : memref<168x384xf32, #tpu.memory_space<vmem>>, vector<1x384xf32>,
    %c366_i32 = arith.constant 366 : i32
    %82 = tpu.dynamic_rotate %76 by %c366_i32 dim 1 : vector<1x384xf32>, i32 -> vector<1x384xf32>
    %c2 = arith.constant 2 : index
    %c0_77 = arith.constant 0 : index
    %83 = vector.load %arg23[%c2, %c0_77] : memref<168x384xf32, #tpu.memory_space<vmem>>, vector<1x384xf32>
    tpu.vector_store %arg23[%c2, %c0_77], %82 {strides = array<i32>} : memref<168x384xf32, #tpu.memory_space<vmem>>, vector<1x384xf32>,
    %c19_i32 = arith.constant 19 : i32
    %84 = tpu.dynamic_rotate %76 by %c19_i32 dim 1 : vector<1x384xf32>, i32 -> vector<1x384xf32>
    %c3 = arith.constant 3 : index
    %c0_78 = arith.constant 0 : index
    %85 = vector.load %arg23[%c3, %c0_78] : memref<168x384xf32, #tpu.memory_space<vmem>>, vector<1x384xf32>
    tpu.vector_store %arg23[%c3, %c0_78], %84 {strides = array<i32>} : memref<168x384xf32, #tpu.memory_space<vmem>>, vector<1x384xf32>,
    %c4 = arith.constant 4 : index
    %c0_79 = arith.constant 0 : index
    %86 = vector.load %arg23[%c4, %c0_79] : memref<168x384xf32, #tpu.memory_space<vmem>>, vector<1x384xf32>
    tpu.vector_store %arg23[%c4, %c0_79], %76 {strides = array<i32>} : memref<168x384xf32, #tpu.memory_space<vmem>>, vector<1x384xf32>,
    %c365_i32 = arith.constant 365 : i32
    %87 = tpu.dynamic_rotate %76 by %c365_i32 dim 1 : vector<1x384xf32>, i32 -> vector<1x384xf32>
    %c5 = arith.constant 5 : index
    %c0_80 = arith.constant 0 : index
    %88 = vector.load %arg23[%c5, %c0_80] : memref<168x384xf32, #tpu.memory_space<vmem>>, vector<1x384xf32>
    tpu.vector_store %arg23[%c5, %c0_80], %87 {strides = array<i32>} : memref<168x384xf32, #tpu.memory_space<vmem>>, vector<1x384xf32>,
    %c18_i32 = arith.constant 18 : i32
    %89 = tpu.dynamic_rotate %76 by %c18_i32 dim 1 : vector<1x384xf32>, i32 -> vector<1x384xf32>
    %c6 = arith.constant 6 : index
    %c0_81 = arith.constant 0 : index
    %90 = vector.load %arg23[%c6, %c0_81] : memref<168x384xf32, #tpu.memory_space<vmem>>, vector<1x384xf32>
    tpu.vector_store %arg23[%c6, %c0_81], %89 {strides = array<i32>} : memref<168x384xf32, #tpu.memory_space<vmem>>, vector<1x384xf32>,
    %c383_i32 = arith.constant 383 : i32
    %91 = tpu.dynamic_rotate %76 by %c383_i32 dim 1 : vector<1x384xf32>, i32 -> vector<1x384xf32>
    %c7 = arith.constant 7 : index
    %c0_82 = arith.constant 0 : index
    %92 = vector.load %arg23[%c7, %c0_82] : memref<168x384xf32, #tpu.memory_space<vmem>>, vector<1x384xf32>
    tpu.vector_store %arg23[%c7, %c0_82], %91 {strides = array<i32>} : memref<168x384xf32, #tpu.memory_space<vmem>>, vector<1x384xf32>,
    %c364_i32 = arith.constant 364 : i32
    %93 = tpu.dynamic_rotate %76 by %c364_i32 dim 1 : vector<1x384xf32>, i32 -> vector<1x384xf32>
    %c8 = arith.constant 8 : index
    %c0_83 = arith.constant 0 : index
    %94 = vector.load %arg23[%c8, %c0_83] : memref<168x384xf32, #tpu.memory_space<vmem>>, vector<1x384xf32>
    tpu.vector_store %arg23[%c8, %c0_83], %93 {strides = array<i32>} : memref<168x384xf32, #tpu.memory_space<vmem>>, vector<1x384xf32>,
    %cst_84 = arith.constant 0.000000e+00 : f32
    %95 = vector.broadcast %cst_84 : f32 to vector<7x384xf32>
    %c9 = arith.constant 9 : index
    %c0_85 = arith.constant 0 : index
    %96 = vector.load %arg23[%c9, %c0_85] : memref<168x384xf32, #tpu.memory_space<vmem>>, vector<7x384xf32>
    tpu.vector_store %arg23[%c9, %c0_85], %95 {strides = array<i32>} : memref<168x384xf32, #tpu.memory_space<vmem>>, vector<7x384xf32>,
    %c0_86 = arith.constant 0 : index
    %c0_87 = arith.constant 0 : index
    %97 = vector.load %arg8[%c0_86, %c0_87] : memref<16x16xf32, #tpu.memory_space<vmem>>, vector<16x16xf32>
    %c0_88 = arith.constant 0 : index
    %c0_89 = arith.constant 0 : index
    %98 = vector.load %arg23[%c0_88, %c0_89] : memref<168x384xf32, #tpu.memory_space<vmem>>, vector<16x384xf32>
    %cst_90 = arith.constant dense<0.000000e+00> : vector<16x384xf32>
    %99 = tpu.matmul %97, %98, %cst_90 {dimension_numbers = #tpu.dot_dimension_numbers<[1], [0], [0], [1], [0, 0, 1, 1], [], []>} : vector<16x16xf32>, vector<16x384xf32>, vector<16x384xf32> -> vector<16x384xf32>
    %c0_91 = arith.constant 0 : index
    %c0_92 = arith.constant 0 : index
    %100 = vector.load %arg9[%c0_91, %c0_92] : memref<16x1xf32, #tpu.memory_space<vmem>>, vector<16x1xf32>
    %101 = vector.broadcast %100 : vector<16x1xf32> to vector<16x384xf32>
    %102 = arith.addf %99, %101 : vector<16x384xf32>
    %cst_93 = arith.constant 0.00999999977 : f32
    %103 = vector.broadcast %cst_93 : f32 to vector<16x384xf32>
    %104 = arith.mulf %103, %102 : vector<16x384xf32>
    %105 = arith.maximumf %102, %104 : vector<16x384xf32>
    %106 = vector.broadcast %0 : vector<1x384xf32> to vector<16x384xf32>
    %107 = arith.mulf %105, %106 : vector<16x384xf32>
    %c20_i32_94 = arith.constant 20 : i32
    %108 = tpu.dynamic_rotate %107 by %c20_i32_94 dim 1 : vector<16x384xf32>, i32 -> vector<16x384xf32>
    %c0_95 = arith.constant 0 : index
    %c0_96 = arith.constant 0 : index
    %109 = vector.load %arg23[%c0_95, %c0_96] : memref<168x384xf32, #tpu.memory_space<vmem>>, vector<16x384xf32>
    tpu.vector_store %arg23[%c0_95, %c0_96], %108 {strides = array<i32>} : memref<168x384xf32, #tpu.memory_space<vmem>>, vector<16x384xf32>,
    %c1_i32_97 = arith.constant 1 : i32
    %110 = tpu.dynamic_rotate %107 by %c1_i32_97 dim 1 : vector<16x384xf32>, i32 -> vector<16x384xf32>
    %c16 = arith.constant 16 : index
    %c0_98 = arith.constant 0 : index
    %111 = vector.load %arg23[%c16, %c0_98] : memref<168x384xf32, #tpu.memory_space<vmem>>, vector<16x384xf32>
    tpu.vector_store %arg23[%c16, %c0_98], %110 {strides = array<i32>} : memref<168x384xf32, #tpu.memory_space<vmem>>, vector<16x384xf32>,
    %c366_i32_99 = arith.constant 366 : i32
    %112 = tpu.dynamic_rotate %107 by %c366_i32_99 dim 1 : vector<16x384xf32>, i32 -> vector<16x384xf32>
    %c32 = arith.constant 32 : index
    %c0_100 = arith.constant 0 : index
    %113 = vector.load %arg23[%c32, %c0_100] : memref<168x384xf32, #tpu.memory_space<vmem>>, vector<16x384xf32>
    tpu.vector_store %arg23[%c32, %c0_100], %112 {strides = array<i32>} : memref<168x384xf32, #tpu.memory_space<vmem>>, vector<16x384xf32>,
    %c19_i32_101 = arith.constant 19 : i32
    %114 = tpu.dynamic_rotate %107 by %c19_i32_101 dim 1 : vector<16x384xf32>, i32 -> vector<16x384xf32>
    %c48 = arith.constant 48 : index
    %c0_102 = arith.constant 0 : index
    %115 = vector.load %arg23[%c48, %c0_102] : memref<168x384xf32, #tpu.memory_space<vmem>>, vector<16x384xf32>
    tpu.vector_store %arg23[%c48, %c0_102], %114 {strides = array<i32>} : memref<168x384xf32, #tpu.memory_space<vmem>>, vector<16x384xf32>,
    %c64 = arith.constant 64 : index
    %c0_103 = arith.constant 0 : index
    %116 = vector.load %arg23[%c64, %c0_103] : memref<168x384xf32, #tpu.memory_space<vmem>>, vector<16x384xf32>
    tpu.vector_store %arg23[%c64, %c0_103], %107 {strides = array<i32>} : memref<168x384xf32, #tpu.memory_space<vmem>>, vector<16x384xf32>,
    %c365_i32_104 = arith.constant 365 : i32
    %117 = tpu.dynamic_rotate %107 by %c365_i32_104 dim 1 : vector<16x384xf32>, i32 -> vector<16x384xf32>
    %c80 = arith.constant 80 : index
    %c0_105 = arith.constant 0 : index
    %118 = vector.load %arg23[%c80, %c0_105] : memref<168x384xf32, #tpu.memory_space<vmem>>, vector<16x384xf32>
    tpu.vector_store %arg23[%c80, %c0_105], %117 {strides = array<i32>} : memref<168x384xf32, #tpu.memory_space<vmem>>, vector<16x384xf32>,
    %c18_i32_106 = arith.constant 18 : i32
    %119 = tpu.dynamic_rotate %107 by %c18_i32_106 dim 1 : vector<16x384xf32>, i32 -> vector<16x384xf32>
    %c96_107 = arith.constant 96 : index
    %c0_108 = arith.constant 0 : index
    %120 = vector.load %arg23[%c96_107, %c0_108] : memref<168x384xf32, #tpu.memory_space<vmem>>, vector<16x384xf32>
    tpu.vector_store %arg23[%c96_107, %c0_108], %119 {strides = array<i32>} : memref<168x384xf32, #tpu.memory_space<vmem>>, vector<16x384xf32>,
    %c383_i32_109 = arith.constant 383 : i32
    %121 = tpu.dynamic_rotate %107 by %c383_i32_109 dim 1 : vector<16x384xf32>, i32 -> vector<16x384xf32>
    %c112 = arith.constant 112 : index
    %c0_110 = arith.constant 0 : index
    %122 = vector.load %arg23[%c112, %c0_110] : memref<168x384xf32, #tpu.memory_space<vmem>>, vector<16x384xf32>
    tpu.vector_store %arg23[%c112, %c0_110], %121 {strides = array<i32>} : memref<168x384xf32, #tpu.memory_space<vmem>>, vector<16x384xf32>,
    %c364_i32_111 = arith.constant 364 : i32
    %123 = tpu.dynamic_rotate %107 by %c364_i32_111 dim 1 : vector<16x384xf32>, i32 -> vector<16x384xf32>
    %c128 = arith.constant 128 : index
    %c0_112 = arith.constant 0 : index
    %124 = vector.load %arg23[%c128, %c0_112] : memref<168x384xf32, #tpu.memory_space<vmem>>, vector<16x384xf32>
    tpu.vector_store %arg23[%c128, %c0_112], %123 {strides = array<i32>} : memref<168x384xf32, #tpu.memory_space<vmem>>, vector<16x384xf32>,
    %c0_113 = arith.constant 0 : index
    %c0_114 = arith.constant 0 : index
    %125 = vector.load %arg10[%c0_113, %c0_114] : memref<16x144xf32, #tpu.memory_space<vmem>>, vector<16x144xf32>
    %c0_115 = arith.constant 0 : index
    %c0_116 = arith.constant 0 : index
    %126 = vector.load %arg23[%c0_115, %c0_116] : memref<168x384xf32, #tpu.memory_space<vmem>>, vector<144x384xf32>
    %cst_117 = arith.constant dense<0.000000e+00> : vector<16x384xf32>
    %127 = tpu.matmul %125, %126, %cst_117 {dimension_numbers = #tpu.dot_dimension_numbers<[1], [0], [0], [1], [0, 0, 1, 1], [], []>} : vector<16x144xf32>, vector<144x384xf32>, vector<16x384xf32> -> vector<16x384xf32>
    %c0_118 = arith.constant 0 : index
    %c0_119 = arith.constant 0 : index
    %128 = vector.load %arg11[%c0_118, %c0_119] : memref<16x1xf32, #tpu.memory_space<vmem>>, vector<16x1xf32>
    %129 = vector.broadcast %128 : vector<16x1xf32> to vector<16x384xf32>
    %130 = arith.addf %127, %129 : vector<16x384xf32>
    %cst_120 = arith.constant 0.00999999977 : f32
    %131 = vector.broadcast %cst_120 : f32 to vector<16x384xf32>
    %132 = arith.mulf %131, %130 : vector<16x384xf32>
    %133 = arith.maximumf %130, %132 : vector<16x384xf32>
    %134 = vector.broadcast %0 : vector<1x384xf32> to vector<16x384xf32>
    %135 = arith.mulf %133, %134 : vector<16x384xf32>
    %c20_i32_121 = arith.constant 20 : i32
    %136 = tpu.dynamic_rotate %135 by %c20_i32_121 dim 1 : vector<16x384xf32>, i32 -> vector<16x384xf32>
    %c0_122 = arith.constant 0 : index
    %c0_123 = arith.constant 0 : index
    %137 = vector.load %arg23[%c0_122, %c0_123] : memref<168x384xf32, #tpu.memory_space<vmem>>, vector<16x384xf32>
    tpu.vector_store %arg23[%c0_122, %c0_123], %136 {strides = array<i32>} : memref<168x384xf32, #tpu.memory_space<vmem>>, vector<16x384xf32>,
    %c1_i32_124 = arith.constant 1 : i32
    %138 = tpu.dynamic_rotate %135 by %c1_i32_124 dim 1 : vector<16x384xf32>, i32 -> vector<16x384xf32>
    %c16_125 = arith.constant 16 : index
    %c0_126 = arith.constant 0 : index
    %139 = vector.load %arg23[%c16_125, %c0_126] : memref<168x384xf32, #tpu.memory_space<vmem>>, vector<16x384xf32>
    tpu.vector_store %arg23[%c16_125, %c0_126], %138 {strides = array<i32>} : memref<168x384xf32, #tpu.memory_space<vmem>>, vector<16x384xf32>,
    %c366_i32_127 = arith.constant 366 : i32
    %140 = tpu.dynamic_rotate %135 by %c366_i32_127 dim 1 : vector<16x384xf32>, i32 -> vector<16x384xf32>
    %c32_128 = arith.constant 32 : index
    %c0_129 = arith.constant 0 : index
    %141 = vector.load %arg23[%c32_128, %c0_129] : memref<168x384xf32, #tpu.memory_space<vmem>>, vector<16x384xf32>
    tpu.vector_store %arg23[%c32_128, %c0_129], %140 {strides = array<i32>} : memref<168x384xf32, #tpu.memory_space<vmem>>, vector<16x384xf32>,
    %c19_i32_130 = arith.constant 19 : i32
    %142 = tpu.dynamic_rotate %135 by %c19_i32_130 dim 1 : vector<16x384xf32>, i32 -> vector<16x384xf32>
    %c48_131 = arith.constant 48 : index
    %c0_132 = arith.constant 0 : index
    %143 = vector.load %arg23[%c48_131, %c0_132] : memref<168x384xf32, #tpu.memory_space<vmem>>, vector<16x384xf32>
    tpu.vector_store %arg23[%c48_131, %c0_132], %142 {strides = array<i32>} : memref<168x384xf32, #tpu.memory_space<vmem>>, vector<16x384xf32>,
    %c64_133 = arith.constant 64 : index
    %c0_134 = arith.constant 0 : index
    %144 = vector.load %arg23[%c64_133, %c0_134] : memref<168x384xf32, #tpu.memory_space<vmem>>, vector<16x384xf32>
    tpu.vector_store %arg23[%c64_133, %c0_134], %135 {strides = array<i32>} : memref<168x384xf32, #tpu.memory_space<vmem>>, vector<16x384xf32>,
    %c365_i32_135 = arith.constant 365 : i32
    %145 = tpu.dynamic_rotate %135 by %c365_i32_135 dim 1 : vector<16x384xf32>, i32 -> vector<16x384xf32>
    %c80_136 = arith.constant 80 : index
    %c0_137 = arith.constant 0 : index
    %146 = vector.load %arg23[%c80_136, %c0_137] : memref<168x384xf32, #tpu.memory_space<vmem>>, vector<16x384xf32>
    tpu.vector_store %arg23[%c80_136, %c0_137], %145 {strides = array<i32>} : memref<168x384xf32, #tpu.memory_space<vmem>>, vector<16x384xf32>,
    %c18_i32_138 = arith.constant 18 : i32
    %147 = tpu.dynamic_rotate %135 by %c18_i32_138 dim 1 : vector<16x384xf32>, i32 -> vector<16x384xf32>
    %c96_139 = arith.constant 96 : index
    %c0_140 = arith.constant 0 : index
    %148 = vector.load %arg23[%c96_139, %c0_140] : memref<168x384xf32, #tpu.memory_space<vmem>>, vector<16x384xf32>
    tpu.vector_store %arg23[%c96_139, %c0_140], %147 {strides = array<i32>} : memref<168x384xf32, #tpu.memory_space<vmem>>, vector<16x384xf32>,
    %c383_i32_141 = arith.constant 383 : i32
    %149 = tpu.dynamic_rotate %135 by %c383_i32_141 dim 1 : vector<16x384xf32>, i32 -> vector<16x384xf32>
    %c112_142 = arith.constant 112 : index
    %c0_143 = arith.constant 0 : index
    %150 = vector.load %arg23[%c112_142, %c0_143] : memref<168x384xf32, #tpu.memory_space<vmem>>, vector<16x384xf32>
    tpu.vector_store %arg23[%c112_142, %c0_143], %149 {strides = array<i32>} : memref<168x384xf32, #tpu.memory_space<vmem>>, vector<16x384xf32>,
    %c364_i32_144 = arith.constant 364 : i32
    %151 = tpu.dynamic_rotate %135 by %c364_i32_144 dim 1 : vector<16x384xf32>, i32 -> vector<16x384xf32>
    %c128_145 = arith.constant 128 : index
    %c0_146 = arith.constant 0 : index
    %152 = vector.load %arg23[%c128_145, %c0_146] : memref<168x384xf32, #tpu.memory_space<vmem>>, vector<16x384xf32>
    tpu.vector_store %arg23[%c128_145, %c0_146], %151 {strides = array<i32>} : memref<168x384xf32, #tpu.memory_space<vmem>>, vector<16x384xf32>,
    %c0_147 = arith.constant 0 : index
    %c0_148 = arith.constant 0 : index
    %153 = vector.load %arg12[%c0_147, %c0_148] : memref<16x144xf32, #tpu.memory_space<vmem>>, vector<16x144xf32>
    %c0_149 = arith.constant 0 : index
    %c0_150 = arith.constant 0 : index
    %154 = vector.load %arg23[%c0_149, %c0_150] : memref<168x384xf32, #tpu.memory_space<vmem>>, vector<144x384xf32>
    %cst_151 = arith.constant dense<0.000000e+00> : vector<16x384xf32>
    %155 = tpu.matmul %153, %154, %cst_151 {dimension_numbers = #tpu.dot_dimension_numbers<[1], [0], [0], [1], [0, 0, 1, 1], [], []>} : vector<16x144xf32>, vector<144x384xf32>, vector<16x384xf32> -> vector<16x384xf32>
    %c0_152 = arith.constant 0 : index
    %c0_153 = arith.constant 0 : index
    %156 = vector.load %arg13[%c0_152, %c0_153] : memref<16x1xf32, #tpu.memory_space<vmem>>, vector<16x1xf32>
    %157 = vector.broadcast %156 : vector<16x1xf32> to vector<16x384xf32>
    %158 = arith.addf %155, %157 : vector<16x384xf32>
    %cst_154 = arith.constant 0.00999999977 : f32
    %159 = vector.broadcast %cst_154 : f32 to vector<16x384xf32>
    %160 = arith.mulf %159, %158 : vector<16x384xf32>
    %161 = arith.maximumf %158, %160 : vector<16x384xf32>
    %162 = vector.broadcast %0 : vector<1x384xf32> to vector<16x384xf32>
    %163 = arith.mulf %161, %162 : vector<16x384xf32>
    %c20_i32_155 = arith.constant 20 : i32
    %164 = tpu.dynamic_rotate %163 by %c20_i32_155 dim 1 : vector<16x384xf32>, i32 -> vector<16x384xf32>
    %c0_156 = arith.constant 0 : index
    %c0_157 = arith.constant 0 : index
    %165 = vector.load %arg23[%c0_156, %c0_157] : memref<168x384xf32, #tpu.memory_space<vmem>>, vector<16x384xf32>
    tpu.vector_store %arg23[%c0_156, %c0_157], %164 {strides = array<i32>} : memref<168x384xf32, #tpu.memory_space<vmem>>, vector<16x384xf32>,
    %c20_i32_158 = arith.constant 20 : i32
    %166 = tpu.dynamic_rotate %76 by %c20_i32_158 dim 1 : vector<1x384xf32>, i32 -> vector<1x384xf32>
    %c16_159 = arith.constant 16 : index
    %c0_160 = arith.constant 0 : index
    %167 = vector.load %arg23[%c16_159, %c0_160] : memref<168x384xf32, #tpu.memory_space<vmem>>, vector<1x384xf32>
    tpu.vector_store %arg23[%c16_159, %c0_160], %166 {strides = array<i32>} : memref<168x384xf32, #tpu.memory_space<vmem>>, vector<1x384xf32>,
    %c20_i32_161 = arith.constant 20 : i32
    %168 = tpu.dynamic_rotate %77 by %c20_i32_161 dim 1 : vector<1x384xf32>, i32 -> vector<1x384xf32>
    %c17 = arith.constant 17 : index
    %c0_162 = arith.constant 0 : index
    %169 = vector.load %arg23[%c17, %c0_162] : memref<168x384xf32, #tpu.memory_space<vmem>>, vector<1x384xf32>
    tpu.vector_store %arg23[%c17, %c0_162], %168 {strides = array<i32>} : memref<168x384xf32, #tpu.memory_space<vmem>>, vector<1x384xf32>,
    %c1_i32_163 = arith.constant 1 : i32
    %170 = tpu.dynamic_rotate %163 by %c1_i32_163 dim 1 : vector<16x384xf32>, i32 -> vector<16x384xf32>
    %c18 = arith.constant 18 : index
    %c0_164 = arith.constant 0 : index
    %171 = vector.load %arg23[%c18, %c0_164] : memref<168x384xf32, #tpu.memory_space<vmem>>, vector<16x384xf32>
    tpu.vector_store %arg23[%c18, %c0_164], %170 {strides = array<i32>} : memref<168x384xf32, #tpu.memory_space<vmem>>, vector<16x384xf32>,
    %c1_i32_165 = arith.constant 1 : i32
    %172 = tpu.dynamic_rotate %76 by %c1_i32_165 dim 1 : vector<1x384xf32>, i32 -> vector<1x384xf32>
    %c34 = arith.constant 34 : index
    %c0_166 = arith.constant 0 : index
    %173 = vector.load %arg23[%c34, %c0_166] : memref<168x384xf32, #tpu.memory_space<vmem>>, vector<1x384xf32>
    tpu.vector_store %arg23[%c34, %c0_166], %172 {strides = array<i32>} : memref<168x384xf32, #tpu.memory_space<vmem>>, vector<1x384xf32>,
    %c1_i32_167 = arith.constant 1 : i32
    %174 = tpu.dynamic_rotate %77 by %c1_i32_167 dim 1 : vector<1x384xf32>, i32 -> vector<1x384xf32>
    %c35 = arith.constant 35 : index
    %c0_168 = arith.constant 0 : index
    %175 = vector.load %arg23[%c35, %c0_168] : memref<168x384xf32, #tpu.memory_space<vmem>>, vector<1x384xf32>
    tpu.vector_store %arg23[%c35, %c0_168], %174 {strides = array<i32>} : memref<168x384xf32, #tpu.memory_space<vmem>>, vector<1x384xf32>,
    %c366_i32_169 = arith.constant 366 : i32
    %176 = tpu.dynamic_rotate %163 by %c366_i32_169 dim 1 : vector<16x384xf32>, i32 -> vector<16x384xf32>
    %c36 = arith.constant 36 : index
    %c0_170 = arith.constant 0 : index
    %177 = vector.load %arg23[%c36, %c0_170] : memref<168x384xf32, #tpu.memory_space<vmem>>, vector<16x384xf32>
    tpu.vector_store %arg23[%c36, %c0_170], %176 {strides = array<i32>} : memref<168x384xf32, #tpu.memory_space<vmem>>, vector<16x384xf32>,
    %c366_i32_171 = arith.constant 366 : i32
    %178 = tpu.dynamic_rotate %76 by %c366_i32_171 dim 1 : vector<1x384xf32>, i32 -> vector<1x384xf32>
    %c52 = arith.constant 52 : index
    %c0_172 = arith.constant 0 : index
    %179 = vector.load %arg23[%c52, %c0_172] : memref<168x384xf32, #tpu.memory_space<vmem>>, vector<1x384xf32>
    tpu.vector_store %arg23[%c52, %c0_172], %178 {strides = array<i32>} : memref<168x384xf32, #tpu.memory_space<vmem>>, vector<1x384xf32>,
    %c366_i32_173 = arith.constant 366 : i32
    %180 = tpu.dynamic_rotate %77 by %c366_i32_173 dim 1 : vector<1x384xf32>, i32 -> vector<1x384xf32>
    %c53 = arith.constant 53 : index
    %c0_174 = arith.constant 0 : index
    %181 = vector.load %arg23[%c53, %c0_174] : memref<168x384xf32, #tpu.memory_space<vmem>>, vector<1x384xf32>
    tpu.vector_store %arg23[%c53, %c0_174], %180 {strides = array<i32>} : memref<168x384xf32, #tpu.memory_space<vmem>>, vector<1x384xf32>,
    %c19_i32_175 = arith.constant 19 : i32
    %182 = tpu.dynamic_rotate %163 by %c19_i32_175 dim 1 : vector<16x384xf32>, i32 -> vector<16x384xf32>
    %c54 = arith.constant 54 : index
    %c0_176 = arith.constant 0 : index
    %183 = vector.load %arg23[%c54, %c0_176] : memref<168x384xf32, #tpu.memory_space<vmem>>, vector<16x384xf32>
    tpu.vector_store %arg23[%c54, %c0_176], %182 {strides = array<i32>} : memref<168x384xf32, #tpu.memory_space<vmem>>, vector<16x384xf32>,
    %c19_i32_177 = arith.constant 19 : i32
    %184 = tpu.dynamic_rotate %76 by %c19_i32_177 dim 1 : vector<1x384xf32>, i32 -> vector<1x384xf32>
    %c70 = arith.constant 70 : index
    %c0_178 = arith.constant 0 : index
    %185 = vector.load %arg23[%c70, %c0_178] : memref<168x384xf32, #tpu.memory_space<vmem>>, vector<1x384xf32>
    tpu.vector_store %arg23[%c70, %c0_178], %184 {strides = array<i32>} : memref<168x384xf32, #tpu.memory_space<vmem>>, vector<1x384xf32>,
    %c19_i32_179 = arith.constant 19 : i32
    %186 = tpu.dynamic_rotate %77 by %c19_i32_179 dim 1 : vector<1x384xf32>, i32 -> vector<1x384xf32>
    %c71 = arith.constant 71 : index
    %c0_180 = arith.constant 0 : index
    %187 = vector.load %arg23[%c71, %c0_180] : memref<168x384xf32, #tpu.memory_space<vmem>>, vector<1x384xf32>
    tpu.vector_store %arg23[%c71, %c0_180], %186 {strides = array<i32>} : memref<168x384xf32, #tpu.memory_space<vmem>>, vector<1x384xf32>,
    %c72 = arith.constant 72 : index
    %c0_181 = arith.constant 0 : index
    %188 = vector.load %arg23[%c72, %c0_181] : memref<168x384xf32, #tpu.memory_space<vmem>>, vector<16x384xf32>
    tpu.vector_store %arg23[%c72, %c0_181], %163 {strides = array<i32>} : memref<168x384xf32, #tpu.memory_space<vmem>>, vector<16x384xf32>,
    %c88 = arith.constant 88 : index
    %c0_182 = arith.constant 0 : index
    %189 = vector.load %arg23[%c88, %c0_182] : memref<168x384xf32, #tpu.memory_space<vmem>>, vector<1x384xf32>
    tpu.vector_store %arg23[%c88, %c0_182], %76 {strides = array<i32>} : memref<168x384xf32, #tpu.memory_space<vmem>>, vector<1x384xf32>,
    %c89 = arith.constant 89 : index
    %c0_183 = arith.constant 0 : index
    %190 = vector.load %arg23[%c89, %c0_183] : memref<168x384xf32, #tpu.memory_space<vmem>>, vector<1x384xf32>
    tpu.vector_store %arg23[%c89, %c0_183], %77 {strides = array<i32>} : memref<168x384xf32, #tpu.memory_space<vmem>>, vector<1x384xf32>,
    %c365_i32_184 = arith.constant 365 : i32
    %191 = tpu.dynamic_rotate %163 by %c365_i32_184 dim 1 : vector<16x384xf32>, i32 -> vector<16x384xf32>
    %c90 = arith.constant 90 : index
    %c0_185 = arith.constant 0 : index
    %192 = vector.load %arg23[%c90, %c0_185] : memref<168x384xf32, #tpu.memory_space<vmem>>, vector<16x384xf32>
    tpu.vector_store %arg23[%c90, %c0_185], %191 {strides = array<i32>} : memref<168x384xf32, #tpu.memory_space<vmem>>, vector<16x384xf32>,
    %c365_i32_186 = arith.constant 365 : i32
    %193 = tpu.dynamic_rotate %76 by %c365_i32_186 dim 1 : vector<1x384xf32>, i32 -> vector<1x384xf32>
    %c106 = arith.constant 106 : index
    %c0_187 = arith.constant 0 : index
    %194 = vector.load %arg23[%c106, %c0_187] : memref<168x384xf32, #tpu.memory_space<vmem>>, vector<1x384xf32>
    tpu.vector_store %arg23[%c106, %c0_187], %193 {strides = array<i32>} : memref<168x384xf32, #tpu.memory_space<vmem>>, vector<1x384xf32>,
    %c365_i32_188 = arith.constant 365 : i32
    %195 = tpu.dynamic_rotate %77 by %c365_i32_188 dim 1 : vector<1x384xf32>, i32 -> vector<1x384xf32>
    %c107 = arith.constant 107 : index
    %c0_189 = arith.constant 0 : index
    %196 = vector.load %arg23[%c107, %c0_189] : memref<168x384xf32, #tpu.memory_space<vmem>>, vector<1x384xf32>
    tpu.vector_store %arg23[%c107, %c0_189], %195 {strides = array<i32>} : memref<168x384xf32, #tpu.memory_space<vmem>>, vector<1x384xf32>,
    %c18_i32_190 = arith.constant 18 : i32
    %197 = tpu.dynamic_rotate %163 by %c18_i32_190 dim 1 : vector<16x384xf32>, i32 -> vector<16x384xf32>
    %c108 = arith.constant 108 : index
    %c0_191 = arith.constant 0 : index
    %198 = vector.load %arg23[%c108, %c0_191] : memref<168x384xf32, #tpu.memory_space<vmem>>, vector<16x384xf32>
    tpu.vector_store %arg23[%c108, %c0_191], %197 {strides = array<i32>} : memref<168x384xf32, #tpu.memory_space<vmem>>, vector<16x384xf32>,
    %c18_i32_192 = arith.constant 18 : i32
    %199 = tpu.dynamic_rotate %76 by %c18_i32_192 dim 1 : vector<1x384xf32>, i32 -> vector<1x384xf32>
    %c124 = arith.constant 124 : index
    %c0_193 = arith.constant 0 : index
    %200 = vector.load %arg23[%c124, %c0_193] : memref<168x384xf32, #tpu.memory_space<vmem>>, vector<1x384xf32>
    tpu.vector_store %arg23[%c124, %c0_193], %199 {strides = array<i32>} : memref<168x384xf32, #tpu.memory_space<vmem>>, vector<1x384xf32>,
    %c18_i32_194 = arith.constant 18 : i32
    %201 = tpu.dynamic_rotate %77 by %c18_i32_194 dim 1 : vector<1x384xf32>, i32 -> vector<1x384xf32>
    %c125 = arith.constant 125 : index
    %c0_195 = arith.constant 0 : index
    %202 = vector.load %arg23[%c125, %c0_195] : memref<168x384xf32, #tpu.memory_space<vmem>>, vector<1x384xf32>
    tpu.vector_store %arg23[%c125, %c0_195], %201 {strides = array<i32>} : memref<168x384xf32, #tpu.memory_space<vmem>>, vector<1x384xf32>,
    %c383_i32_196 = arith.constant 383 : i32
    %203 = tpu.dynamic_rotate %163 by %c383_i32_196 dim 1 : vector<16x384xf32>, i32 -> vector<16x384xf32>
    %c126 = arith.constant 126 : index
    %c0_197 = arith.constant 0 : index
    %204 = vector.load %arg23[%c126, %c0_197] : memref<168x384xf32, #tpu.memory_space<vmem>>, vector<16x384xf32>
    tpu.vector_store %arg23[%c126, %c0_197], %203 {strides = array<i32>} : memref<168x384xf32, #tpu.memory_space<vmem>>, vector<16x384xf32>,
    %c383_i32_198 = arith.constant 383 : i32
    %205 = tpu.dynamic_rotate %76 by %c383_i32_198 dim 1 : vector<1x384xf32>, i32 -> vector<1x384xf32>
    %c142 = arith.constant 142 : index
    %c0_199 = arith.constant 0 : index
    %206 = vector.load %arg23[%c142, %c0_199] : memref<168x384xf32, #tpu.memory_space<vmem>>, vector<1x384xf32>
    tpu.vector_store %arg23[%c142, %c0_199], %205 {strides = array<i32>} : memref<168x384xf32, #tpu.memory_space<vmem>>, vector<1x384xf32>,
    %c383_i32_200 = arith.constant 383 : i32
    %207 = tpu.dynamic_rotate %77 by %c383_i32_200 dim 1 : vector<1x384xf32>, i32 -> vector<1x384xf32>
    %c143 = arith.constant 143 : index
    %c0_201 = arith.constant 0 : index
    %208 = vector.load %arg23[%c143, %c0_201] : memref<168x384xf32, #tpu.memory_space<vmem>>, vector<1x384xf32>
    tpu.vector_store %arg23[%c143, %c0_201], %207 {strides = array<i32>} : memref<168x384xf32, #tpu.memory_space<vmem>>, vector<1x384xf32>,
    %c364_i32_202 = arith.constant 364 : i32
    %209 = tpu.dynamic_rotate %163 by %c364_i32_202 dim 1 : vector<16x384xf32>, i32 -> vector<16x384xf32>
    %c144 = arith.constant 144 : index
    %c0_203 = arith.constant 0 : index
    %210 = vector.load %arg23[%c144, %c0_203] : memref<168x384xf32, #tpu.memory_space<vmem>>, vector<16x384xf32>
    tpu.vector_store %arg23[%c144, %c0_203], %209 {strides = array<i32>} : memref<168x384xf32, #tpu.memory_space<vmem>>, vector<16x384xf32>,
    %c364_i32_204 = arith.constant 364 : i32
    %211 = tpu.dynamic_rotate %76 by %c364_i32_204 dim 1 : vector<1x384xf32>, i32 -> vector<1x384xf32>
    %c160 = arith.constant 160 : index
    %c0_205 = arith.constant 0 : index
    %212 = vector.load %arg23[%c160, %c0_205] : memref<168x384xf32, #tpu.memory_space<vmem>>, vector<1x384xf32>
    tpu.vector_store %arg23[%c160, %c0_205], %211 {strides = array<i32>} : memref<168x384xf32, #tpu.memory_space<vmem>>, vector<1x384xf32>,
    %c364_i32_206 = arith.constant 364 : i32
    %213 = tpu.dynamic_rotate %77 by %c364_i32_206 dim 1 : vector<1x384xf32>, i32 -> vector<1x384xf32>
    %c161 = arith.constant 161 : index
    %c0_207 = arith.constant 0 : index
    %214 = vector.load %arg23[%c161, %c0_207] : memref<168x384xf32, #tpu.memory_space<vmem>>, vector<1x384xf32>
    tpu.vector_store %arg23[%c161, %c0_207], %213 {strides = array<i32>} : memref<168x384xf32, #tpu.memory_space<vmem>>, vector<1x384xf32>,
    %cst_208 = arith.constant 0.000000e+00 : f32
    %215 = vector.broadcast %cst_208 : f32 to vector<6x384xf32>
    %c162 = arith.constant 162 : index
    %c0_209 = arith.constant 0 : index
    %216 = vector.load %arg23[%c162, %c0_209] : memref<168x384xf32, #tpu.memory_space<vmem>>, vector<6x384xf32>
    tpu.vector_store %arg23[%c162, %c0_209], %215 {strides = array<i32>} : memref<168x384xf32, #tpu.memory_space<vmem>>, vector<6x384xf32>,
    %c0_210 = arith.constant 0 : index
    %c0_211 = arith.constant 0 : index
    %217 = vector.load %arg14[%c0_210, %c0_211] : memref<16x168xf32, #tpu.memory_space<vmem>>, vector<16x168xf32>
    %c0_212 = arith.constant 0 : index
    %c0_213 = arith.constant 0 : index
    %218 = vector.load %arg23[%c0_212, %c0_213] : memref<168x384xf32, #tpu.memory_space<vmem>>, vector<168x384xf32>
    %cst_214 = arith.constant dense<0.000000e+00> : vector<16x384xf32>
    %219 = tpu.matmul %217, %218, %cst_214 {dimension_numbers = #tpu.dot_dimension_numbers<[1], [0], [0], [1], [0, 0, 1, 1], [], []>} : vector<16x168xf32>, vector<168x384xf32>, vector<16x384xf32> -> vector<16x384xf32>
    %c0_215 = arith.constant 0 : index
    %c0_216 = arith.constant 0 : index
    %220 = vector.load %arg15[%c0_215, %c0_216] : memref<16x1xf32, #tpu.memory_space<vmem>>, vector<16x1xf32>
    %221 = vector.broadcast %220 : vector<16x1xf32> to vector<16x384xf32>
    %222 = arith.addf %219, %221 : vector<16x384xf32>
    %cst_217 = arith.constant 0.00999999977 : f32
    %223 = vector.broadcast %cst_217 : f32 to vector<16x384xf32>
    %224 = arith.mulf %223, %222 : vector<16x384xf32>
    %225 = arith.maximumf %222, %224 : vector<16x384xf32>
    %226 = vector.broadcast %0 : vector<1x384xf32> to vector<16x384xf32>
    %227 = arith.mulf %225, %226 : vector<16x384xf32>
    %c20_i32_218 = arith.constant 20 : i32
    %228 = tpu.dynamic_rotate %227 by %c20_i32_218 dim 1 : vector<16x384xf32>, i32 -> vector<16x384xf32>
    %c0_219 = arith.constant 0 : index
    %c0_220 = arith.constant 0 : index
    %229 = vector.load %arg23[%c0_219, %c0_220] : memref<168x384xf32, #tpu.memory_space<vmem>>, vector<16x384xf32>
    tpu.vector_store %arg23[%c0_219, %c0_220], %228 {strides = array<i32>} : memref<168x384xf32, #tpu.memory_space<vmem>>, vector<16x384xf32>,
    %c1_i32_221 = arith.constant 1 : i32
    %230 = tpu.dynamic_rotate %227 by %c1_i32_221 dim 1 : vector<16x384xf32>, i32 -> vector<16x384xf32>
    %c16_222 = arith.constant 16 : index
    %c0_223 = arith.constant 0 : index
    %231 = vector.load %arg23[%c16_222, %c0_223] : memref<168x384xf32, #tpu.memory_space<vmem>>, vector<16x384xf32>
    tpu.vector_store %arg23[%c16_222, %c0_223], %230 {strides = array<i32>} : memref<168x384xf32, #tpu.memory_space<vmem>>, vector<16x384xf32>,
    %c366_i32_224 = arith.constant 366 : i32
    %232 = tpu.dynamic_rotate %227 by %c366_i32_224 dim 1 : vector<16x384xf32>, i32 -> vector<16x384xf32>
    %c32_225 = arith.constant 32 : index
    %c0_226 = arith.constant 0 : index
    %233 = vector.load %arg23[%c32_225, %c0_226] : memref<168x384xf32, #tpu.memory_space<vmem>>, vector<16x384xf32>
    tpu.vector_store %arg23[%c32_225, %c0_226], %232 {strides = array<i32>} : memref<168x384xf32, #tpu.memory_space<vmem>>, vector<16x384xf32>,
    %c19_i32_227 = arith.constant 19 : i32
    %234 = tpu.dynamic_rotate %227 by %c19_i32_227 dim 1 : vector<16x384xf32>, i32 -> vector<16x384xf32>
    %c48_228 = arith.constant 48 : index
    %c0_229 = arith.constant 0 : index
    %235 = vector.load %arg23[%c48_228, %c0_229] : memref<168x384xf32, #tpu.memory_space<vmem>>, vector<16x384xf32>
    tpu.vector_store %arg23[%c48_228, %c0_229], %234 {strides = array<i32>} : memref<168x384xf32, #tpu.memory_space<vmem>>, vector<16x384xf32>,
    %c64_230 = arith.constant 64 : index
    %c0_231 = arith.constant 0 : index
    %236 = vector.load %arg23[%c64_230, %c0_231] : memref<168x384xf32, #tpu.memory_space<vmem>>, vector<16x384xf32>
    tpu.vector_store %arg23[%c64_230, %c0_231], %227 {strides = array<i32>} : memref<168x384xf32, #tpu.memory_space<vmem>>, vector<16x384xf32>,
    %c365_i32_232 = arith.constant 365 : i32
    %237 = tpu.dynamic_rotate %227 by %c365_i32_232 dim 1 : vector<16x384xf32>, i32 -> vector<16x384xf32>
    %c80_233 = arith.constant 80 : index
    %c0_234 = arith.constant 0 : index
    %238 = vector.load %arg23[%c80_233, %c0_234] : memref<168x384xf32, #tpu.memory_space<vmem>>, vector<16x384xf32>
    tpu.vector_store %arg23[%c80_233, %c0_234], %237 {strides = array<i32>} : memref<168x384xf32, #tpu.memory_space<vmem>>, vector<16x384xf32>,
    %c18_i32_235 = arith.constant 18 : i32
    %239 = tpu.dynamic_rotate %227 by %c18_i32_235 dim 1 : vector<16x384xf32>, i32 -> vector<16x384xf32>
    %c96_236 = arith.constant 96 : index
    %c0_237 = arith.constant 0 : index
    %240 = vector.load %arg23[%c96_236, %c0_237] : memref<168x384xf32, #tpu.memory_space<vmem>>, vector<16x384xf32>
    tpu.vector_store %arg23[%c96_236, %c0_237], %239 {strides = array<i32>} : memref<168x384xf32, #tpu.memory_space<vmem>>, vector<16x384xf32>,
    %c383_i32_238 = arith.constant 383 : i32
    %241 = tpu.dynamic_rotate %227 by %c383_i32_238 dim 1 : vector<16x384xf32>, i32 -> vector<16x384xf32>
    %c112_239 = arith.constant 112 : index
    %c0_240 = arith.constant 0 : index
    %242 = vector.load %arg23[%c112_239, %c0_240] : memref<168x384xf32, #tpu.memory_space<vmem>>, vector<16x384xf32>
    tpu.vector_store %arg23[%c112_239, %c0_240], %241 {strides = array<i32>} : memref<168x384xf32, #tpu.memory_space<vmem>>, vector<16x384xf32>,
    %c364_i32_241 = arith.constant 364 : i32
    %243 = tpu.dynamic_rotate %227 by %c364_i32_241 dim 1 : vector<16x384xf32>, i32 -> vector<16x384xf32>
    %c128_242 = arith.constant 128 : index
    %c0_243 = arith.constant 0 : index
    %244 = vector.load %arg23[%c128_242, %c0_243] : memref<168x384xf32, #tpu.memory_space<vmem>>, vector<16x384xf32>
    tpu.vector_store %arg23[%c128_242, %c0_243], %243 {strides = array<i32>} : memref<168x384xf32, #tpu.memory_space<vmem>>, vector<16x384xf32>,
    %c0_244 = arith.constant 0 : index
    %c0_245 = arith.constant 0 : index
    %245 = vector.load %arg16[%c0_244, %c0_245] : memref<16x144xf32, #tpu.memory_space<vmem>>, vector<16x144xf32>
    %c0_246 = arith.constant 0 : index
    %c0_247 = arith.constant 0 : index
    %246 = vector.load %arg23[%c0_246, %c0_247] : memref<168x384xf32, #tpu.memory_space<vmem>>, vector<144x384xf32>
    %cst_248 = arith.constant dense<0.000000e+00> : vector<16x384xf32>
    %247 = tpu.matmul %245, %246, %cst_248 {dimension_numbers = #tpu.dot_dimension_numbers<[1], [0], [0], [1], [0, 0, 1, 1], [], []>} : vector<16x144xf32>, vector<144x384xf32>, vector<16x384xf32> -> vector<16x384xf32>
    %c0_249 = arith.constant 0 : index
    %c0_250 = arith.constant 0 : index
    %248 = vector.load %arg17[%c0_249, %c0_250] : memref<16x1xf32, #tpu.memory_space<vmem>>, vector<16x1xf32>
    %249 = vector.broadcast %248 : vector<16x1xf32> to vector<16x384xf32>
    %250 = arith.addf %247, %249 : vector<16x384xf32>
    %cst_251 = arith.constant 0.00999999977 : f32
    %251 = vector.broadcast %cst_251 : f32 to vector<16x384xf32>
    %252 = arith.mulf %251, %250 : vector<16x384xf32>
    %253 = arith.maximumf %250, %252 : vector<16x384xf32>
    %254 = vector.broadcast %0 : vector<1x384xf32> to vector<16x384xf32>
    %255 = arith.mulf %253, %254 : vector<16x384xf32>
    %c20_i32_252 = arith.constant 20 : i32
    %256 = tpu.dynamic_rotate %255 by %c20_i32_252 dim 1 : vector<16x384xf32>, i32 -> vector<16x384xf32>
    %c0_253 = arith.constant 0 : index
    %c0_254 = arith.constant 0 : index
    %257 = vector.load %arg23[%c0_253, %c0_254] : memref<168x384xf32, #tpu.memory_space<vmem>>, vector<16x384xf32>
    tpu.vector_store %arg23[%c0_253, %c0_254], %256 {strides = array<i32>} : memref<168x384xf32, #tpu.memory_space<vmem>>, vector<16x384xf32>,
    %c1_i32_255 = arith.constant 1 : i32
    %258 = tpu.dynamic_rotate %255 by %c1_i32_255 dim 1 : vector<16x384xf32>, i32 -> vector<16x384xf32>
    %c16_256 = arith.constant 16 : index
    %c0_257 = arith.constant 0 : index
    %259 = vector.load %arg23[%c16_256, %c0_257] : memref<168x384xf32, #tpu.memory_space<vmem>>, vector<16x384xf32>
    tpu.vector_store %arg23[%c16_256, %c0_257], %258 {strides = array<i32>} : memref<168x384xf32, #tpu.memory_space<vmem>>, vector<16x384xf32>,
    %c366_i32_258 = arith.constant 366 : i32
    %260 = tpu.dynamic_rotate %255 by %c366_i32_258 dim 1 : vector<16x384xf32>, i32 -> vector<16x384xf32>
    %c32_259 = arith.constant 32 : index
    %c0_260 = arith.constant 0 : index
    %261 = vector.load %arg23[%c32_259, %c0_260] : memref<168x384xf32, #tpu.memory_space<vmem>>, vector<16x384xf32>
    tpu.vector_store %arg23[%c32_259, %c0_260], %260 {strides = array<i32>} : memref<168x384xf32, #tpu.memory_space<vmem>>, vector<16x384xf32>,
    %c19_i32_261 = arith.constant 19 : i32
    %262 = tpu.dynamic_rotate %255 by %c19_i32_261 dim 1 : vector<16x384xf32>, i32 -> vector<16x384xf32>
    %c48_262 = arith.constant 48 : index
    %c0_263 = arith.constant 0 : index
    %263 = vector.load %arg23[%c48_262, %c0_263] : memref<168x384xf32, #tpu.memory_space<vmem>>, vector<16x384xf32>
    tpu.vector_store %arg23[%c48_262, %c0_263], %262 {strides = array<i32>} : memref<168x384xf32, #tpu.memory_space<vmem>>, vector<16x384xf32>,
    %c64_264 = arith.constant 64 : index
    %c0_265 = arith.constant 0 : index
    %264 = vector.load %arg23[%c64_264, %c0_265] : memref<168x384xf32, #tpu.memory_space<vmem>>, vector<16x384xf32>
    tpu.vector_store %arg23[%c64_264, %c0_265], %255 {strides = array<i32>} : memref<168x384xf32, #tpu.memory_space<vmem>>, vector<16x384xf32>,
    %c365_i32_266 = arith.constant 365 : i32
    %265 = tpu.dynamic_rotate %255 by %c365_i32_266 dim 1 : vector<16x384xf32>, i32 -> vector<16x384xf32>
    %c80_267 = arith.constant 80 : index
    %c0_268 = arith.constant 0 : index
    %266 = vector.load %arg23[%c80_267, %c0_268] : memref<168x384xf32, #tpu.memory_space<vmem>>, vector<16x384xf32>
    tpu.vector_store %arg23[%c80_267, %c0_268], %265 {strides = array<i32>} : memref<168x384xf32, #tpu.memory_space<vmem>>, vector<16x384xf32>,
    %c18_i32_269 = arith.constant 18 : i32
    %267 = tpu.dynamic_rotate %255 by %c18_i32_269 dim 1 : vector<16x384xf32>, i32 -> vector<16x384xf32>
    %c96_270 = arith.constant 96 : index
    %c0_271 = arith.constant 0 : index
    %268 = vector.load %arg23[%c96_270, %c0_271] : memref<168x384xf32, #tpu.memory_space<vmem>>, vector<16x384xf32>
    tpu.vector_store %arg23[%c96_270, %c0_271], %267 {strides = array<i32>} : memref<168x384xf32, #tpu.memory_space<vmem>>, vector<16x384xf32>,
    %c383_i32_272 = arith.constant 383 : i32
    %269 = tpu.dynamic_rotate %255 by %c383_i32_272 dim 1 : vector<16x384xf32>, i32 -> vector<16x384xf32>
    %c112_273 = arith.constant 112 : index
    %c0_274 = arith.constant 0 : index
    %270 = vector.load %arg23[%c112_273, %c0_274] : memref<168x384xf32, #tpu.memory_space<vmem>>, vector<16x384xf32>
    tpu.vector_store %arg23[%c112_273, %c0_274], %269 {strides = array<i32>} : memref<168x384xf32, #tpu.memory_space<vmem>>, vector<16x384xf32>,
    %c364_i32_275 = arith.constant 364 : i32
    %271 = tpu.dynamic_rotate %255 by %c364_i32_275 dim 1 : vector<16x384xf32>, i32 -> vector<16x384xf32>
    %c128_276 = arith.constant 128 : index
    %c0_277 = arith.constant 0 : index
    %272 = vector.load %arg23[%c128_276, %c0_277] : memref<168x384xf32, #tpu.memory_space<vmem>>, vector<16x384xf32>
    tpu.vector_store %arg23[%c128_276, %c0_277], %271 {strides = array<i32>} : memref<168x384xf32, #tpu.memory_space<vmem>>, vector<16x384xf32>,
    %c0_278 = arith.constant 0 : index
    %c0_279 = arith.constant 0 : index
    %273 = vector.load %arg18[%c0_278, %c0_279] : memref<1x144xf32, #tpu.memory_space<vmem>>, vector<1x144xf32>
    %c0_280 = arith.constant 0 : index
    %c0_281 = arith.constant 0 : index
    %274 = vector.load %arg23[%c0_280, %c0_281] : memref<168x384xf32, #tpu.memory_space<vmem>>, vector<144x384xf32>
    %cst_282 = arith.constant dense<0.000000e+00> : vector<1x384xf32>
    %275 = tpu.matmul %273, %274, %cst_282 {dimension_numbers = #tpu.dot_dimension_numbers<[1], [0], [0], [1], [0, 0, 1, 1], [], []>} : vector<1x144xf32>, vector<144x384xf32>, vector<1x384xf32> -> vector<1x384xf32>
    %c0_283 = arith.constant 0 : index
    %c0_284 = arith.constant 0 : index
    %276 = vector.load %arg19[%c0_283, %c0_284] : memref<1x1xf32, #tpu.memory_space<vmem>>, vector<1x1xf32>
    %277 = vector.broadcast %276 : vector<1x1xf32> to vector<1x384xf32>
    %278 = arith.addf %275, %277 : vector<1x384xf32>
    %279 = arith.mulf %278, %0 : vector<1x384xf32>
    %c0_285 = arith.constant 0 : index
    %c0_286 = arith.constant 0 : index
    %c0_287 = arith.constant 0 : index
    %280 = vector.load %arg20[%c0_285, %c0_286, %c0_287] : memref<1x1x384xf32, #tpu.memory_space<vmem>>, vector<1x1x384xf32>
    %281 = vector.shape_cast %280 : vector<1x1x384xf32> to vector<1x384xf32>
    %282 = vector.shape_cast %279 : vector<1x384xf32> to vector<1x1x384xf32>
    tpu.vector_store %arg20[%c0_285, %c0_286, %c0_287], %282 {strides = array<i32>} : memref<1x1x384xf32, #tpu.memory_space<vmem>>, vector<1x1x384xf32>,
    %c0_288 = arith.constant 0 : index
    %c0_289 = arith.constant 0 : index
    %283 = vector.load %arg22[%c0_288, %c0_289] : memref<2x384xf32, #tpu.memory_space<vmem>>, vector<1x384xf32>
    tpu.vector_store %arg22[%c0_288, %c0_289], %279 {strides = array<i32>} : memref<2x384xf32, #tpu.memory_space<vmem>>, vector<1x384xf32>,
    %c0_290 = arith.constant 0 : index
    %c20_291 = arith.constant 20 : index
    %284 = vector.load %arg22[%c0_290, %c20_291] : memref<2x384xf32, #tpu.memory_space<vmem>>, vector<1x17xf32>
    %c0_292 = arith.constant 0 : index
    %c0_293 = arith.constant 0 : index
    %285 = vector.load %arg24[%c0_292, %c0_293] : memref<17x17xf32, #tpu.memory_space<vmem>>, vector<1x17xf32>
    tpu.vector_store %arg24[%c0_292, %c0_293], %284 {strides = array<i32>} : memref<17x17xf32, #tpu.memory_space<vmem>>, vector<1x17xf32>,
    %c0_294 = arith.constant 0 : index
    %c39_295 = arith.constant 39 : index
    %286 = vector.load %arg22[%c0_294, %c39_295] : memref<2x384xf32, #tpu.memory_space<vmem>>, vector<1x17xf32>
    %c1_296 = arith.constant 1 : index
    %c0_297 = arith.constant 0 : index
    %287 = vector.load %arg24[%c1_296, %c0_297] : memref<17x17xf32, #tpu.memory_space<vmem>>, vector<1x17xf32>
    tpu.vector_store %arg24[%c1_296, %c0_297], %286 {strides = array<i32>} : memref<17x17xf32, #tpu.memory_space<vmem>>, vector<1x17xf32>,
    %c0_298 = arith.constant 0 : index
    %c58_299 = arith.constant 58 : index
    %288 = vector.load %arg22[%c0_298, %c58_299] : memref<2x384xf32, #tpu.memory_space<vmem>>, vector<1x17xf32>
    %c2_300 = arith.constant 2 : index
    %c0_301 = arith.constant 0 : index
    %289 = vector.load %arg24[%c2_300, %c0_301] : memref<17x17xf32, #tpu.memory_space<vmem>>, vector<1x17xf32>
    tpu.vector_store %arg24[%c2_300, %c0_301], %288 {strides = array<i32>} : memref<17x17xf32, #tpu.memory_space<vmem>>, vector<1x17xf32>,
    %c0_302 = arith.constant 0 : index
    %c77_303 = arith.constant 77 : index
    %290 = vector.load %arg22[%c0_302, %c77_303] : memref<2x384xf32, #tpu.memory_space<vmem>>, vector<1x17xf32>
    %c3_304 = arith.constant 3 : index
    %c0_305 = arith.constant 0 : index
    %291 = vector.load %arg24[%c3_304, %c0_305] : memref<17x17xf32, #tpu.memory_space<vmem>>, vector<1x17xf32>
    tpu.vector_store %arg24[%c3_304, %c0_305], %290 {strides = array<i32>} : memref<17x17xf32, #tpu.memory_space<vmem>>, vector<1x17xf32>,
    %c0_306 = arith.constant 0 : index
    %c96_307 = arith.constant 96 : index
    %292 = vector.load %arg22[%c0_306, %c96_307] : memref<2x384xf32, #tpu.memory_space<vmem>>, vector<1x17xf32>
    %c4_308 = arith.constant 4 : index
    %c0_309 = arith.constant 0 : index
    %293 = vector.load %arg24[%c4_308, %c0_309] : memref<17x17xf32, #tpu.memory_space<vmem>>, vector<1x17xf32>
    tpu.vector_store %arg24[%c4_308, %c0_309], %292 {strides = array<i32>} : memref<17x17xf32, #tpu.memory_space<vmem>>, vector<1x17xf32>,
    %c0_310 = arith.constant 0 : index
    %c115_311 = arith.constant 115 : index
    %294 = vector.load %arg22[%c0_310, %c115_311] : memref<2x384xf32, #tpu.memory_space<vmem>>, vector<1x17xf32>
    %c5_312 = arith.constant 5 : index
    %c0_313 = arith.constant 0 : index
    %295 = vector.load %arg24[%c5_312, %c0_313] : memref<17x17xf32, #tpu.memory_space<vmem>>, vector<1x17xf32>
    tpu.vector_store %arg24[%c5_312, %c0_313], %294 {strides = array<i32>} : memref<17x17xf32, #tpu.memory_space<vmem>>, vector<1x17xf32>,
    %c0_314 = arith.constant 0 : index
    %c134_315 = arith.constant 134 : index
    %296 = vector.load %arg22[%c0_314, %c134_315] : memref<2x384xf32, #tpu.memory_space<vmem>>, vector<1x17xf32>
    %c6_316 = arith.constant 6 : index
    %c0_317 = arith.constant 0 : index
    %297 = vector.load %arg24[%c6_316, %c0_317] : memref<17x17xf32, #tpu.memory_space<vmem>>, vector<1x17xf32>
    tpu.vector_store %arg24[%c6_316, %c0_317], %296 {strides = array<i32>} : memref<17x17xf32, #tpu.memory_space<vmem>>, vector<1x17xf32>,
    %c0_318 = arith.constant 0 : index
    %c153_319 = arith.constant 153 : index
    %298 = vector.load %arg22[%c0_318, %c153_319] : memref<2x384xf32, #tpu.memory_space<vmem>>, vector<1x17xf32>
    %c7_320 = arith.constant 7 : index
    %c0_321 = arith.constant 0 : index
    %299 = vector.load %arg24[%c7_320, %c0_321] : memref<17x17xf32, #tpu.memory_space<vmem>>, vector<1x17xf32>
    tpu.vector_store %arg24[%c7_320, %c0_321], %298 {strides = array<i32>} : memref<17x17xf32, #tpu.memory_space<vmem>>, vector<1x17xf32>,
    %c0_322 = arith.constant 0 : index
    %c172_323 = arith.constant 172 : index
    %300 = vector.load %arg22[%c0_322, %c172_323] : memref<2x384xf32, #tpu.memory_space<vmem>>, vector<1x17xf32>
    %c8_324 = arith.constant 8 : index
    %c0_325 = arith.constant 0 : index
    %301 = vector.load %arg24[%c8_324, %c0_325] : memref<17x17xf32, #tpu.memory_space<vmem>>, vector<1x17xf32>
    tpu.vector_store %arg24[%c8_324, %c0_325], %300 {strides = array<i32>} : memref<17x17xf32, #tpu.memory_space<vmem>>, vector<1x17xf32>,
    %c0_326 = arith.constant 0 : index
    %c191_327 = arith.constant 191 : index
    %302 = vector.load %arg22[%c0_326, %c191_327] : memref<2x384xf32, #tpu.memory_space<vmem>>, vector<1x17xf32>
    %c9_328 = arith.constant 9 : index
    %c0_329 = arith.constant 0 : index
    %303 = vector.load %arg24[%c9_328, %c0_329] : memref<17x17xf32, #tpu.memory_space<vmem>>, vector<1x17xf32>
    tpu.vector_store %arg24[%c9_328, %c0_329], %302 {strides = array<i32>} : memref<17x17xf32, #tpu.memory_space<vmem>>, vector<1x17xf32>,
    %c0_330 = arith.constant 0 : index
    %c210_331 = arith.constant 210 : index
    %304 = vector.load %arg22[%c0_330, %c210_331] : memref<2x384xf32, #tpu.memory_space<vmem>>, vector<1x17xf32>
    %c10 = arith.constant 10 : index
    %c0_332 = arith.constant 0 : index
    %305 = vector.load %arg24[%c10, %c0_332] : memref<17x17xf32, #tpu.memory_space<vmem>>, vector<1x17xf32>
    tpu.vector_store %arg24[%c10, %c0_332], %304 {strides = array<i32>} : memref<17x17xf32, #tpu.memory_space<vmem>>, vector<1x17xf32>,
    %c0_333 = arith.constant 0 : index
    %c229_334 = arith.constant 229 : index
    %306 = vector.load %arg22[%c0_333, %c229_334] : memref<2x384xf32, #tpu.memory_space<vmem>>, vector<1x17xf32>
    %c11 = arith.constant 11 : index
    %c0_335 = arith.constant 0 : index
    %307 = vector.load %arg24[%c11, %c0_335] : memref<17x17xf32, #tpu.memory_space<vmem>>, vector<1x17xf32>
    tpu.vector_store %arg24[%c11, %c0_335], %306 {strides = array<i32>} : memref<17x17xf32, #tpu.memory_space<vmem>>, vector<1x17xf32>,
    %c0_336 = arith.constant 0 : index
    %c248_337 = arith.constant 248 : index
    %308 = vector.load %arg22[%c0_336, %c248_337] : memref<2x384xf32, #tpu.memory_space<vmem>>, vector<1x17xf32>
    %c12 = arith.constant 12 : index
    %c0_338 = arith.constant 0 : index
    %309 = vector.load %arg24[%c12, %c0_338] : memref<17x17xf32, #tpu.memory_space<vmem>>, vector<1x17xf32>
    tpu.vector_store %arg24[%c12, %c0_338], %308 {strides = array<i32>} : memref<17x17xf32, #tpu.memory_space<vmem>>, vector<1x17xf32>,
    %c0_339 = arith.constant 0 : index
    %c267_340 = arith.constant 267 : index
    %310 = vector.load %arg22[%c0_339, %c267_340] : memref<2x384xf32, #tpu.memory_space<vmem>>, vector<1x17xf32>
    %c13 = arith.constant 13 : index
    %c0_341 = arith.constant 0 : index
    %311 = vector.load %arg24[%c13, %c0_341] : memref<17x17xf32, #tpu.memory_space<vmem>>, vector<1x17xf32>
    tpu.vector_store %arg24[%c13, %c0_341], %310 {strides = array<i32>} : memref<17x17xf32, #tpu.memory_space<vmem>>, vector<1x17xf32>,
    %c0_342 = arith.constant 0 : index
    %c286_343 = arith.constant 286 : index
    %312 = vector.load %arg22[%c0_342, %c286_343] : memref<2x384xf32, #tpu.memory_space<vmem>>, vector<1x17xf32>
    %c14 = arith.constant 14 : index
    %c0_344 = arith.constant 0 : index
    %313 = vector.load %arg24[%c14, %c0_344] : memref<17x17xf32, #tpu.memory_space<vmem>>, vector<1x17xf32>
    tpu.vector_store %arg24[%c14, %c0_344], %312 {strides = array<i32>} : memref<17x17xf32, #tpu.memory_space<vmem>>, vector<1x17xf32>,
    %c0_345 = arith.constant 0 : index
    %c305_346 = arith.constant 305 : index
    %314 = vector.load %arg22[%c0_345, %c305_346] : memref<2x384xf32, #tpu.memory_space<vmem>>, vector<1x17xf32>
    %c15 = arith.constant 15 : index
    %c0_347 = arith.constant 0 : index
    %315 = vector.load %arg24[%c15, %c0_347] : memref<17x17xf32, #tpu.memory_space<vmem>>, vector<1x17xf32>
    tpu.vector_store %arg24[%c15, %c0_347], %314 {strides = array<i32>} : memref<17x17xf32, #tpu.memory_space<vmem>>, vector<1x17xf32>,
    %c0_348 = arith.constant 0 : index
    %c324_349 = arith.constant 324 : index
    %316 = vector.load %arg22[%c0_348, %c324_349] : memref<2x384xf32, #tpu.memory_space<vmem>>, vector<1x17xf32>
    %c16_350 = arith.constant 16 : index
    %c0_351 = arith.constant 0 : index
    %317 = vector.load %arg24[%c16_350, %c0_351] : memref<17x17xf32, #tpu.memory_space<vmem>>, vector<1x17xf32>
    tpu.vector_store %arg24[%c16_350, %c0_351], %316 {strides = array<i32>} : memref<17x17xf32, #tpu.memory_space<vmem>>, vector<1x17xf32>,
    %c0_352 = arith.constant 0 : index
    %c0_353 = arith.constant 0 : index
    %318 = vector.load %arg24[%c0_352, %c0_353] : memref<17x17xf32, #tpu.memory_space<vmem>>, vector<17x17xf32>
    %319 = arith.mulf %318, %12 : vector<17x17xf32>
    %320 = arith.mulf %5, %319 : vector<17x17xf32>
    %321 = arith.mulf %6, %319 : vector<17x17xf32>
    %c0_i32 = arith.constant 0 : i32
    %322 = arith.sitofp %c0_i32 : i32 to f32
    %323 = vector.broadcast %322 : f32 to vector<17x111xf32>
    %324 = tpu.concatenate %320, %323 in 1 : vector<17x17xf32>, vector<17x111xf32> -> vector<17x128xf32>
    %325 = tpu.concatenate %324, %321 in 1 : vector<17x128xf32>, vector<17x17xf32> -> vector<17x145xf32>
    %c0_354 = arith.constant 0 : index
    %c0_355 = arith.constant 0 : index
    %326 = vector.load %arg4[%c0_354, %c0_355] : memref<145x32xf32, #tpu.memory_space<vmem>>, vector<145x32xf32>
    %cst_356 = arith.constant dense<0.000000e+00> : vector<17x32xf32>
    %327 = tpu.matmul %325, %326, %cst_356 {dimension_numbers = #tpu.dot_dimension_numbers<[1], [0], [0], [1], [0, 0, 1, 1], [], []>} : vector<17x145xf32>, vector<145x32xf32>, vector<17x32xf32> -> vector<17x32xf32>
    %c0_357 = arith.constant 0 : index
    %c0_358 = arith.constant 0 : index
    %c0_359 = arith.constant 0 : index
    %328 = vector.load %arg21[%c0_357, %c0_358, %c0_359] : memref<1x17x32xf32, #tpu.memory_space<vmem>>, vector<1x17x32xf32>
    %329 = vector.shape_cast %328 : vector<1x17x32xf32> to vector<17x32xf32>
    %330 = vector.shape_cast %327 : vector<17x32xf32> to vector<1x17x32xf32>
    tpu.vector_store %arg21[%c0_357, %c0_358, %c0_359], %330 {strides = array<i32>} : memref<1x17x32xf32, #tpu.memory_space<vmem>>, vector<1x17x32xf32>,
    return
  }
  func.func @transform_0(%arg0: i32) -> (i32, i32, i32) {
    %c0_i32 = arith.constant 0 : i32
    %c0_i32_0 = arith.constant 0 : i32
    %c0_i32_1 = arith.constant 0 : i32
    return %arg0, %c0_i32, %c0_i32_0 : i32, i32, i32
  }
  func.func @transform_1(%arg0: i32) -> (i32, i32, i32) {
    %c0_i32 = arith.constant 0 : i32
    %c0_i32_0 = arith.constant 0 : i32
    %c0_i32_1 = arith.constant 0 : i32
    return %arg0, %c0_i32, %c0_i32_0 : i32, i32, i32
  }
  func.func @transform_2(%arg0: i32) -> (i32, i32) {
    %c0_i32 = arith.constant 0 : i32
    %c0_i32_0 = arith.constant 0 : i32
    %c0_i32_1 = arith.constant 0 : i32
    return %c0_i32, %c0_i32_0 : i32, i32
  }
  func.func @transform_3(%arg0: i32) -> (i32, i32) {
    %c0_i32 = arith.constant 0 : i32
    %c0_i32_0 = arith.constant 0 : i32
    %c0_i32_1 = arith.constant 0 : i32
    return %c0_i32, %c0_i32_0 : i32, i32
  }
  func.func @transform_4(%arg0: i32) -> (i32, i32) {
    %c0_i32 = arith.constant 0 : i32
    %c0_i32_0 = arith.constant 0 : i32
    %c0_i32_1 = arith.constant 0 : i32
    return %c0_i32, %c0_i32_0 : i32, i32
  }
  func.func @transform_5(%arg0: i32) -> (i32, i32) {
    %c0_i32 = arith.constant 0 : i32
    %c0_i32_0 = arith.constant 0 : i32
    %c0_i32_1 = arith.constant 0 : i32
    return %c0_i32, %c0_i32_0 : i32, i32
  }
  func.func @transform_6(%arg0: i32) -> (i32, i32) {
    %c0_i32 = arith.constant 0 : i32
    %c0_i32_0 = arith.constant 0 : i32
    %c0_i32_1 = arith.constant 0 : i32
    return %c0_i32, %c0_i32_0 : i32, i32
  }
  func.func @transform_7(%arg0: i32) -> (i32, i32) {
    %c0_i32 = arith.constant 0 : i32
    %c0_i32_0 = arith.constant 0 : i32
    %c0_i32_1 = arith.constant 0 : i32
    return %c0_i32, %c0_i32_0 : i32, i32
  }
  func.func @transform_8(%arg0: i32) -> (i32, i32) {
    %c0_i32 = arith.constant 0 : i32
    %c0_i32_0 = arith.constant 0 : i32
    %c0_i32_1 = arith.constant 0 : i32
    return %c0_i32, %c0_i32_0 : i32, i32
  }
  func.func @transform_9(%arg0: i32) -> (i32, i32) {
    %c0_i32 = arith.constant 0 : i32
    %c0_i32_0 = arith.constant 0 : i32
    %c0_i32_1 = arith.constant 0 : i32
    return %c0_i32, %c0_i32_0 : i32, i32
  }
  func.func @transform_10(%arg0: i32) -> (i32, i32) {
    %c0_i32 = arith.constant 0 : i32
    %c0_i32_0 = arith.constant 0 : i32
    %c0_i32_1 = arith.constant 0 : i32
    return %c0_i32, %c0_i32_0 : i32, i32
  }
  func.func @transform_11(%arg0: i32) -> (i32, i32) {
    %c0_i32 = arith.constant 0 : i32
    %c0_i32_0 = arith.constant 0 : i32
    %c0_i32_1 = arith.constant 0 : i32
    return %c0_i32, %c0_i32_0 : i32, i32
  }
  func.func @transform_12(%arg0: i32) -> (i32, i32) {
    %c0_i32 = arith.constant 0 : i32
    %c0_i32_0 = arith.constant 0 : i32
    %c0_i32_1 = arith.constant 0 : i32
    return %c0_i32, %c0_i32_0 : i32, i32
  }
  func.func @transform_13(%arg0: i32) -> (i32, i32) {
    %c0_i32 = arith.constant 0 : i32
    %c0_i32_0 = arith.constant 0 : i32
    %c0_i32_1 = arith.constant 0 : i32
    return %c0_i32, %c0_i32_0 : i32, i32
  }
  func.func @transform_14(%arg0: i32) -> (i32, i32) {
    %c0_i32 = arith.constant 0 : i32
    %c0_i32_0 = arith.constant 0 : i32
    %c0_i32_1 = arith.constant 0 : i32
    return %c0_i32, %c0_i32_0 : i32, i32
  }
  func.func @transform_15(%arg0: i32) -> (i32, i32) {
    %c0_i32 = arith.constant 0 : i32
    %c0_i32_0 = arith.constant 0 : i32
    %c0_i32_1 = arith.constant 0 : i32
    return %c0_i32, %c0_i32_0 : i32, i32
  }
  func.func @transform_16(%arg0: i32) -> (i32, i32) {
    %c0_i32 = arith.constant 0 : i32
    %c0_i32_0 = arith.constant 0 : i32
    %c0_i32_1 = arith.constant 0 : i32
    return %c0_i32, %c0_i32_0 : i32, i32
  }
  func.func @transform_17(%arg0: i32) -> (i32, i32) {
    %c0_i32 = arith.constant 0 : i32
    %c0_i32_0 = arith.constant 0 : i32
    %c0_i32_1 = arith.constant 0 : i32
    return %c0_i32, %c0_i32_0 : i32, i32
  }
  func.func @transform_18(%arg0: i32) -> (i32, i32) {
    %c0_i32 = arith.constant 0 : i32
    %c0_i32_0 = arith.constant 0 : i32
    %c0_i32_1 = arith.constant 0 : i32
    return %c0_i32, %c0_i32_0 : i32, i32
  }
  func.func @transform_19(%arg0: i32) -> (i32, i32, i32) {
    %c0_i32 = arith.constant 0 : i32
    %c0_i32_0 = arith.constant 0 : i32
    %c0_i32_1 = arith.constant 0 : i32
    return %arg0, %c0_i32, %c0_i32_0 : i32, i32, i32
  }
  func.func @transform_20(%arg0: i32) -> (i32, i32, i32) {
    %c0_i32 = arith.constant 0 : i32
    %c0_i32_0 = arith.constant 0 : i32
    %c0_i32_1 = arith.constant 0 : i32
    return %arg0, %c0_i32, %c0_i32_0 : i32, i32, i32
  }
}

</mosaic_0001>

<bundles_post_ra>
// kernel: squeeze.3
= control target key start
LH: loop header
LB: loop body
LE: loop exit
PB: predicated region body
PF: predicated region fallthrough
CT: control target
= control target key end

     0   :  { %vm17_vm0 = vcmask 154624   ;;  %vm139_vm1 = vcmask 932864   ;;  %s150_s12 = smov 3  ;;  %s153_s13 = smov 3  ;;  %vm155_vm2 = vcmask 973824   ;;  %vm143_vm3 = vcmask 113664   ;;  %s323_s0 = inlined_call_operand.vmem [shape: f32[2,361], index: 0, kind: input, shape index: {}]   ;;  %s324_s1 = inlined_call_operand.vmem [shape: f32[2,19,19], index: 1, kind: output, shape index: {}]  }
   0x1   :  { %v14_v0 = vld [vmem:[%s323_s0] sm:$0x3]  ;;  %v167_v1 = vld [vmem:[%s323_s0 + $0x2] sm:$0x3]  ;;  %v166_v2 = vld [vmem:[%s323_s0 + $0x4] sm:$0x3] }
   0x2   :  { %15 = vst [vmem:[#allocation0] sm:$0x3] %v14_v0  ;;  %13 = vst [vmem:[#allocation0 + $0x8] sm:$0x3] %v167_v1  ;;  %s27_s0 = smov 3  ;;  %s206_s14 = smov 109  }
   0x3   :  { %9 = vst [vmem:[#allocation0 + $0x10] sm:$0x3] %v166_v2  ;;  %s207_s17 = smov 123   ;;  %s41_s18 = smov 3  ;;  %vm146_vm4 = vcmask 154736   ;;  %vm159_vm5 = vcmask 72704  }
   0x4   :  { %s208_s19 = smov 14   ;;  %s209_s20 = smov 118   ;;  %vm162_vm6 = vcmask 154696  }
   0x5   :  { %s49_s21 = smov 3  ;;  %s210_s22 = smov 9  }
   0x6   :  { %s211_s23 = smov 104   ;;  %s63_s24 = smov 3 }
   0x7   :  { %s71_s25 = smov 3  ;;  %s212_s26 = smov 99  }
   0x8   :  { %s213_s27 = smov 90   ;;  %s85_s28 = smov 3 }
   0x9   :  { %v34_v3 = vld [vmem:[#allocation0] sm:$0x3]   ;;  %v20_v5 = vld [vmem:[#allocation0 + $0x8] sm:$0x3]   ;;  %s214_s29 = smov 85   ;;  %s215_s30 = smov 80  }
   0xa   :  { %v16_v4 = vld [vmem:[#allocation0] sm:$0x3]   ;;  %35 = vrot.lane.b32.xlu0 %v34_v3, %s206_s14  ;;  %21 = vrot.lane.b32.xlu1 %v20_v5, %s207_s17  ;;  %v138_v7 = vld [vmem:[#allocation0 + $0x8] sm:$0x3]   ;;  %v28_v9 = vld [vmem:[#allocation0 + $0x11] ss:$-1 sm:%s27_s0]  }
   0xb   :  { %18 = vst.msk [vmem:[%s324_s1] ss:$24 sm:$0x3] %vm17_vm0, %v16_v4   ;;  %v136_v6 = vld [vmem:[#allocation0] sm:$0x3]   ;;  %s93_s2 = smov 3 }
   0xc   :  { %v140_v8 = vsel %vm139_vm1, %v138_v7, %v136_v6  ;;  %v151_v10 = vld [vmem:[#allocation0 + $0x9] ss:$-1 sm:%s150_s12]   ;;  %v154_v11 = vld [vmem:[#allocation0 + $0x11] ss:$-1 sm:%s153_s13]   ;;  %v56_v15 = vld [vmem:[#allocation0] sm:$0x3]  }
   0xd   :  { %v156_v12 = vsel %vm155_vm2, %v154_v11, %v151_v10  ;;  %v42_v13 = vld [vmem:[#allocation0 + $0x9] ss:$-1 sm:%s41_s18]   ;;  %v50_v14 = vld [vmem:[#allocation0 + $0x11] ss:$-1 sm:%s49_s21]   ;;  %v78_v18 = vld [vmem:[#allocation0] sm:$0x3]  }
   0xe   :  { %141 = vrot.lane.b32.xlu0 %v140_v8, %s208_s19  ;;  %29 = vrot.lane.b32.xlu1 %v28_v9, %s209_s20  ;;  %v64_v16 = vld [vmem:[#allocation0 + $0x9] ss:$-1 sm:%s63_s24]   ;;  %v72_v17 = vld [vmem:[#allocation0 + $0x11] ss:$-1 sm:%s71_s25]   ;;  %s216_s3 = smov 71   ;;  %s217_s4 = smov 66  }
   0xf   :  { %v86_v19 = vld [vmem:[#allocation0 + $0x9] ss:$-1 sm:%s85_s28]   ;;  %v94_v20 = vld [vmem:[#allocation0 + $0x11] ss:$-1 sm:%s93_s2]   ;;  %v100_v21 = vld [vmem:[#allocation0] sm:$0x3]  }
  0x10   :  { %s107_s5 = smov 3  ;;  %s115_s6 = smov 3  ;;  %v122_v24 = vld [vmem:[#allocation0] sm:$0x3]  }
  0x11   :  { %s218_s7 = smov 61   ;;  %s219_s8 = smov 52   ;;  %v108_v22 = vld [vmem:[#allocation0 + $0x9] ss:$-1 sm:%s107_s5]   ;;  %v116_v23 = vld [vmem:[#allocation0 + $0x11] ss:$-1 sm:%s115_s6]  }
  0x12   :  { %157 = vrot.lane.b32.xlu0 %v156_v12, %s210_s22  ;;  %43 = vrot.lane.b32.xlu1 %v42_v13, %s211_s23  ;;  %s129_s9 = smov 3  ;;  %s220_s10 = smov 47  }
  0x13   :  { %s221_s11 = smov 42   ;;  %v130_v25 = vld [vmem:[#allocation0 + $0x9] ss:$-1 sm:%s129_s9]   ;;  %s222_s0 = smov 33  }
  0x14   :  { %s223_s12 = smov 28  }
  0x16   :  { %51 = vrot.lane.b32.xlu0 %v50_v14, %s212_s26  ;;  %57 = vrot.lane.b32.xlu1 %v56_v15, %s213_s27 }
  0x1a   :  { %65 = vrot.lane.b32.xlu0 %v64_v16, %s214_s29  ;;  %73 = vrot.lane.b32.xlu1 %v72_v17, %s215_s30 }
  0x1e   :  { %79 = vrot.lane.b32.xlu0 %v78_v18, %s216_s3  ;;  %87 = vrot.lane.b32.xlu1 %v86_v19, %s217_s4 }
  0x22   :  { %95 = vrot.lane.b32.xlu0 %v94_v20, %s218_s7  ;;  %101 = vrot.lane.b32.xlu1 %v100_v21, %s219_s8 }
  0x26   :  { %109 = vrot.lane.b32.xlu0 %v108_v22, %s220_s10  ;;  %117 = vrot.lane.b32.xlu1 %v116_v23, %s221_s11 }
  0x2a   :  { %123 = vrot.lane.b32.xlu0 %v122_v24, %s222_s0  ;;  %131 = vrot.lane.b32.xlu1 %v130_v25, %s223_s12 }
  0x7c   :  { %v36_v26 = vpop.permute.xlu0 %35   ;;  %v22_v27 = vpop.permute.xlu1 %21  }
  0x7d   :  { %170 = vst.msk [vmem:[%s324_s1 + $0x1] ss:$24 sm:$0x3] %vm17_vm0, %v36_v26   ;;  %168 = vst.msk [vmem:[%s324_s1 + $0x7] ss:$24 sm:$0x3] %vm17_vm0, %v22_v27  }
  0x80   :  { %v142_v28 = vpop.permute.xlu0 %141   ;;  %v30_v29 = vpop.permute.xlu1 %29  }
  0x81   :  { %184 = vst.msk [vmem:[%s324_s1 + $0x6] ss:$24 sm:$0x3] %vm143_vm3, %v142_v28  }
  0x82   :  { %169 = vst.msk [vmem:[%s324_s1 + $0x26] ss:$-24 sm:$0x3] %vm17_vm0, %v30_v29  }
  0x83   :  { %185 = vst.msk [vmem:[%s324_s1 + $0x6] ss:$24 sm:$0x3] %vm146_vm4, %v142_v28  }
  0x84   :  { %v158_v30 = vpop.permute.xlu0 %157   ;;  %v44_v31 = vpop.permute.xlu1 %43  }
  0x85   :  { %186 = vst.msk [vmem:[%s324_s1 + $0x25] ss:$-24 sm:$0x3] %vm159_vm5, %v158_v30  }
  0x86   :  { %171 = vst.msk [vmem:[%s324_s1 + $0x20] ss:$-24 sm:$0x3] %vm17_vm0, %v44_v31  }
  0x87   :  { %187 = vst.msk [vmem:[%s324_s1 + $0x25] ss:$-24 sm:$0x3] %vm162_vm6, %v158_v30  }
  0x88   :  { %v52_v32 = vpop.permute.xlu0 %51   ;;  %v58_v33 = vpop.permute.xlu1 %57  }
  0x89   :  { %172 = vst.msk [vmem:[%s324_s1 + $0x27] ss:$-24 sm:$0x3] %vm17_vm0, %v52_v32   ;;  %173 = vst.msk [vmem:[%s324_s1 + $0x2] ss:$24 sm:$0x3] %vm17_vm0, %v58_v33  }
  0x8c   :  { %v66_v34 = vpop.permute.xlu0 %65   ;;  %v74_v35 = vpop.permute.xlu1 %73  }
  0x8d   :  { %174 = vst.msk [vmem:[%s324_s1 + $0x21] ss:$-24 sm:$0x3] %vm17_vm0, %v66_v34   ;;  %175 = vst.msk [vmem:[%s324_s1 + $0x28] ss:$-24 sm:$0x3] %vm17_vm0, %v74_v35  }
  0x90   :  { %v80_v36 = vpop.permute.xlu0 %79   ;;  %v88_v37 = vpop.permute.xlu1 %87  }
  0x91   :  { %176 = vst.msk [vmem:[%s324_s1 + $0x3] ss:$24 sm:$0x3] %vm17_vm0, %v80_v36   ;;  %177 = vst.msk [vmem:[%s324_s1 + $0x22] ss:$-24 sm:$0x3] %vm17_vm0, %v88_v37  }
  0x94   :  { %v96_v38 = vpop.permute.xlu0 %95   ;;  %v102_v39 = vpop.permute.xlu1 %101  }
  0x95   :  { %178 = vst.msk [vmem:[%s324_s1 + $0x29] ss:$-24 sm:$0x3] %vm17_vm0, %v96_v38   ;;  %179 = vst.msk [vmem:[%s324_s1 + $0x4] ss:$24 sm:$0x3] %vm17_vm0, %v102_v39  }
  0x98   :  { %v110_v40 = vpop.permute.xlu0 %109   ;;  %v118_v41 = vpop.permute.xlu1 %117  }
  0x99   :  { %180 = vst.msk [vmem:[%s324_s1 + $0x23] ss:$-24 sm:$0x3] %vm17_vm0, %v110_v40   ;;  %181 = vst.msk [vmem:[%s324_s1 + $0x2a] ss:$-24 sm:$0x3] %vm17_vm0, %v118_v41  }
  0x9c   :  { %v124_v42 = vpop.permute.xlu0 %123   ;;  %v132_v43 = vpop.permute.xlu1 %131  }
  0x9d   :  { %182 = vst.msk [vmem:[%s324_s1 + $0x5] ss:$24 sm:$0x3] %vm17_vm0, %v124_v42   ;;  %183 = vst.msk [vmem:[%s324_s1 + $0x24] ss:$-24 sm:$0x3] %vm17_vm0, %v132_v43  }

// kernel: encoder_forward.1
= control target key start
LH: loop header
LB: loop body
LE: loop exit
PB: predicated region body
PF: predicated region fallthrough
CT: control target
= control target key end

     0   :  { %s5138_s23 = smov 0   ;;  %s7735_s0 = inlined_call_operand.vmem [shape: f32[2,17,32], index: 0, kind: input, shape index: {}]   ;;  %s7736_s1 = inlined_call_operand.vmem [shape: f32[2,1,8], index: 1, kind: input, shape index: {}]   ;;  %s7737_s2 = inlined_call_operand.vmem [shape: f32[32,145], index: 2, kind: input, shape index: {}]   ;;  %s7738_s3 = inlined_call_operand.vmem [shape: f32[145,32], index: 3, kind: input, shape index: {}]   ;;  %s7739_s4 = inlined_call_operand.vmem [shape: f32[1,384], index: 4, kind: input, shape index: {}]   ;;  %s7740_s5 = inlined_call_operand.vmem [shape: f32[8,17], index: 5, kind: input, shape index: {}]   ;;  %s7741_s6 = inlined_call_operand.vmem [shape: f32[1,17], index: 6, kind: input, shape index: {}]   ;;  %s7742_s7 = inlined_call_operand.vmem [shape: f32[16,16], index: 7, kind: input, shape index: {}]   ;;  %s7743_s8 = inlined_call_operand.vmem [shape: f32[16,1], index: 8, kind: input, shape index: {}]   ;;  %s7744_s9 = inlined_call_operand.vmem [shape: f32[16,144], index: 9, kind: input, shape index: {}]   ;;  %s7745_s10 = inlined_call_operand.vmem [shape: f32[16,1], index: 10, kind: input, shape index: {}]   ;;  %s7746_s11 = inlined_call_operand.vmem [shape: f32[16,144], index: 11, kind: input, shape index: {}]   ;;  %s7747_s12 = inlined_call_operand.vmem [shape: f32[16,1], index: 12, kind: input, shape index: {}]   ;;  %s7748_s13 = inlined_call_operand.vmem [shape: f32[16,168], index: 13, kind: input, shape index: {}]   ;;  %s7749_s14 = inlined_call_operand.vmem [shape: f32[16,1], index: 14, kind: input, shape index: {}]   ;;  %s7750_s15 = inlined_call_operand.vmem [shape: f32[16,144], index: 15, kind: input, shape index: {}]   ;;  %s7751_s16 = inlined_call_operand.vmem [shape: f32[16,1], index: 16, kind: input, shape index: {}]   ;;  %s7752_s17 = inlined_call_operand.vmem [shape: f32[1,144], index: 17, kind: input, shape index: {}]   ;;  %s7753_s18 = inlined_call_operand.<no memory space> [shape: f32[1,1], index: 18, kind: input, shape index: {}]   ;;  %s7754_s19 = inlined_call_operand.vmem [shape: f32[2,1,384], index: 19, kind: output, shape index: {0}]   ;;  %s7755_s20 = inlined_call_operand.vmem [shape: f32[2,17,32], index: 20, kind: output, shape index: {1}]  }
   0x1   :  { %7835 = sst [smem:[#allocation15_spill]] %s7735_s0  ;;  %v26_v0 = vstv %s7753_s18 }
   0x2   :  { %7836 = sst [smem:[#allocation16_spill]] %s7736_s1  ;;  %27 = vst [vmem:[#allocation5] sm:$0x1] %v26_v0 }
   0x3   :  { %7837 = sst [smem:[#allocation17_spill]] %s7737_s2 }
   0x4   :  { %7838 = sst [smem:[#allocation18_spill]] %s7738_s3 }
   0x5   :  { %7839 = sst [smem:[#allocation19_spill]] %s7739_s4 }
   0x6 LB: > { %s4831_s24 = sadd.s32 4294967295, %s4983_s23   ;;  %p4835_p0 = scmp.ge.s32.totalorder %s4983_s23, 1  ;;  %s4983_s23 = sphi %s5138_s23, %s33_s23  }
   0x7   : > { %p575_p1 = scmp.lt.s32.totalorder %s4983_s23, 3 }
   0x9   : > { %p576_p2 = pnand %p4835_p0, %p575_p1 }
   0xb   : > { %579 = sbr.rel (%p576_p2) target bundleno = 3234 (0xca2), region = 96 }
  0x10   : > { %s7840_s3 = sld [smem:[#allocation17_spill]]  ;;  %p5155_p3 = scmp.lt.s32.totalorder %s4831_s24, 1  ;;  %v7790_v5 = vmov 0.0   ;;  %vm7763_vm0 = vcmask 261120   ;;  %v4986_v24 = vmov 1983009808   ;;  %v864_v26 = vlaneseq }
  0x11   : > { %743 = vmatprep.mubr.f32.mxu1 %v7790_v5  ;;  %859 = vst [vmem:[#allocation2] sm:$0x3f] %v7790_v5  ;;  %1442 = vst [vmem:[#allocation3 + $0x18] sm:$0xfe] %v7790_v5  ;;  %s7842_s29 = sld [smem:[#allocation15_spill]]  ;;  %v862_v25 = vunpack.c.l.s4 %v4986_v24  ;;  %s7812_s0 = smov 20  }
  0x12   : > { %1443 = vst [vmem:[#allocation3 + $0x20] sm:$0xfe] %v7790_v5  ;;  %1444 = vst [vmem:[#allocation3 + $0x28] sm:$0xfe] %v7790_v5  ;;  %s7978_s24 = smov (!%p5155_p3, %s4831_s24), 1  ;;  %v5215_v29 = vshrl.u32 %v864_v26, 7 }
  0x13   : > { %3267 = vst [vmem:[#allocation3 + $0x1e0] sm:$0xfc] %v7790_v5  ;;  %3268 = vst [vmem:[#allocation3 + $0x1e8] sm:$0xfc] %v7790_v5  ;;  %s7758_s18 = smul.u32 24, %s7978_s24  ;;  %v863_v28 = vunpack.c.0.s8 %v862_v25  ;;  %s7780_s21 = smov 58  }
  0x14   : > { %3269 = vst [vmem:[#allocation3 + $0x1f0] sm:$0xfc] %v7790_v5  ;;  %s7789_s1 = smov 39   ;;  %s7777_s22 = smov 96   ;;  %vm871_vm1 = vcmask 295072   ;;  %vm890_vm2 = vcmask 450872  }
  0x15   : > { %v5220_v31 = vsub.s32 %v863_v28, %v5215_v29  ;;  %s7778_s2 = smov 77   ;;  %s7779_s25 = smov 115   ;;  %vm900_vm3 = vcmask 606672   ;;  %vm911_vm4 = vcmask 762472   ;;  %vm7787_vm5 = vcmask 918272  }
  0x16   : > { %v668_v1 = vld [vmem:[%s7840_s3 + $0x38] sm:$0xff]  ;;  %v667_v2 = vld [vmem:[%s7840_s3 + $0x30] sm:$0xff]  ;;  %v666_v3 = vld [vmem:[%s7840_s3 + $0x28] sm:$0xff]  ;;  %s7774_s26 = smov 6   ;;  %s7773_s27 = smov 25   ;;  %vm942_vm6 = vcmask 1041304  }
  0x17   : > { %703 = vmatprep.subr.mxu1 %v668_v1  ;;  %v665_v4 = vld [vmem:[%s7840_s3 + $0x20] sm:$0xff]  ;;  %v664_v6 = vld [vmem:[%s7840_s3 + $0x18] sm:$0xff]  ;;  %v663_v7 = vld [vmem:[%s7840_s3 + $0x10] sm:$0xff]  ;;  %s644_s30 = scalar_lea.vmem %s7842_s29, %s7758_s18  ;;  %s7759_s28 = smov 44   ;;  %vm943_vm7 = vcmask 26626   ;;  %vm7788_vm8 = vcmask 941056  }
  0x18   : > { %704 = vmatpush1.msra.mxu1 %v667_v2  ;;  %v662_v8 = vld [vmem:[%s7840_s3 + $0x8] sm:$0xff]  ;;  %v661_v9 = vld [vmem:[%s7840_s3] sm:$0xff]  ;;  %v660_v12 = vld [vmem:[%s644_s30 + $0x10] sm:$0x1]  ;;  %s7760_s4 = smov 63   ;;  %s7761_s29 = smov 120  }
  0x19   : > { %705 = vmatprep.subr.mxu1 %v666_v3  ;;  %v658_v10 = vld [vmem:[%s644_s30] sm:$0xff]  ;;  %v659_v11 = vld [vmem:[%s644_s30 + $0x8] sm:$0xff]  ;;  %s7762_s30 = smov 82   ;;  %s7772_s18 = smov 101   ;;  %vm5264_vm9 = vmor %vm943_vm7, %vm942_vm6  ;;  %vm7764_vm10 = vcmask 180272   ;;  %vm7765_vm11 = vcmask 336072  }
  0x1a   : > { %706 = vmatpush1.msra.mxu1 %v665_v4  ;;  %vm7767_vm12 = vcmask 491872   ;;  %vm7766_vm13 = vcmask 647672   ;;  %vm7786_vm14 = vcmask 803472   ;;  %vm1036_vm15 = vcmask 1041344  }
  0x1b   : > { %707 = vmatprep.subr.mxu1 %v664_v6  ;;  %vm1037_vm6 = vcmask 67586   ;;  %vm7785_vm7 = vcmask 982016   ;;  %v5292_v28 = vsub.s32 1, %v5215_v29 }
  0x1c   : > { %708 = vmatpush1.msra.mxu1 %v663_v7 }
  0x1d   : > { %709 = vmatprep.subr.mxu1 %v662_v8 }
  0x1e   : > { %710 = vmatpush1.msra.mxu1 %v661_v9 }
  0x1f   : > { %4838 = vmatmul.mubr.msk.f32.vlgmr.msra.gmra.mxu1 %vm7763_vm0, %v658_v10  ;;  %4902 = vmatprep.subr.mxu1 %v7790_v5 }
  0x20   : > { %749 = vmatprep.mubr.f32.mxu1 %v7790_v5 }
  0x23   : > { %4839 = vmatmul.mubr.msk.f32.gmra.mxu1 %vm7763_vm0, %v659_v11 }
  0x24   : > { %755 = vmatprep.mubr.f32.mxu1 %v7790_v5 }
  0x27   : > { %4840 = vmatmul.mubr.msk.f32.gmra.mxu1 %vm7763_vm0, %v660_v12  ;;  %vm7784_vm0 = vcmask 959272  }
  0xdf   : > { %v5198_v13 = vpop.f32.mrf.mxu1 }
  0xe0   : > { %7843 = vst [vmem:[#allocation6_spill] sm:$0xff] %v5198_v13  ;;  %v762_v15 = vmul.f32 %v5198_v13, %v5198_v13 }
  0xe1   : > { %v5200_v14 = vpop.f32.mrf.mxu1 }
  0xe2   : > { %7844 = vst [vmem:[#allocation7_spill] sm:$0xff] %v5200_v14  ;;  %v765_v16 = vmul.f32 %v5200_v14, %v5200_v14 }
  0xe3   : > { %v5206_v17 = vpop.f32.mrf.mxu1 }
  0xe4   : > { %7845 = vst [vmem:[#allocation8_spill] sm:$0xff] %v5206_v17  ;;  %v768_v18 = vadd.f32 %v765_v16, %v762_v15  ;;  %v763_v21 = vmul.f32 %v5206_v17, %v5206_v17  ;;  %v7860_v17 = vmov 0.0  }
  0xe5   : > { %v5208_v19 = vpop.f32.mrf.mxu1 }
  0xe6   : > { %7846 = vst [vmem:[#allocation9_spill] sm:$0xff] %v5208_v19  ;;  %v771_v20 = vadd.f32 1e-12, %v768_v18  ;;  %v766_v22 = vmul.f32 %v5208_v19, %v5208_v19 }
  0xe7   : > { %v5217_v30 = vpop.f32.mrf.mxu1 }
  0xe8   : > { %4971 = vrsqrt.f32 %v771_v20  ;;  %v769_v23 = vadd.f32 %v766_v22, %v763_v21  ;;  %7847 = vst [vmem:[#allocation10_spill] sm:$0xff] %v5217_v30  ;;  %v764_v35 = vmul.f32 %v5217_v30, %v5217_v30 }
  0xe9   : > { %v5224_v33 = vpop.f32.mrf.mxu1 }
  0xea   : > { %v772_v27 = vadd.f32 1e-12, %v769_v23  ;;  %7849 = vst [vmem:[#allocation12_spill] sm:$0xff] %v5224_v33  ;;  %v767_v36 = vmul.f32 %v5224_v33, %v5224_v33 }
  0xec   : > { %4973 = vrsqrt.f32 %v772_v27  ;;  %v770_v40 = vadd.f32 %v767_v36, %v764_v35 }
  0xee   : > { %v773_v44 = vadd.f32 1e-12, %v770_v40  ;;  %v781_v40 = vld [vmem:[%s7740_s5] sm:$0xff] }
  0xef   : > { %4903 = vmatpush3.msra.mxu1 %v781_v40 }
  0xf0   : > { %4975 = vrsqrt.f32 %v773_v44 }
  0xf5   : > { %v5222_v32 = vpop.eup %4971 }
  0xf6   : > { %7848 = vst [vmem:[#allocation11_spill] sm:$0xff] %v5222_v32  ;;  %v777_v34 = vmul.f32 %v5222_v32, %v771_v20 }
  0xf8   : > { %v867_v37 = vrot.slane %v777_v34, %v5220_v31  ;;  %v917_v39 = vcombine.high %v777_v34, %v777_v34 }
  0xf9   : > { %v5236_v43 = vpop.eup %4973 }
  0xfa   : > { %868 = vrot.lane.b32.xlu0 %v867_v37, %s7812_s0  ;;  %v896_v38 = vcombine.high %v867_v37, %v867_v37  ;;  %v4842_v41 = vrot.slane %v867_v37, 9  ;;  %v924_v42 = vrot.slane %v917_v39, %v5220_v31  ;;  %7850 = vst [vmem:[#allocation13_spill] sm:$0xff] %v5236_v43  ;;  %v778_v48 = vmul.f32 %v5236_v43, %v772_v27 }
  0xfb   : > { %v5289_v27 = vsub.s32 0, %v5215_v29 }
  0xfc   : > { %897 = vrot.lane.b32.xlu1 %v896_v38, %s7780_s21  ;;  %v4843_v45 = vrot.slane %v896_v38, 9  ;;  %v4844_v46 = vrot.slane %v924_v42, 9  ;;  %v952_v47 = vcombine.high %v924_v42, %v924_v42  ;;  %v980_v50 = vrot.slane %v778_v48, %v5220_v31  ;;  %s7863_s21 = smov 115  }
  0xfd   : > { %v1022_v51 = vcombine.high %v778_v48, %v778_v48  ;;  %v5250_v56 = vpop.eup %4975  ;;  %v5309_v38 = vsub.s32 2, %v5215_v29  ;;  %v5354_v48 = vand.u32 127, %v864_v26 }
  0xfe   : > { %887 = vrot.lane.b32.xlu0 %v4842_v41, %s7789_s1  ;;  %v4845_v49 = vrot.slane %v952_v47, 9  ;;  %v4846_v52 = vrot.slane %v980_v50, 9  ;;  %v1001_v54 = vcombine.high %v980_v50, %v980_v50  ;;  %7851 = vst [vmem:[#allocation14_spill] sm:$0xff] %v5250_v56  ;;  %v779_v59 = vmul.f32 %v5250_v56, %v773_v44  ;;  %v1454_v44 = vld [vmem:[%s7743_s8 + $0x8] sm:$0xff]  ;;  %s7859_s1 = sld [smem:[#allocation19_spill]] }
  0xff   : > { %v1029_v53 = vrot.slane %v1022_v51, %v5220_v31 }
 0x100   : > { %925 = vrot.lane.b32.xlu1 %v924_v42, %s7777_s22  ;;  %v4847_v55 = vrot.slane %v1001_v54, 9  ;;  %v1085_v61 = vrot.slane %v779_v59, %v5220_v31  ;;  %v1453_v42 = vld [vmem:[%s7743_s8] sm:$0xff]  ;;  %s7864_s22 = smov 77  }
 0x101   : > { %v4848_v57 = vrot.slane %v1029_v53, 9  ;;  %v1057_v58 = vcombine.high %v1029_v53, %v1029_v53 }
 0x102   : > { %908 = vrot.lane.b32.xlu0 %v4843_v45, %s7778_s2  ;;  %v5012_v45 = vmov 0   ;;  %s7861_s2 = smov 39  }
 0x103   : > { %v4849_v60 = vrot.slane %v1057_v58, 9  ;;  %4970 = vset.pattern.permute.xlu0 %v5012_v45  ;;  %4969 = vset.pattern.permute.xlu1 %v5012_v45 }
 0x104   : > { %936 = vrot.lane.b32.xlu1 %v4844_v46, %s7779_s25  ;;  %v5013_v46 = vmov 1966171168   ;;  %s7862_s25 = smov 58  }
 0x106   : > { %953 = vrot.lane.b32.xlu0 %v952_v47, %s7774_s26  ;;  %v1131_v47 = vunpack.c.l.s4 %v5013_v46 }
 0x108   : > { %964 = vrot.lane.b32.xlu1 %v4845_v49, %s7773_s27  ;;  %s7858_s27 = sld [smem:[#allocation16_spill]]  ;;  %v1132_v49 = vunpack.c.0.s8 %v1131_v47 }
 0x10a   : > { %981 = vrot.lane.b32.xlu0 %v980_v50, %s7759_s28  ;;  %s7771_s28 = smov 11  }
 0x10c   : > { %992 = vrot.lane.b32.xlu1 %v4846_v52, %s7760_s4  ;;  %s7770_s4 = smov 30   ;;  %v5358_v52 = vsub.s32 %v1132_v49, %v5215_v29 }
 0x10e   : > { %1030 = vrot.lane.b32.xlu0 %v1029_v53, %s7761_s29  ;;  %s7769_s29 = smov 49   ;;  %s647_s26 = scalar_lea.vmem %s7858_s27, %s7978_s24 }
 0x10f   : > { %v780_v41 = vld [vmem:[%s647_s26] sm:$0x1]  ;;  %s5009_s26 = smov 109   ;;  %s5010_s27 = smov 18  }
 0x110   : > { %1002 = vrot.lane.b32.xlu1 %v1001_v54, %s7762_s30  ;;  %s7768_s30 = smov 68  }
 0x112   : > { %1013 = vrot.lane.b32.xlu0 %v4847_v55, %s7772_s18  ;;  %s5008_s18 = smov 19  }
 0x114   : > { %1048 = vrot.lane.b32.xlu1 %v4848_v57, %s7771_s28  ;;  %s7801_s28 = smov 127  }
 0x116   : > { %1058 = vrot.lane.b32.xlu0 %v1057_v58, %s7770_s4  ;;  %s7803_s4 = smov 1  }
 0x118   : > { %1069 = vrot.lane.b32.xlu1 %v4849_v60, %s7769_s29  ;;  %s7805_s29 = smov 110  }
 0x11a   : > { %1086 = vrot.lane.b32.xlu0 %v1085_v61, %s7768_s30  ;;  %s7807_s30 = smov 108  }
 0x16c   : > { %v869_v62 = vpop.permute.xlu0 %868 }
 0x16d   : > { %872 = vst.msk [vmem:[#allocation2] sm:$0x1] %vm871_vm1, %v869_v62 }
 0x16e   : > { %v898_v63 = vpop.permute.xlu1 %897 }
 0x170   : > { %v888_v0 = vpop.permute.xlu0 %887 }
 0x171   : > { %891 = vst.msk [vmem:[#allocation2] sm:$0x1] %vm890_vm2, %v888_v0 }
 0x172   : > { %v926_v1 = vpop.permute.xlu1 %925  ;;  %901 = vst.msk [vmem:[#allocation2] sm:$0x1] %vm900_vm3, %v898_v63 }
 0x174   : > { %v909_v2 = vpop.permute.xlu0 %908 }
 0x175   : > { %912 = vst.msk [vmem:[#allocation2] sm:$0x1] %vm911_vm4, %v909_v2 }
 0x176   : > { %929 = vst.msk [vmem:[#allocation2] sm:$0x1] %vm7787_vm5, %v926_v1  ;;  %v937_v3 = vpop.permute.xlu1 %936  ;;  %vm7809_vm5 = vcmp.lt.s32.totalorder %v5354_v48, 127 }
 0x177   : > { %v938_v4 = vrot.slane %v937_v3, 6 }
 0x178   : > { %v954_v7 = vpop.permute.xlu0 %953 }
 0x179   : > { %v940_v8 = vsel %vm7788_vm8, %v938_v4, %v937_v3  ;;  %vm7810_vm8 = vcmask 130048  }
 0x17a   : > { %945 = vst.msk [vmem:[#allocation2] sm:$0x5] %vm5264_vm9, %v940_v8  ;;  %v965_v9 = vpop.permute.xlu1 %964 }
 0x17b   : > { %957 = vst.msk [vmem:[#allocation2 + $0x2] sm:$0x1] %vm7764_vm10, %v954_v7  ;;  %vm5276_vm10 = vmor %vm1037_vm6, %vm1036_vm15  ;;  %vm7775_vm15 = vcmask 688672   ;;  %vm5295_vm6 = vcmp.lt.s32.totalorder %v864_v26, 384 }
 0x17c   : > { %968 = vst.msk [vmem:[#allocation2 + $0x2] sm:$0x1] %vm7765_vm11, %v965_v9  ;;  %v982_v10 = vpop.permute.xlu0 %981  ;;  %vm7783_vm11 = vcmask 221272  }
 0x17d   : > { %985 = vst.msk [vmem:[#allocation2 + $0x2] sm:$0x1] %vm7767_vm12, %v982_v10  ;;  %vm7776_vm12 = vcmask 532872  }
 0x17e   : > { %v993_v11 = vpop.permute.xlu1 %992 }
 0x17f   : > { %996 = vst.msk [vmem:[#allocation2 + $0x2] sm:$0x1] %vm7766_vm13, %v993_v11  ;;  %vm7782_vm13 = vcmask 377072  }
 0x180   : > { %v1031_v12 = vpop.permute.xlu0 %1030 }
 0x181   : > { %v1032_v15 = vrot.slane %v1031_v12, 6 }
 0x182   : > { %v1003_v16 = vpop.permute.xlu1 %1002 }
 0x183   : > { %1006 = vst.msk [vmem:[#allocation2 + $0x2] sm:$0x1] %vm7786_vm14, %v1003_v16  ;;  %v1034_v21 = vsel %vm7785_vm7, %v1032_v15, %v1031_v12  ;;  %vm1288_vm7 = vcmp.lt.s32.totalorder %v5354_v48, 109  ;;  %vm1328_vm14 = vcmp.lt.s32.totalorder %v5354_v48, 18 }
 0x184   : > { %v1014_v20 = vpop.permute.xlu0 %1013 }
 0x185   : > { %1017 = vst.msk [vmem:[#allocation2 + $0x2] sm:$0x1] %vm7784_vm0, %v1014_v20  ;;  %vm1245_vm0 = vcmp.lt.s32.totalorder %v5354_v48, 19 }
 0x186   : > { %1039 = vst.msk [vmem:[#allocation2 + $0x2] sm:$0x5] %vm5276_vm10, %v1034_v21  ;;  %v1049_v22 = vpop.permute.xlu1 %1048 }
 0x187   : > { %1052 = vst.msk [vmem:[#allocation2 + $0x4] sm:$0x1] %vm7783_vm11, %v1049_v22  ;;  %vm1205_vm11 = vcmp.lt.s32.totalorder %v5354_v48, 110 }
 0x188   : > { %v1059_v23 = vpop.permute.xlu0 %1058 }
 0x189   : > { %1062 = vst.msk [vmem:[#allocation2 + $0x4] sm:$0x1] %vm7782_vm13, %v1059_v23  ;;  %vm1165_vm13 = vcmp.lt.s32.totalorder %v5354_v48, 1 }
 0x18a   : > { %v1070_v24 = vpop.permute.xlu1 %1069 }
 0x18b   : > { %1073 = vst.msk [vmem:[#allocation2 + $0x4] sm:$0x1] %vm7776_vm12, %v1070_v24  ;;  %vm7781_vm12 = vcmask 64512  }
 0x18c   : > { %v1087_v25 = vpop.permute.xlu0 %1086 }
 0x18d   : > { %1090 = vst.msk [vmem:[#allocation2 + $0x4] sm:$0x1] %vm7775_vm15, %v1087_v25  ;;  %vm5005_vm15 = vmmov 0  }
 0x18e   : > { %4904 = vmatprep.mubr.msk.f32.mxu1 %vm5005_vm15, %v7790_v5  ;;  %vm7811_vm15 = vcmp.lt.s32.totalorder %v5354_v48, 108 }
 0x18f   : > { %4905 = vmatmul.mubr.msk.f32.vlgmr.msra.gmra.mxu1 %vm7781_vm12, %v780_v41  ;;  %vm1122_vm12 = vcmp.lt.s32.totalorder %v5354_v48, 20 }
 0x190   : > { %1536 = vmatprep.mubr.f32.mxu1 %v7790_v5 }
 0x194   : > { %v5299_v35 = vld [vmem:[#allocation2] ss:$2 sm:$0x7] }
 0x195   : > { %1280 = vst.msk [vmem:[#allocation3 + $0x4] ss:$8 sm:$0x7] %vm5295_vm6, %v5299_v35  ;;  %v1106_v36 = vrot.slane %v5299_v35, %v5292_v28  ;;  %v1102_v37 = vrot.slane %v5299_v35, %v5289_v27  ;;  %v1110_v39 = vrot.slane %v5299_v35, %v5309_v38 }
 0x197   : > { %1404 = vrot.lane.b32.xlu0 %v1106_v36, %s7807_s30  ;;  %1402 = vrot.lane.b32.xlu1 %v1102_v37, %s7807_s30 }
 0x19b   : > { %1114 = vrot.lane.b32.xlu0 %v1102_v37, %s7812_s0  ;;  %1406 = vrot.lane.b32.xlu1 %v1110_v39, %s7807_s30 }
 0x19f   : > { %1118 = vrot.lane.b32.xlu0 %v1110_v39, %s7812_s0  ;;  %1116 = vrot.lane.b32.xlu1 %v1106_v36, %s7812_s0 }
 0x1a3   : > { %1161 = vrot.lane.b32.xlu0 %v1106_v36, %s7803_s4  ;;  %1159 = vrot.lane.b32.xlu1 %v1102_v37, %s7803_s4 }
 0x1a7   : > { %1199 = vrot.lane.b32.xlu0 %v1102_v37, %s7805_s29  ;;  %1163 = vrot.lane.b32.xlu1 %v1110_v39, %s7803_s4 }
 0x1ab   : > { %1203 = vrot.lane.b32.xlu0 %v1110_v39, %s7805_s29  ;;  %1201 = vrot.lane.b32.xlu1 %v1106_v36, %s7805_s29 }
 0x1af   : > { %1241 = vrot.lane.b32.xlu0 %v1106_v36, %s5008_s18  ;;  %1239 = vrot.lane.b32.xlu1 %v1102_v37, %s5008_s18 }
 0x1b3   : > { %1282 = vrot.lane.b32.xlu0 %v1102_v37, %s5009_s26  ;;  %1243 = vrot.lane.b32.xlu1 %v1110_v39, %s5008_s18 }
 0x1b7   : > { %1286 = vrot.lane.b32.xlu0 %v1110_v39, %s5009_s26  ;;  %1284 = vrot.lane.b32.xlu1 %v1106_v36, %s5009_s26 }
 0x1bb   : > { %1324 = vrot.lane.b32.xlu0 %v1106_v36, %s5010_s27  ;;  %1322 = vrot.lane.b32.xlu1 %v1102_v37, %s5010_s27 }
 0x1bf   : > { %1362 = vrot.lane.b32.xlu0 %v1102_v37, %s7801_s28  ;;  %1326 = vrot.lane.b32.xlu1 %v1110_v39, %s5010_s27 }
 0x1c3   : > { %1366 = vrot.lane.b32.xlu0 %v1110_v39, %s7801_s28  ;;  %1364 = vrot.lane.b32.xlu1 %v1106_v36, %s7801_s28 }
 0x1c7   : > { %1457 = vperm.xlu0 %4970, %v1453_v42   ;;  %1462 = vperm.xlu1 %4969, %v1454_v44  }
 0x209   : > { %v1405_v50 = vpop.permute.xlu0 %1404  ;;  %v1403_v51 = vpop.permute.xlu1 %1402 }
 0x20a   : > { %v1410_v55 = vsel %vm7811_vm15, %v1403_v51, %v1405_v50 }
 0x20d   : > { %v1115_v53 = vpop.permute.xlu0 %1114  ;;  %v1407_v54 = vpop.permute.xlu1 %1406 }
 0x20e   : > { %v1409_v57 = vsel %vm7811_vm15, %v1405_v50, %v1407_v54  ;;  %v1411_v26 = vsel %vm7811_vm15, %v1407_v54, %v1403_v51 }
 0x20f   : > { %v1415_v58 = vcombine.low %v1410_v55, %v1409_v57  ;;  %v1429_v60 = vrot.slane %v1411_v26, %v5358_v52 }
 0x211   : > { %v1422_v59 = vrot.slane %v1415_v58, %v5358_v52  ;;  %v1119_v29 = vpop.permute.xlu0 %1118  ;;  %v1117_v61 = vpop.permute.xlu1 %1116 }
 0x212   : > { %v1125_v62 = vsel %vm1122_vm12, %v1119_v29, %v1115_v53  ;;  %v1123_v63 = vsel %vm1122_vm12, %v1117_v61, %v1119_v29  ;;  %v1124_v0 = vsel %vm1122_vm12, %v1115_v53, %v1117_v61 }
 0x213   : > { %v1430_v1 = vcombine.low %v1422_v59, %v1429_v60  ;;  %v1129_v2 = vcombine.low %v1125_v62, %v1124_v0  ;;  %v1143_v7 = vrot.slane %v1123_v63, %v5358_v52 }
 0x215   : > { %v1437_v3 = vrot.slane %v1430_v1, %v5358_v52  ;;  %v1136_v4 = vrot.slane %v1129_v2, %v5358_v52  ;;  %v1162_v8 = vpop.permute.xlu0 %1161  ;;  %v1160_v9 = vpop.permute.xlu1 %1159 }
 0x216   : > { %v1167_v16 = vsel %vm1165_vm13, %v1160_v9, %v1162_v8 }
 0x217   : > { %1440 = vst.msk [vmem:[#allocation3 + $0x18] ss:$8 sm:$0x7] %vm5295_vm6, %v1437_v3  ;;  %3226 = vst.msk [vmem:[#allocation3 + $0x1e0] ss:$8 sm:$0x7] %vm5295_vm6, %v1437_v3  ;;  %v1144_v10 = vcombine.low %v1136_v4, %v1143_v7 }
 0x219   : > { %v5384_v11 = vrot.slane %v1144_v10, %v5358_v52  ;;  %v1200_v12 = vpop.permute.xlu0 %1199  ;;  %v1164_v15 = vpop.permute.xlu1 %1163 }
 0x21a   : > { %v1166_v20 = vsel %vm1165_vm13, %v1162_v8, %v1164_v15  ;;  %v1168_v21 = vsel %vm1165_vm13, %v1164_v15, %v1160_v9 }
 0x21b   : > { %1157 = vst.msk [vmem:[#allocation3] ss:$8 sm:$0x7] %vm5295_vm6, %v5384_v11  ;;  %v1172_v22 = vcombine.low %v1168_v21, %v1167_v16  ;;  %v1186_v24 = vrot.slane %v1166_v20, %v5358_v52 }
 0x21d   : > { %v1179_v23 = vrot.slane %v1172_v22, %v5358_v52  ;;  %v1204_v25 = vpop.permute.xlu0 %1203  ;;  %v1202_v36 = vpop.permute.xlu1 %1201 }
 0x21e   : > { %v1208_v37 = vsel %vm1205_vm11, %v1204_v25, %v1200_v12  ;;  %v1206_v39 = vsel %vm1205_vm11, %v1202_v36, %v1204_v25  ;;  %v1207_v40 = vsel %vm1205_vm11, %v1200_v12, %v1202_v36  ;;  %v1451_v41 = vld [vmem:[#allocation3 + $0x20] sm:$0xff]  ;;  %v1450_v42 = vld [vmem:[#allocation3 + $0x18] sm:$0xff] }
 0x21f   : > { %v1187_v44 = vcombine.low %v1179_v23, %v1186_v24  ;;  %v1212_v45 = vcombine.low %v1207_v40, %v1206_v39  ;;  %1500 = vmatprep.subr.mxu1 %v1451_v41  ;;  %v1226_v47 = vrot.slane %v1208_v37, %v5358_v52 }
 0x220   : > { %1501 = vmatpush1.msra.mxu1 %v1450_v42 }
 0x221   : > { %v5405_v46 = vrot.slane %v1187_v44, %v5358_v52  ;;  %v1219_v49 = vrot.slane %v1212_v45, %v5358_v52  ;;  %v1242_v50 = vpop.permute.xlu0 %1241  ;;  %v1240_v51 = vpop.permute.xlu1 %1239 }
 0x222   : > { %v1247_v26 = vsel %vm1245_vm0, %v1240_v51, %v1242_v50 }
 0x223   : > { %1197 = vst.msk [vmem:[#allocation3 + $0x1] ss:$8 sm:$0x7] %vm5295_vm6, %v5405_v46  ;;  %v1227_v53 = vcombine.low %v1219_v49, %v1226_v47 }
 0x225   : > { %v5414_v54 = vrot.slane %v1227_v53, %v5358_v52  ;;  %v1283_v55 = vpop.permute.xlu0 %1282  ;;  %v1244_v57 = vpop.permute.xlu1 %1243 }
 0x226   : > { %v1246_v58 = vsel %vm1245_vm0, %v1242_v50, %v1244_v57  ;;  %v1248_v59 = vsel %vm1245_vm0, %v1244_v57, %v1240_v51 }
 0x227   : > { %1237 = vst.msk [vmem:[#allocation3 + $0x2] ss:$8 sm:$0x7] %vm5295_vm6, %v5414_v54  ;;  %v1252_v60 = vcombine.low %v1248_v59, %v1247_v26  ;;  %v1266_v61 = vrot.slane %v1246_v58, %v5358_v52  ;;  %v1445_v58 = vld [vmem:[%s7742_s7] sm:$0xff]  ;;  %v1452_v59 = vld [vmem:[#allocation3 + $0x28] sm:$0xff] }
 0x229   : > { %v1259_v29 = vrot.slane %v1252_v60, %v5358_v52  ;;  %v1287_v62 = vpop.permute.xlu0 %1286  ;;  %v1285_v63 = vpop.permute.xlu1 %1284 }
 0x22a   : > { %v1291_v0 = vsel %vm1288_vm7, %v1287_v62, %v1283_v55  ;;  %v1289_v1 = vsel %vm1288_vm7, %v1285_v63, %v1287_v62  ;;  %v1290_v2 = vsel %vm1288_vm7, %v1283_v55, %v1285_v63 }
 0x22b   : > { %v1267_v3 = vcombine.low %v1259_v29, %v1266_v61  ;;  %v1295_v4 = vcombine.low %v1290_v2, %v1289_v1  ;;  %v1309_v8 = vrot.slane %v1291_v0, %v5358_v52  ;;  %v1446_v29 = vld [vmem:[%s7742_s7 + $0x8] sm:$0xff]  ;;  %v657_v0 = vld [vmem:[%s7859_s1] sm:$0x7]  ;;  %s7865_s1 = smov 96  }
 0x22d   : > { %v5435_v7 = vrot.slane %v1267_v3, %v5358_v52  ;;  %v1302_v9 = vrot.slane %v1295_v4, %v5358_v52  ;;  %v1325_v10 = vpop.permute.xlu0 %1324  ;;  %v1323_v12 = vpop.permute.xlu1 %1322  ;;  %v5496_v4 = vrot.slane %v657_v0, %v5289_v27 }
 0x22e   : > { %v1330_v22 = vsel %vm1328_vm14, %v1323_v12, %v1325_v10 }
 0x22f   : > { %1277 = vst.msk [vmem:[#allocation3 + $0x3] ss:$8 sm:$0x7] %vm5295_vm6, %v5435_v7  ;;  %v1310_v15 = vcombine.low %v1302_v9, %v1309_v8 }
 0x231   : > { %v5444_v16 = vrot.slane %v1310_v15, %v5358_v52  ;;  %v1363_v20 = vpop.permute.xlu0 %1362  ;;  %v1327_v21 = vpop.permute.xlu1 %1326 }
 0x232   : > { %v1329_v23 = vsel %vm1328_vm14, %v1325_v10, %v1327_v21  ;;  %v1331_v24 = vsel %vm1328_vm14, %v1327_v21, %v1323_v12  ;;  %v5499_v12 = vrot.slane %v657_v0, %v5292_v28 }
 0x233   : > { %1320 = vst.msk [vmem:[#allocation3 + $0x5] ss:$8 sm:$0x7] %vm5295_vm6, %v5444_v16  ;;  %v1335_v25 = vcombine.low %v1331_v24, %v1330_v22  ;;  %v1349_v37 = vrot.slane %v1329_v23, %v5358_v52 }
 0x235   : > { %v1342_v36 = vrot.slane %v1335_v25, %v5358_v52  ;;  %v1367_v39 = vpop.permute.xlu0 %1366  ;;  %v1365_v40 = vpop.permute.xlu1 %1364 }
 0x236   : > { %v1371_v41 = vsel %vm7809_vm5, %v1367_v39, %v1363_v20  ;;  %v1369_v42 = vsel %vm7809_vm5, %v1365_v40, %v1367_v39  ;;  %v1370_v44 = vsel %vm7809_vm5, %v1363_v20, %v1365_v40 }
 0x237   : > { %v1350_v45 = vcombine.low %v1342_v36, %v1349_v37  ;;  %v1375_v47 = vcombine.low %v1370_v44, %v1369_v42  ;;  %v1389_v50 = vrot.slane %v1371_v41, %v5358_v52 }
 0x239   : > { %v5465_v49 = vrot.slane %v1350_v45, %v5358_v52  ;;  %v1382_v51 = vrot.slane %v1375_v47, %v5358_v52 }
 0x23b   : > { %1360 = vst.msk [vmem:[#allocation3 + $0x6] ss:$8 sm:$0x7] %vm5295_vm6, %v5465_v49  ;;  %v1390_v53 = vcombine.low %v1382_v51, %v1389_v50 }
 0x23d   : > { %v5473_v55 = vrot.slane %v1390_v53, %v5358_v52 }
 0x23f   : > { %1400 = vst.msk [vmem:[#allocation3 + $0x7] ss:$8 sm:$0x7] %vm5295_vm6, %v5473_v55 }
 0x242   : > { %v1458_v63 = vpop.permute.xlu0 %1457  ;;  %v1463_v10 = vpop.permute.xlu1 %1462 }
 0x246   : > { %v1448_v57 = vld [vmem:[#allocation3 + $0x8] sm:$0xff]  ;;  %v1447_v26 = vld [vmem:[#allocation3] sm:$0xff]  ;;  %v1449_v60 = vld [vmem:[#allocation3 + $0x10] sm:$0xff] }
 0x247   : > { %1502 = vmatprep.subr.mxu1 %v1448_v57 }
 0x248   : > { %1503 = vmatpush1.msra.mxu1 %v1447_v26  ;;  %v5556_v26 = vrot.slane %v657_v0, %v5309_v38  ;;  %v1915_v0 = vld [vmem:[%s7745_s10 + $0x8] sm:$0xff] }
 0x249   : > { %4850 = vmatmul.mubr.msk.f32.vlgmr.msra.gmra.mxu1 %vm7810_vm8, %v1445_v58  ;;  %4907 = vmatprep.subr.mxu1 %v1452_v59 }
 0x24a   : > { %4908 = vmatpush3.msra.mxu1 %v1452_v59  ;;  %1542 = vmatprep.mubr.f32.mxu1 %v7790_v5 }
 0x24b   : > { %4909 = vmatprep.subr.mxu1 %v1449_v60 }
 0x24c   : > { %4910 = vmatpush3.msra.mxu1 %v1449_v60 }
 0x24d   : > { %4851 = vmatmul.mubr.msk.f32.gmra.mxu1 %vm7810_vm8, %v1446_v29  ;;  %2009 = vmatprep.subr.mxu1 %v7790_v5 }
 0x24e   : > { %4911 = vmatprep.mubr.msk.f32.mxu1 %vm7810_vm8, %v1445_v58 }
 0x24f   : > { %v5490_v61 = vpop.f32.mrf.mxu1 }
 0x251   : > { %4912 = vmatmul.mubr.msk.f32.vlgmr.msra.gmra.mxu1 %vm7810_vm8, %v1446_v29  ;;  %v4906_v62 = vpop.f32.mrf.mxu1 }
 0x309   : > { %v1538_v1 = vpop.f32.mrf.mxu1 }
 0x30a   : > { %v1539_v2 = vadd.f32 %v1538_v1, %v1458_v63  ;;  %v1914_v1 = vld [vmem:[%s7745_s10] sm:$0xff] }
 0x30b   : > { %v1540_v3 = vpop.f32.mrf.mxu1 }
 0x30c   : > { %v1624_v8 = vmul.f32 0.01, %v1539_v2  ;;  %v1541_v9 = vadd.f32 %v1540_v3, %v1458_v63 }
 0x30d   : > { %v1544_v21 = vpop.f32.mrf.mxu1 }
 0x30e   : > { %v1630_v15 = vmax.f32 %v1539_v2, %v1624_v8  ;;  %v1625_v20 = vmul.f32 0.01, %v1541_v9  ;;  %v1545_v24 = vadd.f32 %v1544_v21, %v1463_v10 }
 0x30f   : > { %v1546_v40 = vpop.f32.mrf.mxu1 }
 0x310   : > { %v5502_v22 = vmul.f32 %v5496_v4, %v1630_v15  ;;  %v1631_v23 = vmax.f32 %v1541_v9, %v1625_v20  ;;  %v1627_v36 = vmul.f32 0.01, %v1545_v24  ;;  %v1547_v41 = vadd.f32 %v1546_v40, %v1463_v10 }
 0x311   : > { %v4913_v45 = vpop.f32.mrf.mxu1 }
 0x312   : > { %v5505_v25 = vmul.f32 %v5499_v12, %v1631_v23  ;;  %1808 = vrot.lane.b32.xlu1 %v5502_v22, %s7801_s28  ;;  %v1633_v37 = vmax.f32 %v1545_v24, %v1627_v36  ;;  %v1628_v42 = vmul.f32 0.01, %v1547_v41  ;;  %v1621_v47 = vadd.f32 %v4913_v45, %v1463_v10 }
 0x313   : > { %v1615_v57 = vpop.f32.mrf.mxu1 }
 0x314   : > { %1788 = vrot.lane.b32.xlu0 %v5505_v25, %s5010_s27  ;;  %v5518_v39 = vmul.f32 %v5496_v4, %v1633_v37  ;;  %v1634_v44 = vmax.f32 %v1547_v41, %v1628_v42  ;;  %v1629_v51 = vmul.f32 0.01, %v1621_v47  ;;  %v1616_v58 = vadd.f32 %v1615_v57, %v1458_v63  ;;  %v1857_v63 = vld [vmem:[%s7744_s9 + $0x8] sm:$0xff] }
 0x315   : > { %4854 = vmatprep.mubr.msk.f32.mxu0 %vm7810_vm8, %v1857_v63  ;;  %4856 = vmatprep.mubr.msk.f32.mxu1 %vm7810_vm8, %v1857_v63 }
 0x316   : > { %1784 = vrot.lane.b32.xlu1 %v5502_v22, %s5010_s27  ;;  %v5545_v50 = vmul.f32 %v5499_v12, %v1634_v44  ;;  %v1635_v53 = vmax.f32 %v1621_v47, %v1629_v51  ;;  %v1626_v60 = vmul.f32 0.01, %v1616_v58 }
 0x318   : > { %1734 = vrot.lane.b32.xlu0 %v5505_v25, %s5008_s18  ;;  %v5561_v59 = vmul.f32 %v5556_v26, %v1635_v53  ;;  %v1632_v29 = vmax.f32 %v1616_v58, %v1626_v60 }
 0x31a   : > { %1760 = vrot.lane.b32.xlu1 %v5502_v22, %s5009_s26  ;;  %v5576_v62 = vmul.f32 %v5556_v26, %v1632_v29 }
 0x31c   : > { %1686 = vrot.lane.b32.xlu0 %v5505_v25, %s7803_s4 }
 0x31e   : > { %1730 = vrot.lane.b32.xlu1 %v5502_v22, %s5008_s18 }
 0x320   : > { %1810 = vrot.lane.b32.xlu0 %v5518_v39, %s7801_s28 }
 0x322   : > { %1706 = vrot.lane.b32.xlu1 %v5502_v22, %s7805_s29 }
 0x324   : > { %1786 = vrot.lane.b32.xlu0 %v5518_v39, %s5010_s27 }
 0x326   : > { %1682 = vrot.lane.b32.xlu1 %v5502_v22, %s7803_s4 }
 0x328   : > { %1762 = vrot.lane.b32.xlu0 %v5518_v39, %s5009_s26 }
 0x32a   : > { %1812 = vrot.lane.b32.xlu1 %v5505_v25, %s7801_s28 }
 0x32c   : > { %1732 = vrot.lane.b32.xlu0 %v5518_v39, %s5008_s18 }
 0x32e   : > { %1764 = vrot.lane.b32.xlu1 %v5505_v25, %s5009_s26 }
 0x330   : > { %1708 = vrot.lane.b32.xlu0 %v5518_v39, %s7805_s29 }
 0x332   : > { %1710 = vrot.lane.b32.xlu1 %v5505_v25, %s7805_s29 }
 0x334   : > { %1684 = vrot.lane.b32.xlu0 %v5518_v39, %s7803_s4 }
 0x336   : > { %1814 = vrot.lane.b32.xlu1 %v5545_v50, %s7801_s28 }
 0x338   : > { %1766 = vrot.lane.b32.xlu0 %v5545_v50, %s5009_s26 }
 0x33a   : > { %1790 = vrot.lane.b32.xlu1 %v5545_v50, %s5010_s27 }
 0x33c   : > { %1712 = vrot.lane.b32.xlu0 %v5545_v50, %s7805_s29 }
 0x33e   : > { %1736 = vrot.lane.b32.xlu1 %v5545_v50, %s5008_s18 }
 0x340   : > { %1794 = vrot.lane.b32.xlu0 %v5561_v59, %s5010_s27 }
 0x342   : > { %1688 = vrot.lane.b32.xlu1 %v5545_v50, %s7803_s4 }
 0x344   : > { %1740 = vrot.lane.b32.xlu0 %v5561_v59, %s5008_s18 }
 0x346   : > { %1818 = vrot.lane.b32.xlu1 %v5561_v59, %s7801_s28 }
 0x348   : > { %1692 = vrot.lane.b32.xlu0 %v5561_v59, %s7803_s4 }
 0x34a   : > { %1770 = vrot.lane.b32.xlu1 %v5561_v59, %s5009_s26 }
 0x34c   : > { %1816 = vrot.lane.b32.xlu0 %v5576_v62, %s7801_s28 }
 0x34e   : > { %1716 = vrot.lane.b32.xlu1 %v5561_v59, %s7805_s29 }
 0x350   : > { %1660 = vrot.lane.b32.xlu0 %v5518_v39, %s7812_s0 }
 0x352   : > { %1664 = vrot.lane.b32.xlu1 %v5545_v50, %s7812_s0 }
 0x354   : > { %1768 = vrot.lane.b32.xlu0 %v5576_v62, %s5009_s26 }
 0x356   : > { %1792 = vrot.lane.b32.xlu1 %v5576_v62, %s5010_s27 }
 0x358   : > { %1668 = vrot.lane.b32.xlu0 %v5561_v59, %s7812_s0 }
 0x35a   : > { %1658 = vrot.lane.b32.xlu1 %v5502_v22, %s7812_s0 }
 0x35c   : > { %1662 = vrot.lane.b32.xlu0 %v5505_v25, %s7812_s0 }
 0x35e   : > { %1738 = vrot.lane.b32.xlu1 %v5576_v62, %s5008_s18 }
 0x360   : > { %1714 = vrot.lane.b32.xlu0 %v5576_v62, %s7805_s29 }
 0x362   : > { %1842 = vrot.lane.b32.xlu1 %v5561_v59, %s7807_s30 }
 0x364   : > { %1838 = vrot.lane.b32.xlu0 %v5545_v50, %s7807_s30 }
 0x366   : > { %1836 = vrot.lane.b32.xlu1 %v5505_v25, %s7807_s30 }
 0x368   : > { %1834 = vrot.lane.b32.xlu0 %v5518_v39, %s7807_s30 }
 0x36a   : > { %1690 = vrot.lane.b32.xlu1 %v5576_v62, %s7803_s4 }
 0x36c   : > { %1840 = vrot.lane.b32.xlu0 %v5576_v62, %s7807_s30 }
 0x36e   : > { %1666 = vrot.lane.b32.xlu1 %v5576_v62, %s7812_s0 }
 0x370   : > { %1923 = vperm.xlu0 %4970, %v1915_v0  }
 0x372   : > { %1832 = vrot.lane.b32.xlu1 %v5502_v22, %s7807_s30 }
 0x376   : > { %1918 = vperm.xlu1 %4969, %v1914_v1  }
 0x384   : > { %v1809_v2 = vpop.permute.xlu1 %1808 }
 0x386   : > { %v1789_v3 = vpop.permute.xlu0 %1788 }
 0x388   : > { %v1785_v8 = vpop.permute.xlu1 %1784 }
 0x38a   : > { %v5629_v9 = vpop.permute.xlu0 %1734 }
 0x38c   : > { %v5631_v10 = vpop.permute.xlu1 %1760 }
 0x38e   : > { %v5633_v15 = vpop.permute.xlu0 %1686 }
 0x390   : > { %v5635_v20 = vpop.permute.xlu1 %1730 }
 0x392   : > { %v1811_v21 = vpop.permute.xlu0 %1810 }
 0x394   : > { %v5637_v23 = vpop.permute.xlu1 %1706 }
 0x396   : > { %v1787_v24 = vpop.permute.xlu0 %1786 }
 0x398   : > { %v5639_v36 = vpop.permute.xlu1 %1682 }
 0x39a   : > { %v1763_v37 = vpop.permute.xlu0 %1762 }
 0x39c   : > { %v1813_v40 = vpop.permute.xlu1 %1812 }
 0x39e   : > { %v5641_v41 = vpop.permute.xlu0 %1732 }
 0x3a0   : > { %v1765_v42 = vpop.permute.xlu1 %1764 }
 0x3a2   : > { %v5643_v44 = vpop.permute.xlu0 %1708 }
 0x3a4   : > { %v5645_v45 = vpop.permute.xlu1 %1710 }
 0x3a6   : > { %v5647_v47 = vpop.permute.xlu0 %1684 }
 0x3a8   : > { %v1815_v51 = vpop.permute.xlu1 %1814 }
 0x3a9   : > { %v1823_v33 = vsel %vm7809_vm5, %v1811_v21, %v1815_v51 }
 0x3aa   : > { %v1767_v53 = vpop.permute.xlu0 %1766 }
 0x3ac   : > { %v1791_v57 = vpop.permute.xlu1 %1790 }
 0x3ae   : > { %v5649_v58 = vpop.permute.xlu0 %1712 }
 0x3b0   : > { %v5651_v60 = vpop.permute.xlu1 %1736 }
 0x3b2   : > { %v1795_v29 = vpop.permute.xlu0 %1794 }
 0x3b4   : > { %v5653_v63 = vpop.permute.xlu1 %1688 }
 0x3b6   : > { %v5655_v0 = vpop.permute.xlu0 %1740 }
 0x3b8   : > { %v1819_v1 = vpop.permute.xlu1 %1818 }
 0x3b9   : > { %v1821_v5 = vsel %vm7809_vm5, %v1815_v51, %v1819_v1  ;;  %v1825_v30 = vsel %vm7809_vm5, %v1819_v1, %v1811_v21  ;;  %v1822_v1 = vsel %vm7809_vm5, %v1809_v2, %v1813_v40 }
 0x3ba   : > { %v5663_v56 = vpop.permute.xlu0 %1692  ;;  %1932 = vmatprep.subr.mxu0 %v1821_v5  ;;  %2010 = vmatpush1.msra.mxu1 %v1825_v30  ;;  %v1799_v5 = vsel %vm1328_vm14, %v1787_v24, %v1791_v57  ;;  %v1797_v30 = vsel %vm1328_vm14, %v1791_v57, %v1795_v29 }
 0x3bb   : > { %1933 = vmatpush1.msra.mxu0 %v1823_v33  ;;  %2011 = vmatprep.subr.mxu1 %v7860_v17  ;;  %v1801_v33 = vsel %vm1328_vm14, %v1795_v29, %v1787_v24  ;;  %v1775_v29 = vsel %vm1288_vm7, %v1763_v37, %v1767_v53 }
 0x3bc   : > { %v1771_v19 = vpop.permute.xlu1 %1770 }
 0x3bd   : > { %v1773_v51 = vsel %vm1288_vm7, %v1767_v53, %v1771_v19 }
 0x3be   : > { %v1817_v43 = vpop.permute.xlu0 %1816 }
 0x3bf   : > { %v1820_v14 = vsel %vm7809_vm5, %v1813_v40, %v1817_v43  ;;  %v1824_v13 = vsel %vm7809_vm5, %v1817_v43, %v1809_v2 }
 0x3c0   : > { %v5672_v32 = vpop.permute.xlu1 %1716  ;;  %1934 = vmatprep.subr.mxu0 %v1820_v14  ;;  %2012 = vmatpush1.msra.mxu1 %v1824_v13  ;;  %v1798_v14 = vsel %vm1328_vm14, %v1785_v8, %v1789_v3 }
 0x3c1   : > { %1935 = vmatpush1.msra.mxu0 %v1822_v1  ;;  %2013 = vmatprep.subr.mxu1 %v7860_v17  ;;  %v1777_v1 = vsel %vm1288_vm7, %v1771_v19, %v1763_v37 }
 0x3c2   : > { %v5681_v43 = vpop.permute.xlu0 %1660  ;;  %1936 = vmatprep.subr.mxu0 %v1799_v5  ;;  %2014 = vmatpush1.msra.mxu1 %v1797_v30  ;;  %v1774_v5 = vsel %vm1288_vm7, %v5631_v10, %v1765_v42 }
 0x3c3   : > { %1937 = vmatpush1.msra.mxu0 %v1801_v33  ;;  %2015 = vmatprep.subr.mxu1 %v7860_v17 }
 0x3c4   : > { %v5686_v13 = vpop.permute.xlu1 %1664  ;;  %1938 = vmatprep.subr.mxu0 %v1798_v14  ;;  %v1696_v14 = vsel %vm1165_vm13, %v5639_v36, %v5633_v15 }
 0x3c6   : > { %v1769_v2 = vpop.permute.xlu0 %1768 }
 0x3c7   : > { %v1776_v53 = vsel %vm1288_vm7, %v1769_v2, %v5631_v10  ;;  %v1745_v10 = vsel %vm1245_vm0, %v5641_v41, %v5651_v60 }
 0x3c8   : > { %v1793_v21 = vpop.permute.xlu1 %1792 }
 0x3c9   : > { %v1796_v40 = vsel %vm1328_vm14, %v1789_v3, %v1793_v21  ;;  %v1800_v24 = vsel %vm1328_vm14, %v1793_v21, %v1785_v8  ;;  %v1772_v3 = vsel %vm1288_vm7, %v1765_v42, %v1769_v2 }
 0x3ca   : > { %v5694_v57 = vpop.permute.xlu0 %1668  ;;  %1939 = vmatpush1.msra.mxu0 %v1800_v24  ;;  %2016 = vmatpush1.msra.mxu1 %v1796_v40 }
 0x3cb   : > { %1940 = vmatprep.subr.mxu0 %v1773_v51  ;;  %2017 = vmatprep.subr.mxu1 %v7860_v17  ;;  %v1671_v21 = vsel %vm1122_vm12, %v5686_v13, %v5694_v57 }
 0x3cc   : > { %v5703_v8 = vpop.permute.xlu1 %1658  ;;  %1941 = vmatpush1.msra.mxu0 %v1775_v29  ;;  %2018 = vmatpush1.msra.mxu1 %v1777_v1 }
 0x3cd   : > { %1942 = vmatprep.subr.mxu0 %v1772_v3  ;;  %2019 = vmatprep.subr.mxu1 %v7860_v17 }
 0x3ce   : > { %v5712_v19 = vpop.permute.xlu0 %1662  ;;  %1943 = vmatpush1.msra.mxu0 %v1774_v5  ;;  %2020 = vmatpush1.msra.mxu1 %v1776_v53 }
 0x3cf   : > { %1944 = vmatprep.subr.mxu0 %v5545_v50  ;;  %2021 = vmatprep.subr.mxu1 %v7860_v17 }
 0x3d0   : > { %v1739_v37 = vpop.permute.xlu1 %1738  ;;  %1945 = vmatpush1.msra.mxu0 %v5518_v39  ;;  %2022 = vmatpush1.msra.mxu1 %v5561_v59  ;;  %v1743_v39 = vsel %vm1245_vm0, %v5651_v60, %v5655_v0 }
 0x3d1   : > { %1946 = vmatprep.subr.mxu0 %v5505_v25  ;;  %2023 = vmatprep.subr.mxu1 %v7860_v17  ;;  %v1747_v25 = vsel %vm1245_vm0, %v5655_v0, %v5641_v41  ;;  %v1742_v59 = vsel %vm1245_vm0, %v5629_v9, %v1739_v37  ;;  %v1719_v41 = vsel %vm1205_vm11, %v5649_v58, %v5672_v32 }
 0x3d2   : > { %v1715_v42 = vpop.permute.xlu0 %1714  ;;  %1947 = vmatpush1.msra.mxu0 %v5502_v22  ;;  %2024 = vmatpush1.msra.mxu1 %v5576_v62  ;;  %v1744_v22 = vsel %vm1245_vm0, %v5635_v20, %v5629_v9  ;;  %v1746_v62 = vsel %vm1245_vm0, %v1739_v37, %v5635_v20  ;;  %v1721_v9 = vsel %vm1205_vm11, %v5643_v44, %v5649_v58  ;;  %v1858_v37 = vld [vmem:[%s7744_s9 + $0x10] sm:$0xff] }
 0x3d3   : > { %1948 = vmatprep.subr.mxu0 %v1745_v10  ;;  %2025 = vmatprep.subr.mxu1 %v7860_v17  ;;  %v1723_v20 = vsel %vm1205_vm11, %v5672_v32, %v5643_v44  ;;  %v1718_v0 = vsel %vm1205_vm11, %v5645_v45, %v1715_v42  ;;  %v1720_v58 = vsel %vm1205_vm11, %v5637_v23, %v5645_v45 }
 0x3d4   : > { %v1843_v50 = vpop.permute.xlu1 %1842  ;;  %1949 = vmatpush1.msra.mxu0 %v1747_v25  ;;  %2026 = vmatpush1.msra.mxu1 %v1743_v39  ;;  %v1722_v33 = vsel %vm1205_vm11, %v1715_v42, %v5637_v23  ;;  %v1697_v32 = vsel %vm1165_vm13, %v5647_v47, %v5653_v63  ;;  %v1695_v44 = vsel %vm1165_vm13, %v5653_v63, %v5663_v56 }
 0x3d5   : > { %1950 = vmatprep.subr.mxu0 %v1744_v22  ;;  %2027 = vmatprep.subr.mxu1 %v7860_v17  ;;  %v1699_v23 = vsel %vm1165_vm13, %v5663_v56, %v5647_v47  ;;  %v1673_v47 = vsel %vm1122_vm12, %v5681_v43, %v5686_v13 }
 0x3d6   : > { %v1839_v60 = vpop.permute.xlu0 %1838  ;;  %1951 = vmatpush1.msra.mxu0 %v1746_v62  ;;  %2028 = vmatpush1.msra.mxu1 %v1742_v59 }
 0x3d7   : > { %1952 = vmatprep.subr.mxu0 %v1719_v41  ;;  %2029 = vmatprep.subr.mxu1 %v7860_v17  ;;  %v1845_v51 = vsel %vm7811_vm15, %v1839_v60, %v1843_v50 }
 0x3d8   : > { %v1837_v30 = vpop.permute.xlu1 %1836  ;;  %1953 = vmatpush1.msra.mxu0 %v1721_v9  ;;  %2030 = vmatpush1.msra.mxu1 %v1723_v20 }
 0x3d9   : > { %1954 = vmatprep.subr.mxu0 %v1718_v0  ;;  %2031 = vmatprep.subr.mxu1 %v7860_v17 }
 0x3da   : > { %1955 = vmatpush1.msra.mxu0 %v1720_v58  ;;  %2032 = vmatpush1.msra.mxu1 %v1722_v33  ;;  %v1835_v45 = vpop.permute.xlu0 %1834 }
 0x3db   : > { %1956 = vmatprep.subr.mxu0 %v1697_v32  ;;  %2033 = vmatprep.subr.mxu1 %v7860_v17  ;;  %v1849_v29 = vsel %vm7811_vm15, %v1843_v50, %v1835_v45 }
 0x3dc   : > { %v1691_v2 = vpop.permute.xlu1 %1690  ;;  %1957 = vmatpush1.msra.mxu0 %v1699_v23  ;;  %2034 = vmatpush1.msra.mxu1 %v1695_v44 }
 0x3dd   : > { %v1694_v63 = vsel %vm1165_vm13, %v5633_v15, %v1691_v2  ;;  %v1698_v56 = vsel %vm1165_vm13, %v1691_v2, %v5639_v36  ;;  %1958 = vmatprep.subr.mxu0 %v1696_v14  ;;  %2035 = vmatprep.subr.mxu1 %v7860_v17  ;;  %v1675_v15 = vsel %vm1122_vm12, %v5694_v57, %v5681_v43 }
 0x3de   : > { %1959 = vmatpush1.msra.mxu0 %v1698_v56  ;;  %2036 = vmatpush1.msra.mxu1 %v1694_v63  ;;  %v1672_v36 = vsel %vm1122_vm12, %v5703_v8, %v5712_v19  ;;  %v1841_v24 = vpop.permute.xlu0 %1840  ;;  %v1847_v57 = vsel %vm7811_vm15, %v1835_v45, %v1839_v60 }
 0x3df   : > { %1960 = vmatprep.subr.mxu0 %v1673_v47  ;;  %2037 = vmatprep.subr.mxu1 %v7860_v17  ;;  %v1844_v1 = vsel %vm7811_vm15, %v1837_v30, %v1841_v24 }
 0x3e0   : > { %v1667_v40 = vpop.permute.xlu1 %1666  ;;  %1961 = vmatpush1.msra.mxu0 %v1675_v15  ;;  %2038 = vmatpush1.msra.mxu1 %v1671_v21 }
 0x3e1   : > { %v1670_v13 = vsel %vm1122_vm12, %v5712_v19, %v1667_v40  ;;  %v1674_v43 = vsel %vm1122_vm12, %v1667_v40, %v5703_v8  ;;  %1962 = vmatprep.subr.mxu0 %v1672_v36  ;;  %2039 = vmatprep.subr.mxu1 %v7860_v17  ;;  %v1856_v8 = vld [vmem:[%s7744_s9] sm:$0xff]  ;;  %v1859_v19 = vld [vmem:[%s7744_s9 + $0x18] sm:$0xff] }
 0x3e2   : > { %1963 = vmatpush1.msra.mxu0 %v1674_v43  ;;  %2040 = vmatpush1.msra.mxu1 %v1670_v13 }
 0x3e3   : > { %1992 = vmatprep.subr.mxu0 %v1845_v51  ;;  %2069 = vmatprep.subr.mxu1 %v7860_v17 }
 0x3e4   : > { %v1833_v3 = vpop.permute.xlu1 %1832  ;;  %1993 = vmatpush2.msra.mxu0 %v1847_v57  ;;  %2070 = vmatpush2.msra.mxu1 %v1849_v29  ;;  %v782_v57 = vld [vmem:[%s7741_s6] sm:$0x1]  ;;  %v2301_v29 = vld [vmem:[%s7746_s11 + $0x8] sm:$0xff] }
 0x3e5   : > { %v1846_v5 = vsel %vm7811_vm15, %v1833_v3, %v1837_v30  ;;  %v1848_v53 = vsel %vm7811_vm15, %v1841_v24, %v1833_v3  ;;  %1994 = vmatprep.subr.mxu0 %v1844_v1  ;;  %2071 = vmatprep.subr.mxu1 %v7860_v17  ;;  %v854_v1 = vadd.f32 %v5490_v61, %v782_v57 }
 0x3e6   : > { %1995 = vmatpush2.msra.mxu0 %v1846_v5  ;;  %2072 = vmatpush2.msra.mxu1 %v1848_v53 }
 0x3e7   : > { %1997 = vmatmul.mubr.f32.vlgmr.msra.gmra.mxu0 %v1856_v8  ;;  %2074 = vmatmul.mubr.f32.vlgmr.msra.gmra.mxu1 %v1856_v8  ;;  %v857_v3 = vmul.f32 0.01, %v854_v1 }
 0x3e8   : > { %4855 = vmatprep.mubr.msk.f32.mxu0 %vm7810_vm8, %v1859_v19  ;;  %4857 = vmatprep.mubr.msk.f32.mxu1 %vm7810_vm8, %v1859_v19 }
 0x3e9   : > { %2453 = vmatprep.subr.mxu1 %v7860_v17  ;;  %v858_v8 = vmax.f32 %v854_v1, %v857_v3 }
 0x3eb   : > { %2003 = vmatmul.mubr.f32.gmra.mxu0 %v1858_v37  ;;  %2079 = vmatmul.mubr.f32.gmra.mxu1 %v1858_v37  ;;  %v1924_v45 = vpop.permute.xlu0 %1923  ;;  %v880_v61 = vrot.slane %v858_v8, %v5220_v31 }
 0x3ec   : > { %4860 = vmatprep.mubr.msk.f32.mxu1 %vm7810_vm8, %v2301_v29  ;;  %4858 = vmatprep.mubr.msk.f32.mxu0 %vm7810_vm8, %v2301_v29 }
 0x3f1   : > { %v1919_v10 = vpop.permute.xlu1 %1918 }
 0x4a7   : > { %v1998_v42 = vpop.f32.mrf.mxu0  ;;  %v2075_v39 = vpop.f32.mrf.mxu1 }
 0x4a8   : > { %v1999_v25 = vadd.f32 %v1998_v42, %v1919_v10  ;;  %v2076_v22 = vadd.f32 %v2075_v39, %v1919_v10  ;;  %v2358_v42 = vld [vmem:[%s7747_s12] sm:$0xff] }
 0x4a9   : > { %v2000_v50 = vpop.f32.mrf.mxu0  ;;  %v2077_v59 = vpop.f32.mrf.mxu1 }
 0x4aa   : > { %v2084_v62 = vmul.f32 0.01, %v1999_v25  ;;  %v2086_v41 = vmul.f32 0.01, %v2076_v22  ;;  %v2001_v60 = vadd.f32 %v2000_v50, %v1919_v10 }
 0x4ab   : > { %v2080_v9 = vpop.f32.mrf.mxu1  ;;  %v2004_v63 = vpop.f32.mrf.mxu0 }
 0x4ac   : > { %v2090_v20 = vmax.f32 %v1999_v25, %v2084_v62  ;;  %v2092_v0 = vmax.f32 %v2076_v22, %v2086_v41  ;;  %v2085_v30 = vmul.f32 0.01, %v2001_v60  ;;  %v2081_v14 = vadd.f32 %v2080_v9, %v1924_v45  ;;  %v2359_v22 = vld [vmem:[%s7747_s12 + $0x8] sm:$0xff] }
 0x4ad   : > { %v2082_v58 = vpop.f32.mrf.mxu1  ;;  %v2005_v56 = vadd.f32 %v2004_v63, %v1924_v45  ;;  %v2006_v40 = vpop.f32.mrf.mxu0 }
 0x4ae   : > { %v5845_v33 = vmul.f32 %v2090_v20, %v5496_v4  ;;  %v5848_v32 = vmul.f32 %v2092_v0, %v5556_v26  ;;  %v2091_v44 = vmax.f32 %v2001_v60, %v2085_v30  ;;  %v2089_v2 = vmul.f32 0.01, %v2081_v14 }
 0x4af   : > { %v2087_v21 = vmul.f32 0.01, %v2005_v56  ;;  %v2007_v24 = vadd.f32 %v2006_v40, %v1924_v45 }
 0x4b0   : > { %2198 = vst [vmem:[#allocation3 + $0xc0] sm:$0xff] %v5845_v33  ;;  %2200 = vst [vmem:[#allocation3 + $0xd0] sm:$0xff] %v5848_v32  ;;  %v5853_v23 = vmul.f32 %v2091_v44, %v5499_v12  ;;  %2236 = vrot.lane.b32.xlu1 %v5848_v32, %s5010_s27  ;;  %2260 = vrot.lane.b32.xlu0 %v5848_v32, %s7801_s28 }
 0x4b1   : > { %v2093_v15 = vmax.f32 %v2005_v56, %v2087_v21  ;;  %v2088_v13 = vmul.f32 0.01, %v2007_v24 }
 0x4b2   : > { %2199 = vst [vmem:[#allocation3 + $0xc8] sm:$0xff] %v5853_v23 }
 0x4b3   : > { %2869 = vst.msk [vmem:[#allocation3 + $0xc6] ss:$8 sm:$0x7] %vm5295_vm6, %v5435_v7  ;;  %v2095_v7 = vmax.f32 %v2081_v14, %v2089_v2  ;;  %v5895_v36 = vmul.f32 %v2093_v15, %v5496_v4  ;;  %v2094_v43 = vmax.f32 %v2007_v24, %v2088_v13 }
 0x4b4   : > { %2182 = vrot.lane.b32.xlu1 %v5848_v32, %s5008_s18  ;;  %2212 = vrot.lane.b32.xlu0 %v5848_v32, %s5009_s26 }
 0x4b5   : > { %v5880_v47 = vmul.f32 %v2095_v7, %v5556_v26  ;;  %v5922_v51 = vmul.f32 %v2094_v43, %v5499_v12 }
 0x4b8   : > { %2158 = vrot.lane.b32.xlu0 %v5848_v32, %s7805_s29  ;;  %2252 = vrot.lane.b32.xlu1 %v5845_v33, %s7801_s28 }
 0x4bc   : > { %2232 = vrot.lane.b32.xlu0 %v5853_v23, %s5010_s27  ;;  %2228 = vrot.lane.b32.xlu1 %v5845_v33, %s5010_s27 }
 0x4c0   : > { %2178 = vrot.lane.b32.xlu0 %v5853_v23, %s5008_s18  ;;  %2204 = vrot.lane.b32.xlu1 %v5845_v33, %s5009_s26 }
 0x4c4   : > { %2238 = vrot.lane.b32.xlu0 %v5880_v47, %s5010_s27  ;;  %2174 = vrot.lane.b32.xlu1 %v5845_v33, %s5008_s18 }
 0x4c8   : > { %2184 = vrot.lane.b32.xlu0 %v5880_v47, %s5008_s18  ;;  %2150 = vrot.lane.b32.xlu1 %v5845_v33, %s7805_s29 }
 0x4cc   : > { %2136 = vrot.lane.b32.xlu0 %v5880_v47, %s7803_s4  ;;  %2126 = vrot.lane.b32.xlu1 %v5845_v33, %s7803_s4 }
 0x4d0   : > { %2254 = vrot.lane.b32.xlu0 %v5895_v36, %s7801_s28  ;;  %2256 = vrot.lane.b32.xlu1 %v5853_v23, %s7801_s28 }
 0x4d4   : > { %2230 = vrot.lane.b32.xlu0 %v5895_v36, %s5010_s27  ;;  %2208 = vrot.lane.b32.xlu1 %v5853_v23, %s5009_s26 }
 0x4d8   : > { %2206 = vrot.lane.b32.xlu0 %v5895_v36, %s5009_s26  ;;  %2154 = vrot.lane.b32.xlu1 %v5853_v23, %s7805_s29 }
 0x4dc   : > { %2176 = vrot.lane.b32.xlu0 %v5895_v36, %s5008_s18  ;;  %2262 = vrot.lane.b32.xlu1 %v5880_v47, %s7801_s28 }
 0x4e0   : > { %2152 = vrot.lane.b32.xlu0 %v5895_v36, %s7805_s29  ;;  %2214 = vrot.lane.b32.xlu1 %v5880_v47, %s5009_s26 }
 0x4e4   : > { %2128 = vrot.lane.b32.xlu0 %v5895_v36, %s7803_s4  ;;  %2160 = vrot.lane.b32.xlu1 %v5880_v47, %s7805_s29 }
 0x4e8   : > { %2258 = vrot.lane.b32.xlu0 %v5922_v51, %s7801_s28  ;;  %2134 = vrot.lane.b32.xlu1 %v5848_v32, %s7803_s4  ;;  %s7866_s28 = smov 6  }
 0x4ec   : > { %2130 = vrot.lane.b32.xlu0 %v5853_v23, %s7803_s4  ;;  %2234 = vrot.lane.b32.xlu1 %v5922_v51, %s5010_s27 }
 0x4f0   : > { %2210 = vrot.lane.b32.xlu0 %v5922_v51, %s5009_s26  ;;  %2102 = vrot.lane.b32.xlu1 %v5845_v33, %s7812_s0 }
 0x4f4   : > { %2104 = vrot.lane.b32.xlu0 %v5895_v36, %s7812_s0  ;;  %2180 = vrot.lane.b32.xlu1 %v5922_v51, %s5008_s18 }
 0x4f8   : > { %2112 = vrot.lane.b32.xlu0 %v5880_v47, %s7812_s0  ;;  %2110 = vrot.lane.b32.xlu1 %v5848_v32, %s7812_s0 }
 0x4fc   : > { %2156 = vrot.lane.b32.xlu0 %v5922_v51, %s7805_s29  ;;  %2286 = vrot.lane.b32.xlu1 %v5880_v47, %s7807_s30  ;;  %s7868_s29 = smov 44  }
 0x500   : > { %2106 = vrot.lane.b32.xlu0 %v5853_v23, %s7812_s0  ;;  %2132 = vrot.lane.b32.xlu1 %v5922_v51, %s7803_s4  ;;  %s7867_s4 = smov 25  }
 0x504   : > { %2278 = vrot.lane.b32.xlu0 %v5895_v36, %s7807_s30  ;;  %2108 = vrot.lane.b32.xlu1 %v5922_v51, %s7812_s0 }
 0x508   : > { %2282 = vrot.lane.b32.xlu0 %v5922_v51, %s7807_s30  ;;  %2280 = vrot.lane.b32.xlu1 %v5853_v23, %s7807_s30 }
 0x50c   : > { %2284 = vrot.lane.b32.xlu0 %v5848_v32, %s7807_s30  ;;  %2276 = vrot.lane.b32.xlu1 %v5845_v33, %s7807_s30  ;;  %s7869_s30 = smov 63  }
 0x510   : > { %881 = vrot.lane.b32.xlu0 %v880_v61, %s7812_s0  ;;  %892 = vrot.lane.b32.xlu1 %v880_v61, %s7861_s2  ;;  %s7870_s2 = smov 120  }
 0x514   : > { %902 = vrot.lane.b32.xlu0 %v880_v61, %s7862_s25  ;;  %946 = vrot.lane.b32.xlu1 %v880_v61, %s7863_s21  ;;  %s7871_s25 = smov 82   ;;  %s7872_s21 = smov 101  }
 0x518   : > { %913 = vrot.lane.b32.xlu0 %v880_v61, %s7864_s22  ;;  %930 = vrot.lane.b32.xlu1 %v880_v61, %s7865_s1  ;;  %s7876_s1 = smov 68  }
 0x51c   : > { %958 = vrot.lane.b32.xlu0 %v880_v61, %s7866_s28  ;;  %969 = vrot.lane.b32.xlu1 %v880_v61, %s7867_s4  ;;  %s7873_s28 = smov 11   ;;  %s7874_s4 = smov 30  }
 0x520   : > { %986 = vrot.lane.b32.xlu0 %v880_v61, %s7868_s29  ;;  %997 = vrot.lane.b32.xlu1 %v880_v61, %s7869_s30  ;;  %s7875_s30 = smov 49   ;;  %s5014_s29 = smov 89  }
 0x522   : > { %v5984_v31 = vpop.permute.xlu1 %2236  ;;  %v5986_v5 = vpop.permute.xlu0 %2260 }
 0x524   : > { %1040 = vrot.lane.b32.xlu0 %v880_v61, %s7870_s2  ;;  %1007 = vrot.lane.b32.xlu1 %v880_v61, %s7871_s25  ;;  %s7891_s2 = smov 1   ;;  %s7892_s25 = smov 108  }
 0x526   : > { %v2183_v53 = vpop.permute.xlu1 %2182  ;;  %v5990_v19 = vpop.permute.xlu0 %2212 }
 0x528   : > { %1018 = vrot.lane.b32.xlu0 %v880_v61, %s7872_s21  ;;  %1053 = vrot.lane.b32.xlu1 %v880_v61, %s7873_s28  ;;  %s7896_s21 = smov 127  }
 0x52a   : > { %v2159_v37 = vpop.permute.xlu0 %2158  ;;  %v5994_v10 = vpop.permute.xlu1 %2252 }
 0x52b   : > { %v2268_v57 = vsel %vm7809_vm5, %v5986_v5, %v5994_v10 }
 0x52c   : > { %1063 = vrot.lane.b32.xlu0 %v880_v61, %s7874_s4  ;;  %1074 = vrot.lane.b32.xlu1 %v880_v61, %s7875_s30  ;;  %s5017_s30 = smov 122   ;;  %s5023_s4 = smov 117  }
 0x52e   : > { %v6001_v39 = vpop.permute.xlu0 %2232  ;;  %v6003_v25 = vpop.permute.xlu1 %2228 }
 0x530   : > { %1091 = vrot.lane.b32.xlu0 %v880_v61, %s7876_s1  ;;  %2362 = vperm.xlu1 %4969, %v2358_v42   ;;  %s7890_s1 = smov 110  }
 0x532   : > { %v2179_v50 = vpop.permute.xlu0 %2178  ;;  %v6009_v59 = vpop.permute.xlu1 %2204 }
 0x533   : > { %v6013_v62 = vsel %vm1245_vm0, %v2179_v50, %v2183_v53 }
 0x534   : > { %2194 = vst [vmem:[#allocation3 + $0xa0] sm:$0xff] %v6013_v62  ;;  %2367 = vperm.xlu0 %4970, %v2359_v22  }
 0x536   : > { %v2239_v41 = vpop.permute.xlu0 %2238  ;;  %v2175_v60 = vpop.permute.xlu1 %2174 }
 0x537   : > { %v6018_v9 = vsel %vm1245_vm0, %v2175_v60, %v2179_v50  ;;  %v6022_v20 = vsel %vm1245_vm0, %v2183_v53, %v2175_v60 }
 0x538   : > { %2192 = vst [vmem:[#allocation3 + $0x90] sm:$0xff] %v6022_v20  ;;  %2193 = vst [vmem:[#allocation3 + $0x98] sm:$0xff] %v6018_v9 }
 0x539   : > { %2775 = vst.msk [vmem:[#allocation3 + $0x94] ss:$8 sm:$0x7] %vm5295_vm6, %v5414_v54 }
 0x53a   : > { %v6029_v0 = vpop.permute.xlu0 %2184  ;;  %v2151_v30 = vpop.permute.xlu1 %2150 }
 0x53b   : > { %v6033_v58 = vsel %vm1205_vm11, %v2159_v37, %v2151_v30 }
 0x53c   : > { %2170 = vst [vmem:[#allocation3 + $0x70] sm:$0xff] %v6033_v58 }
 0x53e   : > { %v6036_v44 = vpop.permute.xlu0 %2136  ;;  %v2127_v45 = vpop.permute.xlu1 %2126 }
 0x542   : > { %v2255_v14 = vpop.permute.xlu0 %2254  ;;  %v2257_v2 = vpop.permute.xlu1 %2256 }
 0x543   : > { %v2264_v50 = vsel %vm7809_vm5, %v2257_v2, %v5986_v5  ;;  %v2266_v60 = vsel %vm7809_vm5, %v5994_v10, %v2257_v2  ;;  %v2240_v10 = vsel %vm1328_vm14, %v6001_v39, %v5984_v31 }
 0x546   : > { %v2231_v7 = vpop.permute.xlu0 %2230  ;;  %v6038_v63 = vpop.permute.xlu1 %2208 }
 0x547   : > { %v2245_v54 = vsel %vm1328_vm14, %v2239_v41, %v2231_v7 }
 0x548   : > { %2249 = vst [vmem:[#allocation3 + $0x138] sm:$0xff] %v2245_v54 }
 0x54a   : > { %v2207_v56 = vpop.permute.xlu0 %2206  ;;  %v2155_v21 = vpop.permute.xlu1 %2154 }
 0x54b   : > { %v6044_v15 = vsel %vm1205_vm11, %v2155_v21, %v2159_v37  ;;  %v6048_v40 = vsel %vm1205_vm11, %v2151_v30, %v2155_v21 }
 0x54c   : > { %2168 = vst [vmem:[#allocation3 + $0x60] sm:$0xff] %v6048_v40  ;;  %2169 = vst [vmem:[#allocation3 + $0x68] sm:$0xff] %v6044_v15 }
 0x54d   : > { %2681 = vst.msk [vmem:[#allocation3 + $0x62] ss:$8 sm:$0x7] %vm5295_vm6, %v5405_v46 }
 0x54e   : > { %v6055_v24 = vpop.permute.xlu0 %2176  ;;  %v2263_v13 = vpop.permute.xlu1 %2262 }
 0x54f   : > { %v2269_v43 = vsel %vm7809_vm5, %v2263_v13, %v2255_v14 }
 0x550   : > { %2275 = vst [vmem:[#allocation3 + $0x178] sm:$0xff] %v2269_v43  ;;  %2454 = vmatpush1.msra.mxu1 %v2269_v43 }
 0x551   : > { %2455 = vmatprep.subr.mxu1 %v7860_v17 }
 0x552   : > { %v6064_v29 = vpop.permute.xlu0 %2152  ;;  %v2215_v1 = vpop.permute.xlu1 %2214  ;;  %2456 = vmatpush1.msra.mxu1 %v2268_v57 }
 0x553   : > { %v2221_v46 = vsel %vm1288_vm7, %v2215_v1, %v2207_v56  ;;  %2457 = vmatprep.subr.mxu1 %v7860_v17 }
 0x554   : > { %2227 = vst [vmem:[#allocation3 + $0x118] sm:$0xff] %v2221_v46 }
 0x556   : > { %v6069_v3 = vpop.permute.xlu0 %2128  ;;  %v6071_v8 = vpop.permute.xlu1 %2160 }
 0x55a   : > { %v2259_v61 = vpop.permute.xlu0 %2258  ;;  %v2135_v53 = vpop.permute.xlu1 %2134 }
 0x55b   : > { %v2265_v37 = vsel %vm7809_vm5, %v2259_v61, %v2263_v13  ;;  %v2267_v42 = vsel %vm7809_vm5, %v2255_v14, %v2259_v61  ;;  %v6079_v22 = vsel %vm1165_vm13, %v2135_v53, %v2127_v45  ;;  %vm7877_vm5 = vcmask 941056  }
 0x55c   : > { %2273 = vst [vmem:[#allocation3 + $0x168] sm:$0xff] %v2267_v42  ;;  %2274 = vst [vmem:[#allocation3 + $0x170] sm:$0xff] %v2265_v37  ;;  %2376 = vmatprep.subr.mxu0 %v2265_v37 }
 0x55d   : > { %2144 = vst [vmem:[#allocation3 + $0x30] sm:$0xff] %v6079_v22  ;;  %2377 = vmatpush1.msra.mxu0 %v2267_v42  ;;  %3067 = vst.msk [vmem:[#allocation3 + $0x16c] ss:$8 sm:$0x7] %vm5295_vm6, %v5465_v49 }
 0x55e   : > { %v2131_v30 = vpop.permute.xlu0 %2130  ;;  %v2235_v14 = vpop.permute.xlu1 %2234  ;;  %2378 = vmatprep.subr.mxu0 %v2264_v50 }
 0x55f   : > { %v6093_v21 = vsel %vm1165_vm13, %v2131_v30, %v2135_v53  ;;  %v6097_v13 = vsel %vm1165_vm13, %v2127_v45, %v2131_v30  ;;  %v2241_v5 = vsel %vm1328_vm14, %v2235_v14, %v2239_v41  ;;  %v2243_v49 = vsel %vm1328_vm14, %v2231_v7, %v2235_v14  ;;  %2379 = vmatpush1.msra.mxu0 %v2266_v60 }
 0x560   : > { %2145 = vst [vmem:[#allocation3 + $0x38] sm:$0xff] %v6097_v13  ;;  %2146 = vst [vmem:[#allocation3 + $0x40] sm:$0xff] %v6093_v21  ;;  %2380 = vmatprep.subr.mxu0 %v2243_v49  ;;  %2458 = vmatpush1.msra.mxu1 %v2241_v5  ;;  %v2242_v41 = vsel %vm1328_vm14, %v6003_v25, %v6001_v39  ;;  %v2244_v45 = vsel %vm1328_vm14, %v5984_v31, %v6003_v25 }
 0x561   : > { %2250 = vst [vmem:[#allocation3 + $0x140] sm:$0xff] %v2243_v49  ;;  %2251 = vst [vmem:[#allocation3 + $0x148] sm:$0xff] %v2241_v5  ;;  %2381 = vmatpush1.msra.mxu0 %v2245_v54  ;;  %2459 = vmatprep.subr.mxu1 %v7860_v17  ;;  %v2216_v31 = vsel %vm1288_vm7, %v6038_v63, %v5990_v19  ;;  %v2218_v25 = vsel %vm1288_vm7, %v6009_v59, %v6038_v63 }
 0x562   : > { %2974 = vst.msk [vmem:[#allocation3 + $0x13a] ss:$8 sm:$0x7] %vm5295_vm6, %v5444_v16  ;;  %2571 = vst.msk [vmem:[#allocation3 + $0x30] ss:$8 sm:$0x7] %vm5295_vm6, %v5384_v11  ;;  %v2211_v2 = vpop.permute.xlu0 %2210  ;;  %v6124_v7 = vpop.permute.xlu1 %2102  ;;  %2382 = vmatprep.subr.mxu0 %v2242_v41  ;;  %2460 = vmatpush1.msra.mxu1 %v2240_v10  ;;  %v2220_v11 = vsel %vm1288_vm7, %v5990_v19, %v6009_v59 }
 0x563   : > { %v2217_v39 = vsel %vm1288_vm7, %v2211_v2, %v2215_v1  ;;  %v2219_v16 = vsel %vm1288_vm7, %v2207_v56, %v2211_v2  ;;  %2383 = vmatpush1.msra.mxu0 %v2244_v45  ;;  %2461 = vmatprep.subr.mxu1 %v7860_v17 }
 0x564   : > { %2225 = vst [vmem:[#allocation3 + $0x108] sm:$0xff] %v2219_v16  ;;  %2226 = vst [vmem:[#allocation3 + $0x110] sm:$0xff] %v2217_v39  ;;  %2384 = vmatprep.subr.mxu0 %v2217_v39  ;;  %2462 = vmatpush1.msra.mxu1 %v2221_v46 }
 0x565   : > { %2385 = vmatpush1.msra.mxu0 %v2219_v16  ;;  %2917 = vst.msk [vmem:[#allocation3 + $0x108] ss:$8 sm:$0x7] %vm5295_vm6, %v5299_v35  ;;  %2463 = vmatprep.subr.mxu1 %v7860_v17 }
 0x566   : > { %v2105_v54 = vpop.permute.xlu0 %2104  ;;  %v2181_v56 = vpop.permute.xlu1 %2180  ;;  %2386 = vmatprep.subr.mxu0 %v2216_v31  ;;  %2464 = vmatpush1.msra.mxu1 %v2220_v11 }
 0x567   : > { %2387 = vmatpush1.msra.mxu0 %v2218_v25  ;;  %2465 = vmatprep.subr.mxu1 %v7860_v17  ;;  %v2187_v59 = vsel %vm1245_vm0, %v2181_v56, %v6029_v0 }
 0x568   : > { %2388 = vmatprep.subr.mxu0 %v5922_v51  ;;  %2466 = vmatpush1.msra.mxu1 %v5880_v47  ;;  %v2189_v51 = vsel %vm1245_vm0, %v6055_v24, %v2181_v56  ;;  %v2191_v47 = vsel %vm1245_vm0, %v6029_v0, %v6055_v24  ;;  %v2143_v24 = vsel %vm1165_vm13, %v6036_v44, %v6069_v3 }
 0x569   : > { %2389 = vmatpush1.msra.mxu0 %v5895_v36  ;;  %2467 = vmatprep.subr.mxu1 %v7860_v17 }
 0x56a   : > { %v2113_v35 = vpop.permute.xlu0 %2112  ;;  %v2111_v19 = vpop.permute.xlu1 %2110  ;;  %2390 = vmatprep.subr.mxu0 %v5853_v23  ;;  %2468 = vmatpush1.msra.mxu1 %v5848_v32 }
 0x56b   : > { %2391 = vmatpush1.msra.mxu0 %v5845_v33  ;;  %2469 = vmatprep.subr.mxu1 %v7860_v17  ;;  %v2167_v33 = vsel %vm1205_vm11, %v6071_v8, %v6064_v29  ;;  %v2119_v57 = vsel %vm1122_vm12, %v2113_v35, %v2105_v54  ;;  %v2118_v1 = vsel %vm1122_vm12, %v2111_v19, %v6124_v7 }
 0x56c   : > { %2392 = vmatprep.subr.mxu0 %v2189_v51  ;;  %2470 = vmatpush1.msra.mxu1 %v2187_v59 }
 0x56d   : > { %2393 = vmatpush1.msra.mxu0 %v2191_v47  ;;  %2471 = vmatprep.subr.mxu1 %v7860_v17 }
 0x56e   : > { %v2157_v32 = vpop.permute.xlu0 %2156  ;;  %v2287_v23 = vpop.permute.xlu1 %2286  ;;  %2472 = vmatpush1.msra.mxu1 %v6013_v62  ;;  %2394 = vmatprep.subr.mxu0 %v6018_v9 }
 0x56f   : > { %v2163_v36 = vsel %vm1205_vm11, %v2157_v32, %v6071_v8  ;;  %v2165_v0 = vsel %vm1205_vm11, %v6064_v29, %v2157_v32  ;;  %2395 = vmatpush1.msra.mxu0 %v6022_v20  ;;  %2473 = vmatprep.subr.mxu1 %v7860_v17 }
 0x570   : > { %2396 = vmatprep.subr.mxu0 %v2163_v36  ;;  %2474 = vmatpush1.msra.mxu1 %v2167_v33 }
 0x571   : > { %2397 = vmatpush1.msra.mxu0 %v2165_v0  ;;  %2475 = vmatprep.subr.mxu1 %v7860_v17 }
 0x572   : > { %v2107_v62 = vpop.permute.xlu0 %2106  ;;  %v2133_v9 = vpop.permute.xlu1 %2132  ;;  %2476 = vmatpush1.msra.mxu1 %v6033_v58  ;;  %2398 = vmatprep.subr.mxu0 %v6044_v15 }
 0x573   : > { %v2139_v63 = vsel %vm1165_vm13, %v2133_v9, %v6036_v44  ;;  %v2141_v20 = vsel %vm1165_vm13, %v6069_v3, %v2133_v9  ;;  %2399 = vmatpush1.msra.mxu0 %v6048_v40  ;;  %2477 = vmatprep.subr.mxu1 %v7860_v17  ;;  %v2116_v29 = vsel %vm1122_vm12, %v6124_v7, %v2107_v62 }
 0x574   : > { %2400 = vmatprep.subr.mxu0 %v2141_v20  ;;  %2478 = vmatpush1.msra.mxu1 %v2139_v63  ;;  %v2114_v46 = vsel %vm1122_vm12, %v2107_v62, %v2111_v19 }
 0x575   : > { %2401 = vmatpush1.msra.mxu0 %v2143_v24  ;;  %2479 = vmatprep.subr.mxu1 %v7860_v17 }
 0x576   : > { %v2279_v58 = vpop.permute.xlu0 %2278  ;;  %v2109_v15 = vpop.permute.xlu1 %2108  ;;  %2402 = vmatprep.subr.mxu0 %v6097_v13  ;;  %2480 = vmatpush1.msra.mxu1 %v6093_v21  ;;  %v2302_v13 = vld [vmem:[%s7746_s11 + $0x10] sm:$0xff] }
 0x577   : > { %v2293_v43 = vsel %vm7811_vm15, %v2287_v23, %v2279_v58  ;;  %v2115_v40 = vsel %vm1122_vm12, %v2109_v15, %v2113_v35  ;;  %v2117_v44 = vsel %vm1122_vm12, %v2105_v54, %v2109_v15  ;;  %2403 = vmatpush1.msra.mxu0 %v6079_v22  ;;  %2481 = vmatprep.subr.mxu1 %v7860_v17  ;;  %v2300_v22 = vld [vmem:[%s7746_s11] sm:$0xff] }
 0x578   : > { %2299 = vst [vmem:[#allocation3 + $0x1a8] sm:$0xff] %v2293_v43  ;;  %2404 = vmatprep.subr.mxu0 %v2117_v44  ;;  %2482 = vmatpush1.msra.mxu1 %v2115_v40 }
 0x579   : > { %2405 = vmatpush1.msra.mxu0 %v2119_v57  ;;  %2483 = vmatprep.subr.mxu1 %v7860_v17 }
 0x57a   : > { %v2283_v3 = vpop.permute.xlu0 %2282  ;;  %v2281_v8 = vpop.permute.xlu1 %2280  ;;  %2406 = vmatprep.subr.mxu0 %v2116_v29  ;;  %2484 = vmatpush1.msra.mxu1 %v2114_v46 }
 0x57b   : > { %v2289_v61 = vsel %vm7811_vm15, %v2283_v3, %v2287_v23  ;;  %v2291_v53 = vsel %vm7811_vm15, %v2279_v58, %v2283_v3  ;;  %2407 = vmatpush1.msra.mxu0 %v2118_v1  ;;  %2513 = vmatprep.subr.mxu1 %v7860_v17 }
 0x57c   : > { %2297 = vst [vmem:[#allocation3 + $0x198] sm:$0xff] %v2291_v53  ;;  %2298 = vst [vmem:[#allocation3 + $0x1a0] sm:$0xff] %v2289_v61  ;;  %2436 = vmatprep.subr.mxu0 %v2289_v61  ;;  %2514 = vmatpush2.msra.mxu1 %v2293_v43 }
 0x57d   : > { %2437 = vmatpush2.msra.mxu0 %v2291_v53  ;;  %3160 = vst.msk [vmem:[#allocation3 + $0x19e] ss:$8 sm:$0x7] %vm5295_vm6, %v5473_v55  ;;  %2515 = vmatprep.subr.mxu1 %v7860_v17  ;;  %v2303_v55 = vld [vmem:[%s7746_s11 + $0x18] sm:$0xff] }
 0x57e   : > { %v2285_v37 = vpop.permute.xlu0 %2284  ;;  %v2277_v42 = vpop.permute.xlu1 %2276 }
 0x57f   : > { %v2288_v50 = vsel %vm7811_vm15, %v2281_v8, %v2285_v37  ;;  %v2290_v60 = vsel %vm7811_vm15, %v2277_v42, %v2281_v8  ;;  %v2292_v30 = vsel %vm7811_vm15, %v2285_v37, %v2277_v42  ;;  %vm7882_vm15 = vcmask 647672  }
 0x580   : > { %2438 = vmatprep.subr.mxu0 %v2288_v50  ;;  %2516 = vmatpush2.msra.mxu1 %v2292_v30 }
 0x581   : > { %2439 = vmatpush2.msra.mxu0 %v2290_v60  ;;  %2518 = vmatmul.mubr.f32.vlgmr.msra.gmra.mxu1 %v2300_v22 }
 0x582   : > { %v882_v14 = vpop.permute.xlu0 %881  ;;  %v893_v21 = vpop.permute.xlu1 %892  ;;  %2441 = vmatmul.mubr.f32.vlgmr.msra.gmra.mxu0 %v2300_v22  ;;  %4861 = vmatprep.mubr.msk.f32.mxu1 %vm7810_vm8, %v2303_v55 }
 0x583   : > { %884 = vst.msk [vmem:[#allocation2 + $0x1] sm:$0x1] %vm871_vm1, %v882_v14  ;;  %4859 = vmatprep.mubr.msk.f32.mxu0 %vm7810_vm8, %v2303_v55  ;;  %3433 = vmatprep.subr.mxu1 %v7860_v17  ;;  %vm7878_vm1 = vcmask 918272   ;;  %vm7880_vm8 = vcmask 336072  }
 0x584   : > { %895 = vst.msk [vmem:[#allocation2 + $0x1] sm:$0x1] %vm890_vm2, %v893_v21  ;;  %vm7879_vm2 = vcmask 180272  }
 0x585   : > { %2523 = vmatmul.mubr.f32.gmra.mxu1 %v2302_v13 }
 0x586   : > { %v903_v5 = vpop.permute.xlu0 %902  ;;  %v947_v49 = vpop.permute.xlu1 %946  ;;  %2447 = vmatmul.mubr.f32.gmra.mxu0 %v2302_v13 }
 0x587   : > { %905 = vst.msk [vmem:[#allocation2 + $0x1] sm:$0x1] %vm900_vm3, %v903_v5  ;;  %v948_v10 = vrot.slane %v947_v49, 6  ;;  %vm7881_vm3 = vcmask 491872  }
 0x589   : > { %v949_v2 = vsel %vm7877_vm5, %v948_v10, %v947_v49  ;;  %vm7884_vm5 = vcmask 982016  }
 0x58a   : > { %v914_v41 = vpop.permute.xlu0 %913  ;;  %v931_v45 = vpop.permute.xlu1 %930 }
 0x58b   : > { %916 = vst.msk [vmem:[#allocation2 + $0x1] sm:$0x1] %vm911_vm4, %v914_v41  ;;  %vm7883_vm4 = vcmask 803472  }
 0x58c   : > { %933 = vst.msk [vmem:[#allocation2 + $0x1] sm:$0x1] %vm7878_vm1, %v931_v45  ;;  %vm7887_vm1 = vcmask 377072  }
 0x58d   : > { %951 = vst.msk [vmem:[#allocation2 + $0x1] sm:$0x5] %vm5264_vm9, %v949_v2  ;;  %vm7885_vm9 = vcmask 959272  }
 0x58e   : > { %v959_v7 = vpop.permute.xlu0 %958  ;;  %v970_v39 = vpop.permute.xlu1 %969 }
 0x58f   : > { %961 = vst.msk [vmem:[#allocation2 + $0x3] sm:$0x1] %vm7879_vm2, %v959_v7  ;;  %vm7889_vm2 = vcmask 688672  }
 0x590   : > { %972 = vst.msk [vmem:[#allocation2 + $0x3] sm:$0x1] %vm7880_vm8, %v970_v39  ;;  %vm7886_vm8 = vcmask 221272  }
 0x592   : > { %v987_v16 = vpop.permute.xlu0 %986  ;;  %v998_v11 = vpop.permute.xlu1 %997 }
 0x593   : > { %989 = vst.msk [vmem:[#allocation2 + $0x3] sm:$0x1] %vm7881_vm3, %v987_v16 }
 0x594   : > { %1000 = vst.msk [vmem:[#allocation2 + $0x3] sm:$0x1] %vm7882_vm15, %v998_v11  ;;  %vm7888_vm15 = vcmask 532872  }
 0x596   : > { %v1041_v31 = vpop.permute.xlu0 %1040  ;;  %v1008_v25 = vpop.permute.xlu1 %1007 }
 0x597   : > { %v1042_v54 = vrot.slane %v1041_v31, 6  ;;  %1010 = vst.msk [vmem:[#allocation2 + $0x3] sm:$0x1] %vm7883_vm4, %v1008_v25 }
 0x599   : > { %v1043_v35 = vsel %vm7884_vm5, %v1042_v54, %v1041_v31  ;;  %vm3349_vm5 = vcmask 326656  }
 0x59a   : > { %v1019_v56 = vpop.permute.xlu0 %1018  ;;  %v1054_v6 = vpop.permute.xlu1 %1053 }
 0x59b   : > { %1021 = vst.msk [vmem:[#allocation2 + $0x3] sm:$0x1] %vm7885_vm9, %v1019_v56  ;;  %vm7897_vm9 = vcmp.lt.s32.totalorder %v5354_v48, 127 }
 0x59c   : > { %1045 = vst.msk [vmem:[#allocation2 + $0x3] sm:$0x5] %vm5276_vm10, %v1043_v35  ;;  %vm7893_vm10 = vcmp.lt.s32.totalorder %v5354_v48, 108 }
 0x59d   : > { %1056 = vst.msk [vmem:[#allocation2 + $0x5] sm:$0x1] %vm7886_vm8, %v1054_v6  ;;  %vm7894_vm3 = vmmov %vm7893_vm10 }
 0x59e   : > { %v1064_v19 = vpop.permute.xlu0 %1063  ;;  %v1075_v59 = vpop.permute.xlu1 %1074  ;;  %vm7895_vm4 = vmmov %vm7894_vm3 }
 0x59f   : > { %1066 = vst.msk [vmem:[#allocation2 + $0x5] sm:$0x1] %vm7887_vm1, %v1064_v19  ;;  %vm7898_vm8 = vmmov %vm7897_vm9 }
 0x5a0   : > { %1077 = vst.msk [vmem:[#allocation2 + $0x5] sm:$0x1] %vm7888_vm15, %v1075_v59  ;;  %vm7899_vm1 = vmmov %vm7898_vm8  ;;  %vm2746_vm15 = vcmask 1043456  }
 0x5a2   : > { %v1092_v51 = vpop.permute.xlu0 %1091 }
 0x5a3   : > { %1094 = vst.msk [vmem:[#allocation2 + $0x5] sm:$0x1] %vm7889_vm2, %v1092_v51  ;;  %vm2652_vm2 = vcmask 1041408  }
 0x5aa   : > { %v1097_v47 = vld [vmem:[#allocation2 + $0x1] ss:$2 sm:$0x7] }
 0x5ab   : > { %2920 = vst.msk [vmem:[#allocation3 + $0x109] ss:$8 sm:$0x7] %vm5295_vm6, %v1097_v47  ;;  %v6269_v32 = vrot.slane %v1097_v47, %v5292_v28  ;;  %v6272_v18 = vrot.slane %v1097_v47, %v5289_v27  ;;  %v6279_v23 = vrot.slane %v1097_v47, %v5309_v38  ;;  %v6319_v33 = vpop.permute.xlu1 %2362 }
 0x5ad   : > { %3071 = vrot.lane.b32.xlu0 %v6269_v32, %s5010_s27  ;;  %3069 = vrot.lane.b32.xlu1 %v6272_v18, %s5010_s27 }
 0x5af   : > { %v6321_v36 = vpop.permute.xlu0 %2367 }
 0x5b1   : > { %2976 = vrot.lane.b32.xlu0 %v6272_v18, %s5009_s26  ;;  %3073 = vrot.lane.b32.xlu1 %v6279_v23, %s5010_s27 }
 0x5b5   : > { %2980 = vrot.lane.b32.xlu0 %v6279_v23, %s5009_s26  ;;  %2978 = vrot.lane.b32.xlu1 %v6269_v32, %s5009_s26 }
 0x5b9   : > { %2871 = vrot.lane.b32.xlu0 %v6272_v18, %s5008_s18  ;;  %2873 = vrot.lane.b32.xlu1 %v6269_v32, %s5008_s18 }
 0x5bd   : > { %2875 = vrot.lane.b32.xlu0 %v6279_v23, %s5008_s18  ;;  %2777 = vrot.lane.b32.xlu1 %v6272_v18, %s7890_s1 }
 0x5c1   : > { %2779 = vrot.lane.b32.xlu0 %v6269_v32, %s7890_s1  ;;  %2781 = vrot.lane.b32.xlu1 %v6279_v23, %s7890_s1 }
 0x5c5   : > { %2685 = vrot.lane.b32.xlu0 %v6269_v32, %s7891_s2  ;;  %2683 = vrot.lane.b32.xlu1 %v6272_v18, %s7891_s2 }
 0x5c9   : > { %2589 = vrot.lane.b32.xlu0 %v6272_v18, %s7812_s0  ;;  %2687 = vrot.lane.b32.xlu1 %v6279_v23, %s7891_s2 }
 0x5cd   : > { %2593 = vrot.lane.b32.xlu0 %v6279_v23, %s7812_s0  ;;  %2591 = vrot.lane.b32.xlu1 %v6269_v32, %s7812_s0 }
 0x5d1   : > { %3228 = vrot.lane.b32.xlu0 %v6272_v18, %s7892_s25  ;;  %3230 = vrot.lane.b32.xlu1 %v6269_v32, %s7892_s25 }
 0x5d5   : > { %3232 = vrot.lane.b32.xlu0 %v6279_v23, %s7892_s25 }
 0x61f   : > { %v3072_v0 = vpop.permute.xlu0 %3071  ;;  %v3070_v62 = vpop.permute.xlu1 %3069 }
 0x620   : > { %v3076_v20 = vsel %vm1328_vm14, %v3070_v62, %v3072_v0 }
 0x623   : > { %v2977_v9 = vpop.permute.xlu0 %2976  ;;  %v3074_v63 = vpop.permute.xlu1 %3073 }
 0x624   : > { %v3075_v24 = vsel %vm1328_vm14, %v3072_v0, %v3074_v63  ;;  %v3077_v58 = vsel %vm1328_vm14, %v3074_v63, %v3070_v62 }
 0x625   : > { %v3081_v15 = vcombine.low %v3077_v58, %v3076_v20  ;;  %v3095_v40 = vrot.slane %v3075_v24, %v5358_v52 }
 0x627   : > { %v3088_v43 = vrot.slane %v3081_v15, %v5358_v52  ;;  %v2981_v44 = vpop.permute.xlu0 %2980  ;;  %v2979_v57 = vpop.permute.xlu1 %2978 }
 0x628   : > { %v2984_v29 = vsel %vm1288_vm7, %v2981_v44, %v2977_v9  ;;  %v2982_v1 = vsel %vm1288_vm7, %v2979_v57, %v2981_v44  ;;  %v2983_v46 = vsel %vm1288_vm7, %v2977_v9, %v2979_v57 }
 0x629   : > { %v3096_v3 = vcombine.low %v3088_v43, %v3095_v40  ;;  %v2988_v8 = vcombine.low %v2983_v46, %v2982_v1  ;;  %v3002_v53 = vrot.slane %v2984_v29, %v5358_v52 }
 0x62b   : > { %v3103_v61 = vrot.slane %v3096_v3, %v5358_v52  ;;  %v2995_v37 = vrot.slane %v2988_v8, %v5358_v52  ;;  %v2872_v42 = vpop.permute.xlu0 %2871  ;;  %v2874_v22 = vpop.permute.xlu1 %2873 }
 0x62c   : > { %v2878_v14 = vsel %vm1245_vm0, %v2872_v42, %v2874_v22 }
 0x62d   : > { %3106 = vst.msk [vmem:[#allocation3 + $0x16d] ss:$8 sm:$0x7] %vm5295_vm6, %v3103_v61  ;;  %v3003_v50 = vcombine.low %v2995_v37, %v3002_v53 }
 0x62f   : > { %v3010_v60 = vrot.slane %v3003_v50, %v5358_v52  ;;  %v2876_v30 = vpop.permute.xlu0 %2875  ;;  %v2778_v55 = vpop.permute.xlu1 %2777 }
 0x630   : > { %v2877_v21 = vsel %vm1245_vm0, %v2874_v22, %v2876_v30  ;;  %v2879_v13 = vsel %vm1245_vm0, %v2876_v30, %v2872_v42 }
 0x631   : > { %3013 = vst.msk [vmem:[#allocation3 + $0x13b] ss:$8 sm:$0x7] %vm5295_vm6, %v3010_v60  ;;  %v2883_v5 = vcombine.low %v2879_v13, %v2878_v14  ;;  %v2897_v10 = vrot.slane %v2877_v21, %v5358_v52 }
 0x633   : > { %v2890_v49 = vrot.slane %v2883_v5, %v5358_v52  ;;  %v2780_v41 = vpop.permute.xlu0 %2779  ;;  %v2782_v45 = vpop.permute.xlu1 %2781 }
 0x634   : > { %v2784_v2 = vsel %vm1205_vm11, %v2778_v55, %v2780_v41  ;;  %v2783_v7 = vsel %vm1205_vm11, %v2780_v41, %v2782_v45  ;;  %v2785_v39 = vsel %vm1205_vm11, %v2782_v45, %v2778_v55 }
 0x635   : > { %v2898_v16 = vcombine.low %v2890_v49, %v2897_v10  ;;  %v2789_v11 = vcombine.low %v2784_v2, %v2783_v7  ;;  %v2803_v54 = vrot.slane %v2785_v39, %v5358_v52 }
 0x637   : > { %v2905_v31 = vrot.slane %v2898_v16, %v5358_v52  ;;  %v2796_v25 = vrot.slane %v2789_v11, %v5358_v52  ;;  %v2686_v56 = vpop.permute.xlu0 %2685  ;;  %v2684_v6 = vpop.permute.xlu1 %2683 }
 0x638   : > { %v2690_v47 = vsel %vm1165_vm13, %v2684_v6, %v2686_v56 }
 0x639   : > { %2908 = vst.msk [vmem:[#allocation3 + $0xc7] ss:$8 sm:$0x7] %vm5295_vm6, %v2905_v31  ;;  %v2804_v35 = vcombine.low %v2796_v25, %v2803_v54 }
 0x63b   : > { %v2811_v19 = vrot.slane %v2804_v35, %v5358_v52  ;;  %v2590_v59 = vpop.permute.xlu0 %2589  ;;  %v2688_v51 = vpop.permute.xlu1 %2687 }
 0x63c   : > { %v2689_v0 = vsel %vm1165_vm13, %v2686_v56, %v2688_v51  ;;  %v2691_v62 = vsel %vm1165_vm13, %v2688_v51, %v2684_v6 }
 0x63d   : > { %2814 = vst.msk [vmem:[#allocation3 + $0x95] ss:$8 sm:$0x7] %vm5295_vm6, %v2811_v19  ;;  %v2695_v9 = vcombine.low %v2691_v62, %v2690_v47  ;;  %v2709_v20 = vrot.slane %v2689_v0, %v5358_v52 }
 0x63f   : > { %v2702_v63 = vrot.slane %v2695_v9, %v5358_v52  ;;  %v2594_v24 = vpop.permute.xlu0 %2593  ;;  %v2592_v58 = vpop.permute.xlu1 %2591 }
 0x640   : > { %v2597_v15 = vsel %vm1122_vm12, %v2594_v24, %v2590_v59  ;;  %v2595_v43 = vsel %vm1122_vm12, %v2592_v58, %v2594_v24  ;;  %v2596_v40 = vsel %vm1122_vm12, %v2590_v59, %v2592_v58 }
 0x641   : > { %v2710_v44 = vcombine.low %v2702_v63, %v2709_v20  ;;  %v2601_v57 = vcombine.low %v2597_v15, %v2596_v40  ;;  %v2519_v29 = vpop.f32.mrf.mxu1  ;;  %v2615_v8 = vrot.slane %v2595_v43, %v5358_v52 }
 0x642   : > { %v2520_v1 = vadd.f32 %v2519_v29, %v6319_v33  ;;  %v2442_v37 = vpop.f32.mrf.mxu0 }
 0x643   : > { %v2717_v46 = vrot.slane %v2710_v44, %v5358_v52  ;;  %v2608_v3 = vrot.slane %v2601_v57, %v5358_v52  ;;  %v3229_v61 = vpop.permute.xlu0 %3228  ;;  %v2521_v42 = vpop.f32.mrf.mxu1  ;;  %v2443_v21 = vadd.f32 %v2442_v37, %v6319_v33 }
 0x644   : > { %v2530_v53 = vmul.f32 0.01, %v2520_v1  ;;  %v3231_v50 = vpop.permute.xlu1 %3230  ;;  %v2444_v35 = vpop.f32.mrf.mxu0 }
 0x645   : > { %2720 = vst.msk [vmem:[#allocation3 + $0x63] ss:$8 sm:$0x7] %vm5295_vm6, %v2717_v46  ;;  %v2616_v22 = vcombine.low %v2608_v3, %v2615_v8  ;;  %v2524_v30 = vpop.f32.mrf.mxu1  ;;  %v3235_v13 = vsel %vm7893_vm10, %v3229_v61, %v3231_v50  ;;  %v2528_v39 = vmul.f32 0.01, %v2443_v21  ;;  %v2445_v19 = vadd.f32 %v2444_v35, %v6319_v33  ;;  %vm7905_vm10 = vmmov %vm7899_vm1 }
 0x646   : > { %v2536_v60 = vmax.f32 %v2520_v1, %v2530_v53  ;;  %v2525_v54 = vadd.f32 %v2524_v30, %v6321_v36  ;;  %v2448_v47 = vpop.f32.mrf.mxu0 }
 0x647   : > { %v2623_v55 = vrot.slane %v2616_v22, %v5358_v52  ;;  %v3233_v14 = vpop.permute.xlu0 %3232  ;;  %v2526_v41 = vpop.f32.mrf.mxu1  ;;  %v2534_v31 = vmax.f32 %v2443_v21, %v2528_v39  ;;  %v2529_v51 = vmul.f32 0.01, %v2445_v19  ;;  %v2449_v33 = vadd.f32 %v2448_v47, %v6321_v36 }
 0x648   : > { %v3234_v5 = vsel %vm7894_vm3, %v3231_v50, %v3233_v14  ;;  %v3236_v49 = vsel %vm7895_vm4, %v3233_v14, %v3229_v61  ;;  %v6396_v10 = vmul.f32 %v2536_v60, %v5556_v26  ;;  %v2533_v56 = vmul.f32 0.01, %v2525_v54  ;;  %v2450_v20 = vpop.f32.mrf.mxu0  ;;  %vm7906_vm3 = vmmov %vm7899_vm1 }
 0x649   : > { %2626 = vst.msk [vmem:[#allocation3 + $0x31] ss:$8 sm:$0x7] %vm5295_vm6, %v2623_v55  ;;  %v3240_v45 = vcombine.low %v3235_v13, %v3234_v5  ;;  %v3254_v7 = vrot.slane %v3236_v49, %v5358_v52  ;;  %v6418_v25 = vmul.f32 %v2534_v31, %v5496_v4  ;;  %v2535_v0 = vmax.f32 %v2445_v19, %v2529_v51  ;;  %vm7907_vm4 = vmmov %vm7899_vm1 }
 0x64a   : > { %3023 = vrot.lane.b32.xlu1 %v6396_v10, %s5010_s27  ;;  %3116 = vrot.lane.b32.xlu0 %v6396_v10, %s7896_s21  ;;  %v2539_v6 = vmax.f32 %v2525_v54, %v2533_v56  ;;  %v2531_v9 = vmul.f32 0.01, %v2449_v33  ;;  %v2451_v58 = vadd.f32 %v2450_v20, %v6321_v36 }
 0x64b   : > { %v3247_v2 = vrot.slane %v3240_v45, %v5358_v52  ;;  %v6451_v62 = vmul.f32 %v2535_v0, %v5499_v12 }
 0x64c   : > { %v6435_v59 = vmul.f32 %v2539_v6, %v5556_v26  ;;  %v2537_v63 = vmax.f32 %v2449_v33, %v2531_v9  ;;  %v2532_v15 = vmul.f32 0.01, %v2451_v58 }
 0x64d   : > { %v3255_v16 = vcombine.low %v3247_v2, %v3254_v7 }
 0x64e   : > { %2730 = vrot.lane.b32.xlu1 %v6396_v10, %s7890_s1  ;;  %2930 = vrot.lane.b32.xlu0 %v6396_v10, %s5009_s26  ;;  %v6462_v24 = vmul.f32 %v2537_v63, %v5496_v4  ;;  %v2538_v43 = vmax.f32 %v2451_v58, %v2532_v15 }
 0x64f   : > { %v3262_v11 = vrot.slane %v3255_v16, %v5358_v52 }
 0x650   : > { %v6478_v36 = vmul.f32 %v2538_v43, %v5499_v12 }
 0x651   : > { %3265 = vst.msk [vmem:[#allocation3 + $0x1e1] ss:$8 sm:$0x7] %vm5295_vm6, %v3262_v11 }
 0x652   : > { %2636 = vrot.lane.b32.xlu1 %v6396_v10, %s7891_s2  ;;  %2824 = vrot.lane.b32.xlu0 %v6396_v10, %s5008_s18 }
 0x656   : > { %3108 = vrot.lane.b32.xlu0 %v6418_v25, %s7896_s21  ;;  %3015 = vrot.lane.b32.xlu1 %v6418_v25, %s5010_s27 }
 0x65a   : > { %2816 = vrot.lane.b32.xlu0 %v6418_v25, %s5008_s18  ;;  %2922 = vrot.lane.b32.xlu1 %v6418_v25, %s5009_s26 }
 0x65e   : > { %2628 = vrot.lane.b32.xlu0 %v6418_v25, %s7891_s2  ;;  %2722 = vrot.lane.b32.xlu1 %v6418_v25, %s7890_s1 }
 0x662   : > { %2826 = vrot.lane.b32.xlu0 %v6435_v59, %s5008_s18  ;;  %3025 = vrot.lane.b32.xlu1 %v6435_v59, %s5010_s27 }
 0x666   : > { %2732 = vrot.lane.b32.xlu0 %v6435_v59, %s7890_s1  ;;  %2932 = vrot.lane.b32.xlu1 %v6435_v59, %s5009_s26 }
 0x66a   : > { %2638 = vrot.lane.b32.xlu0 %v6435_v59, %s7891_s2  ;;  %2556 = vrot.lane.b32.xlu1 %v6435_v59, %s7812_s0 }
 0x66e   : > { %3019 = vrot.lane.b32.xlu0 %v6451_v62, %s5010_s27  ;;  %3112 = vrot.lane.b32.xlu1 %v6451_v62, %s7896_s21 }
 0x672   : > { %2726 = vrot.lane.b32.xlu0 %v6451_v62, %s7890_s1  ;;  %2926 = vrot.lane.b32.xlu1 %v6451_v62, %s5009_s26 }
 0x676   : > { %2924 = vrot.lane.b32.xlu0 %v6462_v24, %s5009_s26  ;;  %2820 = vrot.lane.b32.xlu1 %v6451_v62, %s5008_s18 }
 0x67a   : > { %2818 = vrot.lane.b32.xlu0 %v6462_v24, %s5008_s18  ;;  %2632 = vrot.lane.b32.xlu1 %v6451_v62, %s7891_s2 }
 0x67e   : > { %2630 = vrot.lane.b32.xlu0 %v6462_v24, %s7891_s2  ;;  %3017 = vrot.lane.b32.xlu1 %v6462_v24, %s5010_s27 }
 0x682   : > { %3021 = vrot.lane.b32.xlu0 %v6478_v36, %s5010_s27  ;;  %2724 = vrot.lane.b32.xlu1 %v6462_v24, %s7890_s1 }
 0x686   : > { %2928 = vrot.lane.b32.xlu0 %v6478_v36, %s5009_s26  ;;  %2548 = vrot.lane.b32.xlu1 %v6462_v24, %s7812_s0 }
 0x68a   : > { %2546 = vrot.lane.b32.xlu0 %v6418_v25, %s7812_s0  ;;  %2550 = vrot.lane.b32.xlu1 %v6451_v62, %s7812_s0 }
 0x68e   : > { %3162 = vrot.lane.b32.xlu0 %v6272_v18, %s7896_s21  ;;  %3164 = vrot.lane.b32.xlu1 %v6269_v32, %s7896_s21  ;;  %v3337_v32 = vld [vmem:[%s7749_s14] sm:$0xff]  ;;  %v3271_v18 = vld [vmem:[%s7748_s13 + $0x8] sm:$0xff] }
 0x68f   : > { %4862 = vmatprep.mubr.msk.f32.mxu0 %vm3349_vm5, %v3271_v18  ;;  %4864 = vmatprep.mubr.msk.f32.mxu1 %vm3349_vm5, %v3271_v18 }
 0x692   : > { %3166 = vrot.lane.b32.xlu0 %v6279_v23, %s7896_s21  ;;  %2822 = vrot.lane.b32.xlu1 %v6478_v36, %s5008_s18  ;;  %v3338_v23 = vld [vmem:[%s7749_s14 + $0x8] sm:$0xff] }
 0x696   : > { %3203 = vrot.lane.b32.xlu0 %v6462_v24, %s7892_s25  ;;  %2728 = vrot.lane.b32.xlu1 %v6478_v36, %s7890_s1 }
 0x69a   : > { %3118 = vrot.lane.b32.xlu0 %v6435_v59, %s7896_s21  ;;  %2634 = vrot.lane.b32.xlu1 %v6478_v36, %s7891_s2 }
 0x69e   : > { %2552 = vrot.lane.b32.xlu0 %v6478_v36, %s7812_s0  ;;  %2554 = vrot.lane.b32.xlu1 %v6396_v10, %s7812_s0  ;;  %s7932_s0 = smov 20  }
 0x6a2   : > { %3209 = vrot.lane.b32.xlu0 %v6396_v10, %s7892_s25  ;;  %3211 = vrot.lane.b32.xlu1 %v6435_v59, %s7892_s25 }
 0x6a6   : > { %3207 = vrot.lane.b32.xlu0 %v6478_v36, %s7892_s25  ;;  %3205 = vrot.lane.b32.xlu1 %v6451_v62, %s7892_s25 }
 0x6aa   : > { %3201 = vrot.lane.b32.xlu0 %v6418_v25, %s7892_s25  ;;  %3114 = vrot.lane.b32.xlu1 %v6478_v36, %s7896_s21 }
 0x6ae   : > { %3341 = vperm.xlu0 %4970, %v3337_v32   ;;  %3110 = vrot.lane.b32.xlu1 %v6462_v24, %s7896_s21 }
 0x6b2   : > { %3346 = vperm.xlu1 %4969, %v3338_v23  }
 0x6bc   : > { %v3117_v40 = vpop.permute.xlu0 %3116  ;;  %v3024_v44 = vpop.permute.xlu1 %3023 }
 0x6c0   : > { %v2931_v57 = vpop.permute.xlu0 %2930  ;;  %v2731_v29 = vpop.permute.xlu1 %2730 }
 0x6c4   : > { %v6537_v1 = vpop.permute.xlu0 %2824  ;;  %v6539_v46 = vpop.permute.xlu1 %2636 }
 0x6c8   : > { %v3109_v3 = vpop.permute.xlu0 %3108  ;;  %v3016_v8 = vpop.permute.xlu1 %3015 }
 0x6c9   : > { %v6543_v61 = vsel %vm7897_vm9, %v3117_v40, %v3109_v3  ;;  %v6547_v53 = vsel %vm1328_vm14, %v3024_v44, %v3016_v8  ;;  %vm2840_vm9 = vcmask 1045504  }
 0x6ca   : > { %v7814_v37 = vrot.slane %v6543_v61, 2  ;;  %v7833_v42 = vrot.slane %v6547_v53, 4 }
 0x6cc   : > { %3152 = vst [vmem:[#allocation3 + $0x178] sm:$0xc0] %v7814_v37  ;;  %3057 = vst [vmem:[#allocation3 + $0x138] sm:$0xf0] %v7833_v42  ;;  %v2817_v22 = vpop.permute.xlu0 %2816  ;;  %v2923_v50 = vpop.permute.xlu1 %2922 }
 0x6cd   : > { %v6558_v60 = vsel %vm1245_vm0, %v6537_v1, %v2817_v22  ;;  %v6562_v30 = vsel %vm1288_vm7, %v2931_v57, %v2923_v50 }
 0x6ce   : > { %v7824_v55 = vrot.slane %v6558_v60, 2  ;;  %v7831_v14 = vrot.slane %v6562_v30, 6 }
 0x6d0   : > { %2859 = vst [vmem:[#allocation3 + $0x90] sm:$0xc0] %v7824_v55  ;;  %2966 = vst [vmem:[#allocation3 + $0x118] sm:$0xfc] %v7831_v14  ;;  %v2629_v21 = vpop.permute.xlu0 %2628  ;;  %v2723_v13 = vpop.permute.xlu1 %2722 }
 0x6d1   : > { %v6573_v5 = vsel %vm1165_vm13, %v6539_v46, %v2629_v21  ;;  %v6577_v49 = vsel %vm1205_vm11, %v2731_v29, %v2723_v13 }
 0x6d2   : > { %v7817_v41 = vrot.slane %v6573_v5, 6  ;;  %v7819_v45 = vrot.slane %v6577_v49, 4 }
 0x6d4   : > { %2671 = vst [vmem:[#allocation3 + $0x30] sm:$0xfc] %v7817_v41  ;;  %2767 = vst [vmem:[#allocation3 + $0x70] sm:$0xf0] %v7819_v45  ;;  %v6585_v2 = vpop.permute.xlu0 %2826  ;;  %v6587_v7 = vpop.permute.xlu1 %3025 }
 0x6d8   : > { %v6589_v39 = vpop.permute.xlu0 %2732  ;;  %v6591_v16 = vpop.permute.xlu1 %2932 }
 0x6dc   : > { %v6593_v11 = vpop.permute.xlu0 %2638  ;;  %v6595_v31 = vpop.permute.xlu1 %2556 }
 0x6e0   : > { %v3020_v54 = vpop.permute.xlu0 %3019  ;;  %v3113_v56 = vpop.permute.xlu1 %3112 }
 0x6e1   : > { %v6599_v6 = vsel %vm1328_vm14, %v3020_v54, %v3024_v44  ;;  %v6603_v35 = vsel %vm1328_vm14, %v3016_v8, %v3020_v54  ;;  %v6607_v19 = vsel %vm7898_vm8, %v3113_v56, %v3117_v40  ;;  %v6611_v51 = vsel %vm7899_vm1, %v3109_v3, %v3113_v56 }
 0x6e2   : > { %v3040_v47 = vrot.slane %v6603_v35, 4  ;;  %v7834_v0 = vrot.slane %v6599_v6, 4  ;;  %v7815_v33 = vrot.slane %v6611_v51, 2  ;;  %v7816_v9 = vrot.slane %v6607_v19, 2 }
 0x6e3   : > { %vm7914_vm8 = vcmp.lt.s32.totalorder %v5354_v48, 108 }
 0x6e4   : > { %3058 = vst [vmem:[#allocation3 + $0x140] sm:$0xf0] %v3040_v47  ;;  %3059 = vst [vmem:[#allocation3 + $0x148] sm:$0xf0] %v7834_v0  ;;  %v2727_v63 = vpop.permute.xlu0 %2726  ;;  %v2927_v20 = vpop.permute.xlu1 %2926 }
 0x6e5   : > { %3150 = vst [vmem:[#allocation3 + $0x168] sm:$0xc0] %v7815_v33  ;;  %3151 = vst [vmem:[#allocation3 + $0x170] sm:$0xc0] %v7816_v9  ;;  %v6627_v58 = vsel %vm1205_vm11, %v2727_v63, %v2731_v29  ;;  %v6631_v15 = vsel %vm1205_vm11, %v2723_v13, %v2727_v63  ;;  %v6635_v43 = vsel %vm1288_vm7, %v2927_v20, %v2931_v57 }
 0x6e6   : > { %v6639_v32 = vsel %vm1288_vm7, %v2923_v50, %v2927_v20  ;;  %v7818_v18 = vrot.slane %v6631_v15, 4  ;;  %v7822_v23 = vrot.slane %v6627_v58, 4  ;;  %v7829_v44 = vrot.slane %v6635_v43, 6  ;;  %vm7919_vm1 = vmmov %vm7914_vm8 }
 0x6e7   : > { %v7828_v40 = vrot.slane %v6639_v32, 6 }
 0x6e8   : > { %2765 = vst [vmem:[#allocation3 + $0x60] sm:$0xf0] %v7818_v18  ;;  %2766 = vst [vmem:[#allocation3 + $0x68] sm:$0xf0] %v7822_v23  ;;  %v2925_v57 = vpop.permute.xlu0 %2924  ;;  %v2821_v29 = vpop.permute.xlu1 %2820 }
 0x6e9   : > { %2964 = vst [vmem:[#allocation3 + $0x108] sm:$0xfc] %v7828_v40  ;;  %2965 = vst [vmem:[#allocation3 + $0x110] sm:$0xfc] %v7829_v44  ;;  %v6656_v3 = vsel %vm1288_vm7, %v6591_v16, %v2925_v57  ;;  %v6661_v8 = vsel %vm1245_vm0, %v2821_v29, %v6537_v1  ;;  %v6665_v50 = vsel %vm1245_vm0, %v2817_v22, %v2821_v29 }
 0x6ea   : > { %v7832_v13 = vrot.slane %v6656_v3, 6  ;;  %v7827_v54 = vrot.slane %v6665_v50, 2  ;;  %v7823_v56 = vrot.slane %v6661_v8, 2 }
 0x6ec   : > { %2972 = vst [vmem:[#allocation3 + $0x148] sm:$0x3] %v7832_v13  ;;  %2860 = vst [vmem:[#allocation3 + $0x98] sm:$0xc0] %v7827_v54  ;;  %v6676_v1 = vpop.permute.xlu0 %2818  ;;  %v2633_v63 = vpop.permute.xlu1 %2632 }
 0x6ed   : > { %2861 = vst [vmem:[#allocation3 + $0xa0] sm:$0xc0] %v7823_v56  ;;  %v6682_v22 = vsel %vm1245_vm0, %v6585_v2, %v6676_v1  ;;  %v6687_v20 = vsel %vm1165_vm13, %v2633_v63, %v6539_v46  ;;  %v6691_v29 = vsel %vm1165_vm13, %v2629_v21, %v2633_v63 }
 0x6ee   : > { %v7825_v37 = vrot.slane %v6682_v22, 2  ;;  %v7821_v33 = vrot.slane %v6691_v29, 6  ;;  %v7820_v9 = vrot.slane %v6687_v20, 6 }
 0x6f0   : > { %2865 = vst [vmem:[#allocation3 + $0xc0] sm:$0x3f] %v7825_v37  ;;  %2672 = vst [vmem:[#allocation3 + $0x38] sm:$0xfc] %v7821_v33  ;;  %v6702_v46 = vpop.permute.xlu0 %2630  ;;  %v3018_v41 = vpop.permute.xlu1 %3017 }
 0x6f1   : > { %2673 = vst [vmem:[#allocation3 + $0x40] sm:$0xfc] %v7820_v9  ;;  %v6708_v21 = vsel %vm1165_vm13, %v6593_v11, %v6702_v46  ;;  %v3032_v63 = vsel %vm1328_vm14, %v6587_v7, %v3018_v41 }
 0x6f2   : > { %v7826_v18 = vrot.slane %v6708_v21, 6  ;;  %v3042_v45 = vrot.slane %v3032_v63, 4 }
 0x6f3   : > { %v3315_v35 = vld [vmem:[#allocation3 + $0x148] sm:$0xff] }
 0x6f4   : > { %2677 = vst [vmem:[#allocation3 + $0x60] sm:$0x3] %v7826_v18  ;;  %3063 = vst [vmem:[#allocation3 + $0x168] sm:$0xf] %v3042_v45  ;;  %v3022_v9 = vpop.permute.xlu0 %3021  ;;  %v6716_v33 = vpop.permute.xlu1 %2724 }
 0x6f5   : > { %v3028_v23 = vsel %vm1328_vm14, %v3022_v9, %v6587_v7  ;;  %v3030_v56 = vsel %vm1328_vm14, %v3018_v41, %v3022_v9  ;;  %v6727_v55 = vsel %vm1205_vm11, %v6589_v39, %v6716_v33 }
 0x6f6   : > { %v3044_v63 = vrot.slane %v3030_v56, 4  ;;  %v3046_v37 = vrot.slane %v3028_v23, 4  ;;  %v7830_v18 = vrot.slane %v6727_v55, 4 }
 0x6f8   : > { %3064 = vst [vmem:[#allocation3 + $0x170] sm:$0xf] %v3044_v63  ;;  %3065 = vst [vmem:[#allocation3 + $0x178] sm:$0xf] %v3046_v37  ;;  %v2929_v54 = vpop.permute.xlu0 %2928  ;;  %v6732_v7 = vpop.permute.xlu1 %2548 }
 0x6f9   : > { %2773 = vst [vmem:[#allocation3 + $0xa0] sm:$0xf] %v7830_v18  ;;  %v2935_v41 = vsel %vm1288_vm7, %v2929_v54, %v6591_v16  ;;  %v2937_v9 = vsel %vm1288_vm7, %v2925_v57, %v2929_v54  ;;  %v3045_v16 = vsel %vm2746_vm15, %v3040_v47, %v3044_v63  ;;  %v7900_v57 = vrot.slane %v6599_v6, 4 }
 0x6fa   : > { %v2949_v40 = vrot.slane %v2937_v9, 6  ;;  %v2951_v56 = vrot.slane %v2935_v41, 6  ;;  %v7901_v41 = vrot.slane %v6547_v53, 4  ;;  %v7902_v47 = vrot.slane %v6656_v3, 6 }
 0x6fb   : > { %v3319_v0 = vld [vmem:[#allocation3 + $0x168] sm:$0xff]  ;;  %v3047_v54 = vsel %vm2746_vm15, %v7900_v57, %v3046_v37  ;;  %v7903_v6 = vrot.slane %v6562_v30, 6 }
 0x6fc   : > { %2970 = vst [vmem:[#allocation3 + $0x138] sm:$0x3] %v2949_v40  ;;  %2971 = vst [vmem:[#allocation3 + $0x140] sm:$0x3] %v2951_v56  ;;  %v6739_v23 = vpop.permute.xlu0 %2546  ;;  %v6741_v44 = vpop.permute.xlu1 %2550  ;;  %v3043_v9 = vsel %vm2746_vm15, %v7901_v41, %v3042_v45 }
 0x6fd   : > { %v2954_v37 = vsel %vm2652_vm2, %v7903_v6, %v7902_v47 }
 0x6ff   : > { %v3320_v18 = vld [vmem:[#allocation3 + $0x170] sm:$0xff]  ;;  %v3321_v14 = vld [vmem:[#allocation3 + $0x178] sm:$0xff] }
 0x700   : > { %v3163_v13 = vpop.permute.xlu0 %3162  ;;  %3356 = vmatprep.subr.mxu0 %v3320_v18  ;;  %3434 = vmatpush1.msra.mxu1 %v3321_v14  ;;  %v3165_v42 = vpop.permute.xlu1 %3164 }
 0x701   : > { %3357 = vmatpush1.msra.mxu0 %v3319_v0  ;;  %3435 = vmatprep.subr.mxu1 %v7860_v17  ;;  %v7904_v0 = vrot.slane %v6635_v43, 6  ;;  %v3169_v45 = vsel %vm7905_vm10, %v3163_v13, %v3165_v42  ;;  %vm7921_vm10 = vmmov %vm7919_vm1 }
 0x702   : > { %3358 = vmatprep.subr.mxu0 %v3045_v16  ;;  %3436 = vmatpush1.msra.mxu1 %v3047_v54 }
 0x703   : > { %3359 = vmatpush1.msra.mxu0 %v3043_v9  ;;  %3437 = vmatprep.subr.mxu1 %v7860_v17  ;;  %v3314_v14 = vld [vmem:[#allocation3 + $0x140] sm:$0xff]  ;;  %v3313_v18 = vld [vmem:[#allocation3 + $0x138] sm:$0xff]  ;;  %v2952_v53 = vsel %vm2652_vm2, %v7904_v0, %v2951_v56  ;;  %v7908_v56 = vrot.slane %v6639_v32, 6 }
 0x704   : > { %v3167_v63 = vpop.permute.xlu0 %3166  ;;  %3360 = vmatprep.subr.mxu0 %v3314_v14  ;;  %3438 = vmatpush1.msra.mxu1 %v3315_v35  ;;  %v2823_v16 = vpop.permute.xlu1 %2822  ;;  %v3307_v35 = vld [vmem:[#allocation3 + $0x108] sm:$0xff] }
 0x705   : > { %v3168_v57 = vsel %vm7906_vm3, %v3165_v42, %v3167_v63  ;;  %v3170_v3 = vsel %vm7907_vm4, %v3167_v63, %v3163_v13  ;;  %v6771_v30 = vsel %vm1245_vm0, %v2823_v16, %v6585_v2  ;;  %v2831_v43 = vsel %vm1245_vm0, %v6676_v1, %v2823_v16  ;;  %3361 = vmatpush1.msra.mxu0 %v3313_v18  ;;  %v3308_v2 = vld [vmem:[#allocation3 + $0x110] sm:$0xff]  ;;  %vm7926_vm3 = vmmov %vm7919_vm1 }
 0x706   : > { %v2950_v54 = vsel %vm2652_vm2, %v7908_v56, %v2949_v40  ;;  %v3174_v41 = vcombine.low %v3169_v45, %v3168_v57  ;;  %v2846_v9 = vrot.slane %v2831_v43, 2  ;;  %v2848_v42 = vrot.slane %v6771_v30, 2  ;;  %3439 = vmatprep.subr.mxu1 %v7860_v17  ;;  %3362 = vmatprep.subr.mxu0 %v2952_v53  ;;  %v3309_v40 = vld [vmem:[#allocation3 + $0x118] sm:$0xff] }
 0x707   : > { %3440 = vmatpush1.msra.mxu1 %v2954_v37  ;;  %3363 = vmatpush1.msra.mxu0 %v2950_v54  ;;  %v3188_v14 = vrot.slane %v3170_v3, %v5358_v52  ;;  %v7910_v57 = vrot.slane %v6682_v22, 2  ;;  %v7911_v3 = vrot.slane %v6558_v60, 2  ;;  %v7912_v43 = vrot.slane %v6661_v8, 2 }
 0x708   : > { %v3181_v13 = vrot.slane %v3174_v41, %v5358_v52  ;;  %2866 = vst [vmem:[#allocation3 + $0xc8] sm:$0x3f] %v2846_v9  ;;  %2867 = vst [vmem:[#allocation3 + $0xd0] sm:$0x3f] %v2848_v42  ;;  %3441 = vmatprep.subr.mxu1 %v7860_v17  ;;  %v6784_v32 = vpop.permute.xlu0 %3203  ;;  %3364 = vmatprep.subr.mxu0 %v3308_v2  ;;  %v2729_v1 = vpop.permute.xlu1 %2728  ;;  %v7913_v60 = vrot.slane %v6627_v58, 4 }
 0x709   : > { %3442 = vmatpush1.msra.mxu1 %v3309_v40  ;;  %v2735_v18 = vsel %vm1205_vm11, %v2729_v1, %v6589_v39  ;;  %v2737_v47 = vsel %vm1205_vm11, %v6716_v33, %v2729_v1  ;;  %3365 = vmatpush1.msra.mxu0 %v3307_v35  ;;  %v2845_v30 = vsel %vm2840_vm9, %v7911_v3, %v7910_v57  ;;  %v7917_v40 = vrot.slane %v6631_v15, 4 }
 0x70a   : > { %v3189_v6 = vcombine.low %v3181_v13, %v3188_v14  ;;  %v2750_v37 = vrot.slane %v2737_v47, 4  ;;  %v2752_v0 = vrot.slane %v2735_v18, 4  ;;  %3443 = vmatprep.subr.mxu1 %v7860_v17  ;;  %3366 = vmatprep.subr.mxu0 %v6478_v36  ;;  %v2849_v56 = vsel %vm2840_vm9, %v7912_v43, %v2848_v42 }
 0x70b   : > { %3444 = vmatpush1.msra.mxu1 %v6435_v59  ;;  %3367 = vmatpush1.msra.mxu0 %v6462_v24  ;;  %v7915_v42 = vrot.slane %v6727_v55, 4  ;;  %v7916_v13 = vrot.slane %v6577_v49, 4  ;;  %v7918_v18 = vrot.slane %v6691_v29, 6  ;;  %v7922_v29 = vrot.slane %v6708_v21, 6  ;;  %v3282_v21 = vld [vmem:[#allocation3 + $0x40] sm:$0xff] }
 0x70c   : > { %v3196_v53 = vrot.slane %v3189_v6, %v5358_v52  ;;  %2771 = vst [vmem:[#allocation3 + $0x90] sm:$0xf] %v2750_v37  ;;  %2772 = vst [vmem:[#allocation3 + $0x98] sm:$0xf] %v2752_v0  ;;  %3445 = vmatprep.subr.mxu1 %v7860_v17  ;;  %v6798_v39 = vpop.permute.xlu0 %3118  ;;  %3368 = vmatprep.subr.mxu0 %v6451_v62  ;;  %v2635_v33 = vpop.permute.xlu1 %2634  ;;  %v2753_v2 = vsel %vm2746_vm15, %v7913_v60, %v2752_v0  ;;  %v3286_v6 = vld [vmem:[#allocation3 + $0x60] sm:$0xff] }
 0x70d   : > { %3446 = vmatpush1.msra.mxu1 %v6396_v10  ;;  %v2641_v36 = vsel %vm1165_vm13, %v2635_v33, %v6593_v11  ;;  %v2643_v59 = vsel %vm1165_vm13, %v6702_v46, %v2635_v33  ;;  %3369 = vmatpush1.msra.mxu0 %v6418_v25  ;;  %v3298_v46 = vld [vmem:[#allocation3 + $0xc0] sm:$0xff]  ;;  %v7909_v25 = vrot.slane %v6665_v50, 2  ;;  %v2755_v14 = vsel %vm2746_vm15, %v7916_v13, %v7915_v42 }
 0x70e   : > { %3199 = vst.msk [vmem:[#allocation3 + $0x19f] ss:$8 sm:$0x7] %vm5295_vm6, %v3196_v53  ;;  %v2658_v24 = vrot.slane %v2643_v59, 6  ;;  %v2660_v45 = vrot.slane %v2641_v36, 6  ;;  %3447 = vmatprep.subr.mxu1 %v7860_v17  ;;  %v2751_v1 = vsel %vm2746_vm15, %v7917_v40, %v2750_v37  ;;  %vm7920_vm15 = vmmov %vm7919_vm1  ;;  %v7923_v53 = vrot.slane %v6573_v5, 6 }
 0x70f   : > { %v3300_v62 = vld [vmem:[#allocation3 + $0xd0] sm:$0xff]  ;;  %v3299_v10 = vld [vmem:[#allocation3 + $0xc8] sm:$0xff]  ;;  %v2847_v16 = vsel %vm2840_vm9, %v7909_v25, %v2846_v9  ;;  %v3294_v9 = vld [vmem:[#allocation3 + $0xa0] sm:$0xff]  ;;  %v7924_v36 = vrot.slane %v6687_v20, 6  ;;  %v2563_v25 = vsel %vm1122_vm12, %v6595_v31, %v6732_v7  ;;  %v2560_v3 = vsel %vm1122_vm12, %v6739_v23, %v6741_v44 }
 0x710   : > { %2678 = vst [vmem:[#allocation3 + $0x68] sm:$0x3] %v2658_v24  ;;  %2679 = vst [vmem:[#allocation3 + $0x70] sm:$0x3] %v2660_v45  ;;  %v6812_v63 = vpop.permute.xlu0 %2552  ;;  %3448 = vmatpush1.msra.mxu1 %v3300_v62  ;;  %v6814_v11 = vpop.permute.xlu1 %2554  ;;  %3370 = vmatprep.subr.mxu0 %v3299_v10  ;;  %v2659_v47 = vsel %vm2652_vm2, %v7918_v18, %v2658_v24  ;;  %v2657_v33 = vsel %vm2652_vm2, %v7923_v53, %v7922_v29  ;;  %v3280_v20 = vld [vmem:[#allocation3 + $0x30] sm:$0xff]  ;;  %v3270_v60 = vld [vmem:[%s7748_s13] sm:$0xff] }
 0x711   : > { %3371 = vmatpush1.msra.mxu0 %v3298_v46  ;;  %3449 = vmatprep.subr.mxu1 %v7860_v17  ;;  %v2661_v59 = vsel %vm2652_vm2, %v7924_v36, %v2660_v45  ;;  %v2561_v24 = vsel %vm1122_vm12, %v6732_v7, %v6812_v63  ;;  %vm7925_vm2 = vmmov %vm7919_vm1  ;;  %v2558_v7 = vsel %vm1122_vm12, %v6741_v44, %v6814_v11  ;;  %v3335_v44 = vld [vmem:[#allocation3 + $0x1e8] sm:$0xff]  ;;  %v7931_v42 = vrot.slane %v6543_v61, 2 }
 0x712   : > { %3372 = vmatprep.subr.mxu0 %v2847_v16  ;;  %3450 = vmatpush1.msra.mxu1 %v2849_v56  ;;  %v2559_v16 = vsel %vm1122_vm12, %v6812_v63, %v6595_v31  ;;  %v2562_v31 = vsel %vm1122_vm12, %v6814_v11, %v6739_v23  ;;  %v3336_v23 = vld [vmem:[#allocation3 + $0x1f0] sm:$0xff]  ;;  %v3334_v11 = vld [vmem:[#allocation3 + $0x1e0] sm:$0xff] }
 0x713   : > { %3373 = vmatpush1.msra.mxu0 %v2845_v30  ;;  %v3293_v54 = vld [vmem:[#allocation3 + $0x98] sm:$0xff]  ;;  %v3292_v50 = vld [vmem:[#allocation3 + $0x90] sm:$0xff]  ;;  %3451 = vmatprep.subr.mxu1 %v7860_v17 }
 0x714   : > { %v3210_v41 = vpop.permute.xlu0 %3209  ;;  %v3212_v22 = vpop.permute.xlu1 %3211  ;;  %3374 = vmatprep.subr.mxu0 %v3293_v54  ;;  %3452 = vmatpush1.msra.mxu1 %v3294_v9  ;;  %v7929_v9 = vrot.slane %v6607_v19, 2  ;;  %v3273_v19 = vld [vmem:[%s7748_s13 + $0x18] sm:$0xff]  ;;  %v3272_v61 = vld [vmem:[%s7748_s13 + $0x10] sm:$0xff] }
 0x715   : > { %v6835_v8 = vsel %vm7914_vm8, %v3212_v22, %v6784_v32  ;;  %3375 = vmatpush1.msra.mxu0 %v3292_v50  ;;  %3453 = vmatprep.subr.mxu1 %v7860_v17  ;;  %vm7927_vm8 = vmmov %vm7907_vm4 }
 0x716   : > { %3376 = vmatprep.subr.mxu0 %v2753_v2  ;;  %3454 = vmatpush1.msra.mxu1 %v2755_v14  ;;  %v7930_v2 = vrot.slane %v6611_v51, 2 }
 0x717   : > { %3377 = vmatpush1.msra.mxu0 %v2751_v1  ;;  %v3288_v58 = vld [vmem:[#allocation3 + $0x70] sm:$0xff]  ;;  %v3287_v35 = vld [vmem:[#allocation3 + $0x68] sm:$0xff]  ;;  %3455 = vmatprep.subr.mxu1 %v7860_v17 }
 0x718   : > { %v3208_v55 = vpop.permute.xlu0 %3207  ;;  %v3206_v49 = vpop.permute.xlu1 %3205  ;;  %3378 = vmatprep.subr.mxu0 %v3287_v35  ;;  %3456 = vmatpush1.msra.mxu1 %v3288_v58 }
 0x719   : > { %v3214_v15 = vsel %vm7919_vm1, %v3208_v55, %v3212_v22  ;;  %v3216_v37 = vsel %vm7920_vm15, %v6784_v32, %v3208_v55  ;;  %v3213_v0 = vsel %vm7921_vm10, %v3206_v49, %v3210_v41  ;;  %3379 = vmatpush1.msra.mxu0 %v3286_v6  ;;  %3457 = vmatprep.subr.mxu1 %v7860_v17  ;;  %v3281_v32 = vld [vmem:[#allocation3 + $0x38] sm:$0xff]  ;;  %vm7928_vm1 = vmmov %vm7907_vm4 }
 0x71a   : > { %3380 = vmatprep.subr.mxu0 %v2659_v47  ;;  %3458 = vmatpush1.msra.mxu1 %v2661_v59  ;;  %vm7935_vm15 = vmmov %vm7928_vm1 }
 0x71b   : > { %3381 = vmatpush1.msra.mxu0 %v2657_v33  ;;  %3459 = vmatprep.subr.mxu1 %v7860_v17  ;;  %vm7936_vm10 = vmmov %vm7928_vm1 }
 0x71c   : > { %v3202_v5 = vpop.permute.xlu0 %3201  ;;  %v3115_v62 = vpop.permute.xlu1 %3114  ;;  %3382 = vmatprep.subr.mxu0 %v3281_v32  ;;  %3460 = vmatpush1.msra.mxu1 %v3282_v21 }
 0x71d   : > { %v3215_v45 = vsel %vm7925_vm2, %v3202_v5, %v3206_v49  ;;  %v3217_v10 = vsel %vm7926_vm3, %v3210_v41, %v3202_v5  ;;  %v3121_v46 = vsel %vm7907_vm4, %v3115_v62, %v6798_v39  ;;  %3383 = vmatpush1.msra.mxu0 %v3280_v20  ;;  %3461 = vmatprep.subr.mxu1 %v7860_v17  ;;  %vm7937_vm2 = vmmov %vm7928_vm1 }
 0x71e   : > { %v3137_v57 = vrot.slane %v3121_v46, 2  ;;  %3384 = vmatprep.subr.mxu0 %v2561_v24  ;;  %3462 = vmatpush1.msra.mxu1 %v2559_v16  ;;  %vm7938_vm3 = vmmov %vm7928_vm1 }
 0x71f   : > { %3385 = vmatpush1.msra.mxu0 %v2563_v25  ;;  %3463 = vmatprep.subr.mxu1 %v7860_v17  ;;  %vm7939_vm4 = vmmov %vm7928_vm1 }
 0x720   : > { %3157 = vst [vmem:[#allocation3 + $0x1a0] sm:$0x3f] %v3137_v57  ;;  %v3111_v63 = vpop.permute.xlu1 %3110  ;;  %3386 = vmatprep.subr.mxu0 %v2560_v3  ;;  %3464 = vmatpush1.msra.mxu1 %v2558_v7  ;;  %v3138_v22 = vsel %vm2840_vm9, %v7929_v9, %v3137_v57 }
 0x721   : > { %v3123_v30 = vsel %vm7927_vm8, %v3111_v63, %v3115_v62  ;;  %v3125_v43 = vsel %vm7928_vm1, %v6798_v39, %v3111_v63  ;;  %3387 = vmatpush1.msra.mxu0 %v2562_v31  ;;  %3487 = vmatprep.subr.mxu1 %v7860_v17  ;;  %v3725_v63 = vld [vmem:[%s7750_s15 + $0x8] sm:$0xff]  ;;  %vm7940_vm8 = vmmov %vm7928_vm1  ;;  %vm7941_vm1 = vcmp.lt.s32.totalorder %v5354_v48, 108 }
 0x722   : > { %v3135_v56 = vrot.slane %v3123_v30, 2  ;;  %v3139_v54 = vrot.slane %v3125_v43, 2  ;;  %3410 = vmatprep.subr.mxu0 %v3335_v44  ;;  %3488 = vmatpush2.msra.mxu1 %v3336_v23  ;;  %v3783_v30 = vld [vmem:[%s7751_s16 + $0x8] sm:$0xff]  ;;  %v3782_v43 = vld [vmem:[%s7751_s16] sm:$0xff] }
 0x723   : > { %3411 = vmatpush2.msra.mxu0 %v3334_v11  ;;  %3489 = vmatprep.subr.mxu1 %v7860_v17 }
 0x724   : > { %3156 = vst [vmem:[#allocation3 + $0x198] sm:$0x3f] %v3135_v56  ;;  %3158 = vst [vmem:[#allocation3 + $0x1a8] sm:$0x3f] %v3139_v54  ;;  %3412 = vmatprep.subr.mxu0 %v3214_v15  ;;  %3490 = vmatpush2.msra.mxu1 %v6835_v8  ;;  %v3136_v8 = vsel %vm2840_vm9, %v7930_v2, %v3135_v56  ;;  %v3140_v13 = vsel %vm2840_vm9, %v7931_v42, %v3139_v54 }
 0x725   : > { %3413 = vmatpush2.msra.mxu0 %v3216_v37  ;;  %3491 = vmatprep.subr.mxu1 %v7860_v17 }
 0x726   : > { %3414 = vmatprep.subr.mxu0 %v3213_v0  ;;  %3492 = vmatpush2.msra.mxu1 %v3217_v10 }
 0x727   : > { %3415 = vmatpush2.msra.mxu0 %v3215_v45  ;;  %v3326_v39 = vld [vmem:[#allocation3 + $0x1a0] sm:$0xff]  ;;  %3493 = vmatprep.subr.mxu1 %v7860_v17 }
 0x728   : > { %3416 = vmatprep.subr.mxu0 %v3326_v39 }
 0x729   : > { %v3342_v51 = vpop.permute.xlu0 %3341 }
 0x72b   : > { %v3325_v50 = vld [vmem:[#allocation3 + $0x198] sm:$0xff]  ;;  %v3327_v41 = vld [vmem:[#allocation3 + $0x1a8] sm:$0xff] }
 0x72c   : > { %3417 = vmatpush2.msra.mxu0 %v3325_v50  ;;  %3494 = vmatpush2.msra.mxu1 %v3327_v41 }
 0x72d   : > { %3495 = vmatprep.subr.mxu1 %v7860_v17  ;;  %3418 = vmatprep.subr.mxu0 %v3138_v22  ;;  %v3347_v33 = vpop.permute.xlu1 %3346 }
 0x72e   : > { %3419 = vmatpush2.msra.mxu0 %v3136_v8  ;;  %3496 = vmatpush2.msra.mxu1 %v3140_v13 }
 0x72f   : > { %3421 = vmatmul.mubr.f32.vlgmr.msra.gmra.mxu0 %v3270_v60  ;;  %3498 = vmatmul.mubr.f32.vlgmr.msra.gmra.mxu1 %v3270_v60 }
 0x730   : > { %4863 = vmatprep.mubr.msk.f32.mxu0 %vm3349_vm5, %v3273_v19  ;;  %4865 = vmatprep.mubr.msk.f32.mxu1 %vm3349_vm5, %v3273_v19  ;;  %vm7933_vm5 = vcmask 130048  }
 0x731   : > { %3877 = vmatprep.subr.mxu1 %v7860_v17  ;;  %vm7934_vm9 = vmmov %vm7933_vm5 }
 0x733   : > { %3427 = vmatmul.mubr.f32.gmra.mxu0 %v3272_v61  ;;  %3503 = vmatmul.mubr.f32.gmra.mxu1 %v3272_v61 }
 0x734   : > { %4868 = vmatprep.mubr.msk.f32.mxu1 %vm7933_vm5, %v3725_v63  ;;  %4866 = vmatprep.mubr.msk.f32.mxu0 %vm7934_vm9, %v3725_v63  ;;  %vm7942_vm5 = vmmov %vm7941_vm1 }
 0x735   : > { %vm7943_vm9 = vmmov %vm7941_vm1 }
 0x7ef   : > { %v3422_v14 = vpop.f32.mrf.mxu0  ;;  %v3499_v40 = vpop.f32.mrf.mxu1 }
 0x7f0   : > { %v3500_v1 = vadd.f32 %v3499_v40, %v3342_v51  ;;  %v3423_v35 = vadd.f32 %v3422_v14, %v3342_v51 }
 0x7f1   : > { %v3501_v58 = vpop.f32.mrf.mxu1  ;;  %v3424_v47 = vpop.f32.mrf.mxu0 }
 0x7f2   : > { %v3510_v18 = vmul.f32 0.01, %v3500_v1  ;;  %v3508_v15 = vmul.f32 0.01, %v3423_v35  ;;  %v3425_v0 = vadd.f32 %v3424_v47, %v3342_v51 }
 0x7f3   : > { %v3504_v55 = vpop.f32.mrf.mxu1  ;;  %v3428_v62 = vpop.f32.mrf.mxu0 }
 0x7f4   : > { %v3516_v49 = vmax.f32 %v3500_v1, %v3510_v18  ;;  %v3514_v29 = vmax.f32 %v3423_v35, %v3508_v15  ;;  %v3509_v53 = vmul.f32 0.01, %v3425_v0  ;;  %v3505_v32 = vadd.f32 %v3504_v55, %v3347_v33 }
 0x7f5   : > { %v3506_v6 = vpop.f32.mrf.mxu1  ;;  %v3429_v20 = vadd.f32 %v3428_v62, %v3347_v33  ;;  %v3430_v16 = vpop.f32.mrf.mxu0 }
 0x7f6   : > { %v6933_v37 = vmul.f32 %v3516_v49, %v5556_v26  ;;  %v6944_v36 = vmul.f32 %v3514_v29, %v5496_v4  ;;  %v3515_v59 = vmax.f32 %v3425_v0, %v3509_v53  ;;  %v3513_v5 = vmul.f32 0.01, %v3505_v32 }
 0x7f7   : > { %v3511_v10 = vmul.f32 0.01, %v3429_v20  ;;  %v3431_v57 = vadd.f32 %v3430_v16, %v3347_v33 }
 0x7f8   : > { %3660 = vrot.lane.b32.xlu0 %v6933_v37, %s5010_s27  ;;  %3684 = vrot.lane.b32.xlu1 %v6933_v37, %s7896_s21  ;;  %v6951_v24 = vmul.f32 %v3515_v59, %v5499_v12  ;;  %v3519_v21 = vmax.f32 %v3505_v32, %v3513_v5 }
 0x7f9   : > { %v3517_v46 = vmax.f32 %v3429_v20, %v3511_v10  ;;  %v3512_v3 = vmul.f32 0.01, %v3431_v57 }
 0x7fa   : > { %v6962_v45 = vmul.f32 %v3519_v21, %v5556_v26 }
 0x7fb   : > { %v6977_v25 = vmul.f32 %v3517_v46, %v5496_v4  ;;  %v3518_v7 = vmax.f32 %v3431_v57, %v3512_v3 }
 0x7fc   : > { %3606 = vrot.lane.b32.xlu0 %v6933_v37, %s5008_s18  ;;  %3636 = vrot.lane.b32.xlu1 %v6933_v37, %s5009_s26 }
 0x7fd   : > { %v7004_v31 = vmul.f32 %v3518_v7, %v5499_v12 }
 0x800   : > { %3582 = vrot.lane.b32.xlu1 %v6933_v37, %s7890_s1  ;;  %3676 = vrot.lane.b32.xlu0 %v6944_v36, %s7896_s21 }
 0x804   : > { %3656 = vrot.lane.b32.xlu1 %v6951_v24, %s5010_s27  ;;  %3652 = vrot.lane.b32.xlu0 %v6944_v36, %s5010_s27 }
 0x808   : > { %3602 = vrot.lane.b32.xlu1 %v6951_v24, %s5008_s18  ;;  %3628 = vrot.lane.b32.xlu0 %v6944_v36, %s5009_s26 }
 0x80c   : > { %3662 = vrot.lane.b32.xlu1 %v6962_v45, %s5010_s27  ;;  %3598 = vrot.lane.b32.xlu0 %v6944_v36, %s5008_s18 }
 0x810   : > { %3608 = vrot.lane.b32.xlu1 %v6962_v45, %s5008_s18  ;;  %3574 = vrot.lane.b32.xlu0 %v6944_v36, %s7890_s1 }
 0x814   : > { %3560 = vrot.lane.b32.xlu1 %v6962_v45, %s7891_s2  ;;  %3550 = vrot.lane.b32.xlu0 %v6944_v36, %s7891_s2 }
 0x818   : > { %3678 = vrot.lane.b32.xlu1 %v6977_v25, %s7896_s21  ;;  %3680 = vrot.lane.b32.xlu0 %v6951_v24, %s7896_s21 }
 0x81c   : > { %3654 = vrot.lane.b32.xlu1 %v6977_v25, %s5010_s27  ;;  %3632 = vrot.lane.b32.xlu0 %v6951_v24, %s5009_s26 }
 0x820   : > { %3630 = vrot.lane.b32.xlu1 %v6977_v25, %s5009_s26  ;;  %3578 = vrot.lane.b32.xlu0 %v6951_v24, %s7890_s1 }
 0x824   : > { %3600 = vrot.lane.b32.xlu1 %v6977_v25, %s5008_s18  ;;  %3686 = vrot.lane.b32.xlu0 %v6962_v45, %s7896_s21 }
 0x828   : > { %3576 = vrot.lane.b32.xlu1 %v6977_v25, %s7890_s1  ;;  %3638 = vrot.lane.b32.xlu0 %v6962_v45, %s5009_s26 }
 0x82c   : > { %3552 = vrot.lane.b32.xlu1 %v6977_v25, %s7891_s2  ;;  %3584 = vrot.lane.b32.xlu0 %v6962_v45, %s7890_s1 }
 0x830   : > { %3682 = vrot.lane.b32.xlu1 %v7004_v31, %s7896_s21  ;;  %3558 = vrot.lane.b32.xlu0 %v6933_v37, %s7891_s2 }
 0x834   : > { %3554 = vrot.lane.b32.xlu1 %v6951_v24, %s7891_s2  ;;  %3658 = vrot.lane.b32.xlu0 %v7004_v31, %s5010_s27 }
 0x838   : > { %3634 = vrot.lane.b32.xlu1 %v7004_v31, %s5009_s26  ;;  %3526 = vrot.lane.b32.xlu0 %v6944_v36, %s7932_s0 }
 0x83c   : > { %3528 = vrot.lane.b32.xlu1 %v6977_v25, %s7932_s0  ;;  %3604 = vrot.lane.b32.xlu0 %v7004_v31, %s5008_s18 }
 0x840   : > { %3536 = vrot.lane.b32.xlu1 %v6962_v45, %s7932_s0  ;;  %3534 = vrot.lane.b32.xlu0 %v6933_v37, %s7932_s0 }
 0x844   : > { %3580 = vrot.lane.b32.xlu1 %v7004_v31, %s7890_s1  ;;  %3710 = vrot.lane.b32.xlu0 %v6962_v45, %s7892_s25 }
 0x848   : > { %3530 = vrot.lane.b32.xlu1 %v6951_v24, %s7932_s0  ;;  %3556 = vrot.lane.b32.xlu0 %v7004_v31, %s7891_s2 }
 0x84c   : > { %3702 = vrot.lane.b32.xlu1 %v6977_v25, %s7892_s25  ;;  %3532 = vrot.lane.b32.xlu0 %v7004_v31, %s7932_s0 }
 0x850   : > { %3706 = vrot.lane.b32.xlu1 %v7004_v31, %s7892_s25  ;;  %3704 = vrot.lane.b32.xlu0 %v6951_v24, %s7892_s25 }
 0x854   : > { %3708 = vrot.lane.b32.xlu1 %v6933_v37, %s7892_s25  ;;  %3700 = vrot.lane.b32.xlu0 %v6944_v36, %s7892_s25 }
 0x858   : > { %3791 = vperm.xlu1 %4969, %v3783_v30   ;;  %3786 = vperm.xlu0 %4970, %v3782_v43  }
 0x86a   : > { %v3661_v44 = vpop.permute.xlu0 %3660  ;;  %v3685_v56 = vpop.permute.xlu1 %3684 }
 0x86e   : > { %v7057_v54 = vpop.permute.xlu0 %3606  ;;  %v7059_v23 = vpop.permute.xlu1 %3636 }
 0x872   : > { %v7061_v11 = vpop.permute.xlu1 %3582  ;;  %v3677_v39 = vpop.permute.xlu0 %3676 }
 0x873   : > { %v3692_v55 = vsel %vm7936_vm10, %v3685_v56, %v3677_v39  ;;  %vm7945_vm10 = vmmov %vm7941_vm1 }
 0x876   : > { %v3657_v50 = vpop.permute.xlu1 %3656  ;;  %v3653_v41 = vpop.permute.xlu0 %3652 }
 0x877   : > { %v3664_v16 = vsel %vm1328_vm14, %v3657_v50, %v3661_v44  ;;  %v3666_v57 = vsel %vm1328_vm14, %v3653_v41, %v3657_v50  ;;  %v3668_v3 = vsel %vm1328_vm14, %v3661_v44, %v3653_v41 }
 0x87a   : > { %v7063_v9 = vpop.permute.xlu1 %3602  ;;  %v7065_v22 = vpop.permute.xlu0 %3628 }
 0x87b   : > { %v3644_v44 = vsel %vm1288_vm7, %v7059_v23, %v7065_v22 }
 0x87e   : > { %v3663_v60 = vpop.permute.xlu1 %3662  ;;  %v7067_v2 = vpop.permute.xlu0 %3598 }
 0x882   : > { %v7069_v8 = vpop.permute.xlu1 %3608  ;;  %v7071_v42 = vpop.permute.xlu0 %3574 }
 0x886   : > { %v7073_v13 = vpop.permute.xlu1 %3560  ;;  %v7075_v19 = vpop.permute.xlu0 %3550 }
 0x88a   : > { %v3679_v61 = vpop.permute.xlu1 %3678  ;;  %v3681_v51 = vpop.permute.xlu0 %3680 }
 0x88b   : > { %v3688_v32 = vsel %vm7939_vm4, %v3681_v51, %v3685_v56  ;;  %v3690_v5 = vsel %vm7940_vm8, %v3677_v39, %v3681_v51 }
 0x88e   : > { %v3655_v14 = vpop.permute.xlu1 %3654  ;;  %v3633_v40 = vpop.permute.xlu0 %3632 }
 0x88f   : > { %v3669_v46 = vsel %vm1328_vm14, %v3663_v60, %v3655_v14  ;;  %v3640_v39 = vsel %vm1288_vm7, %v3633_v40, %v7059_v23  ;;  %v3642_v50 = vsel %vm1288_vm7, %v7065_v22, %v3633_v40 }
 0x892   : > { %v3631_v1 = vpop.permute.xlu1 %3630  ;;  %v7077_v58 = vpop.permute.xlu0 %3578 }
 0x893   : > { %v3588_v40 = vsel %vm1205_vm11, %v7071_v42, %v7077_v58 }
 0x896   : > { %v7079_v35 = vpop.permute.xlu1 %3600  ;;  %v3687_v18 = vpop.permute.xlu0 %3686 }
 0x897   : > { %v3693_v47 = vsel %vm7935_vm15, %v3687_v18, %v3679_v61  ;;  %vm7944_vm15 = vmmov %vm7941_vm1 }
 0x898   : > { %3878 = vmatpush1.msra.mxu1 %v3693_v47 }
 0x899   : > { %3879 = vmatprep.subr.mxu1 %v7860_v17 }
 0x89a   : > { %v7086_v49 = vpop.permute.xlu1 %3576  ;;  %v3639_v6 = vpop.permute.xlu0 %3638  ;;  %3880 = vmatpush1.msra.mxu1 %v3692_v55 }
 0x89b   : > { %3881 = vmatprep.subr.mxu1 %v7860_v17  ;;  %v3645_v30 = vsel %vm1288_vm7, %v3639_v6, %v3631_v1 }
 0x89e   : > { %v7089_v15 = vpop.permute.xlu1 %3552  ;;  %v7091_v0 = vpop.permute.xlu0 %3584 }
 0x89f   : > { %v3591_v51 = vsel %vm1205_vm11, %v7091_v0, %v7086_v49  ;;  %v3567_v47 = vsel %vm1165_vm13, %v7073_v13, %v7089_v15 }
 0x8a2   : > { %v3683_v29 = vpop.permute.xlu1 %3682  ;;  %v7093_v53 = vpop.permute.xlu0 %3558 }
 0x8a3   : > { %v3689_v33 = vsel %vm7937_vm2, %v3683_v29, %v3687_v18  ;;  %v3691_v59 = vsel %vm7938_vm3, %v3679_v61, %v3683_v29  ;;  %vm7946_vm2 = vmmov %vm7941_vm1  ;;  %vm7947_vm3 = vcmask 130048  }
 0x8a4   : > { %3800 = vmatprep.subr.mxu0 %v3689_v33  ;;  %vm7948_vm4 = vmmov %vm7947_vm3 }
 0x8a5   : > { %3801 = vmatpush1.msra.mxu0 %v3691_v59  ;;  %vm7949_vm8 = vmmov %vm7947_vm3 }
 0x8a6   : > { %v7103_v21 = vpop.permute.xlu1 %3554  ;;  %v3659_v62 = vpop.permute.xlu0 %3658  ;;  %3802 = vmatprep.subr.mxu0 %v3688_v32 }
 0x8a7   : > { %v3665_v20 = vsel %vm1328_vm14, %v3659_v62, %v3663_v60  ;;  %v3667_v10 = vsel %vm1328_vm14, %v3655_v14, %v3659_v62  ;;  %3803 = vmatpush1.msra.mxu0 %v3690_v5 }
 0x8a8   : > { %3804 = vmatprep.subr.mxu0 %v3667_v10  ;;  %3882 = vmatpush1.msra.mxu1 %v3665_v20  ;;  %v3724_v10 = vld [vmem:[%s7750_s15] sm:$0xff] }
 0x8a9   : > { %3805 = vmatpush1.msra.mxu0 %v3669_v46  ;;  %3883 = vmatprep.subr.mxu1 %v7860_v17 }
 0x8aa   : > { %v3635_v7 = vpop.permute.xlu1 %3634  ;;  %v7118_v63 = vpop.permute.xlu0 %3526  ;;  %3806 = vmatprep.subr.mxu0 %v3666_v57  ;;  %3884 = vmatpush1.msra.mxu1 %v3664_v16 }
 0x8ab   : > { %v3641_v43 = vsel %vm1288_vm7, %v3635_v7, %v3639_v6  ;;  %v3643_v56 = vsel %vm1288_vm7, %v3631_v1, %v3635_v7  ;;  %3807 = vmatpush1.msra.mxu0 %v3668_v3  ;;  %3885 = vmatprep.subr.mxu1 %v7860_v17  ;;  %v3727_v3 = vld [vmem:[%s7750_s15 + $0x18] sm:$0xff]  ;;  %v3726_v7 = vld [vmem:[%s7750_s15 + $0x10] sm:$0xff] }
 0x8ac   : > { %3808 = vmatprep.subr.mxu0 %v3641_v43  ;;  %3886 = vmatpush1.msra.mxu1 %v3645_v30 }
 0x8ad   : > { %3809 = vmatpush1.msra.mxu0 %v3643_v56  ;;  %3887 = vmatprep.subr.mxu1 %v7860_v17 }
 0x8ae   : > { %v7138_v41 = vpop.permute.xlu1 %3528  ;;  %v3605_v60 = vpop.permute.xlu0 %3604  ;;  %3810 = vmatprep.subr.mxu0 %v3640_v39  ;;  %3888 = vmatpush1.msra.mxu1 %v3644_v44 }
 0x8af   : > { %3811 = vmatpush1.msra.mxu0 %v3642_v50  ;;  %3889 = vmatprep.subr.mxu1 %v7860_v17  ;;  %v3611_v22 = vsel %vm1245_vm0, %v3605_v60, %v7069_v8 }
 0x8b0   : > { %3812 = vmatprep.subr.mxu0 %v7004_v31  ;;  %3890 = vmatpush1.msra.mxu1 %v6962_v45  ;;  %v3613_v31 = vsel %vm1245_vm0, %v7079_v35, %v3605_v60  ;;  %v3615_v45 = vsel %vm1245_vm0, %v7069_v8, %v7079_v35 }
 0x8b1   : > { %3813 = vmatpush1.msra.mxu0 %v6977_v25  ;;  %3891 = vmatprep.subr.mxu1 %v7860_v17 }
 0x8b2   : > { %v3537_v23 = vpop.permute.xlu1 %3536  ;;  %v3535_v61 = vpop.permute.xlu0 %3534  ;;  %3814 = vmatprep.subr.mxu0 %v6951_v24  ;;  %3892 = vmatpush1.msra.mxu1 %v6933_v37  ;;  %v3610_v37 = vsel %vm1245_vm0, %v7063_v9, %v7057_v54  ;;  %v3612_v24 = vsel %vm1245_vm0, %v7067_v2, %v7063_v9 }
 0x8b3   : > { %3815 = vmatpush1.msra.mxu0 %v6944_v36  ;;  %3893 = vmatprep.subr.mxu1 %v7860_v17  ;;  %v3614_v36 = vsel %vm1245_vm0, %v7057_v54, %v7067_v2  ;;  %v3590_v54 = vsel %vm1205_vm11, %v7061_v11, %v7071_v42  ;;  %v3586_v2 = vsel %vm1205_vm11, %v7077_v58, %v7061_v11 }
 0x8b4   : > { %3816 = vmatprep.subr.mxu0 %v3613_v31  ;;  %3894 = vmatpush1.msra.mxu1 %v3611_v22  ;;  %v3564_v42 = vsel %vm1165_vm13, %v7075_v19, %v7103_v21  ;;  %v3566_v58 = vsel %vm1165_vm13, %v7093_v53, %v7075_v19  ;;  %v3543_v19 = vsel %vm1122_vm12, %v3537_v23, %v7138_v41 }
 0x8b5   : > { %3817 = vmatpush1.msra.mxu0 %v3615_v45  ;;  %3895 = vmatprep.subr.mxu1 %v7860_v17  ;;  %v3542_v29 = vsel %vm1122_vm12, %v3535_v61, %v7118_v63 }
 0x8b6   : > { %v3581_v25 = vpop.permute.xlu1 %3580  ;;  %v3711_v8 = vpop.permute.xlu0 %3710  ;;  %3896 = vmatpush1.msra.mxu1 %v3610_v37  ;;  %3818 = vmatprep.subr.mxu0 %v3612_v24 }
 0x8b7   : > { %v3587_v9 = vsel %vm1205_vm11, %v3581_v25, %v7091_v0  ;;  %v3589_v14 = vsel %vm1205_vm11, %v7086_v49, %v3581_v25  ;;  %3819 = vmatpush1.msra.mxu0 %v3614_v36  ;;  %3897 = vmatprep.subr.mxu1 %v7860_v17 }
 0x8b8   : > { %3820 = vmatprep.subr.mxu0 %v3587_v9  ;;  %3898 = vmatpush1.msra.mxu1 %v3591_v51 }
 0x8b9   : > { %3821 = vmatpush1.msra.mxu0 %v3589_v14  ;;  %3899 = vmatprep.subr.mxu1 %v7860_v17 }
 0x8ba   : > { %v3531_v1 = vpop.permute.xlu1 %3530  ;;  %v3557_v35 = vpop.permute.xlu0 %3556  ;;  %3900 = vmatpush1.msra.mxu1 %v3590_v54  ;;  %3822 = vmatprep.subr.mxu0 %v3586_v2 }
 0x8bb   : > { %v3563_v18 = vsel %vm1165_vm13, %v3557_v35, %v7073_v13  ;;  %v3565_v11 = vsel %vm1165_vm13, %v7089_v15, %v3557_v35  ;;  %3823 = vmatpush1.msra.mxu0 %v3588_v40  ;;  %3901 = vmatprep.subr.mxu1 %v7860_v17  ;;  %v3562_v13 = vsel %vm1165_vm13, %v7103_v21, %v7093_v53 }
 0x8bc   : > { %3824 = vmatprep.subr.mxu0 %v3565_v11  ;;  %3902 = vmatpush1.msra.mxu1 %v3563_v18  ;;  %v3540_v0 = vsel %vm1122_vm12, %v7118_v63, %v3531_v1  ;;  %v3538_v53 = vsel %vm1122_vm12, %v3531_v1, %v3535_v61 }
 0x8bd   : > { %3825 = vmatpush1.msra.mxu0 %v3567_v47  ;;  %3903 = vmatprep.subr.mxu1 %v7860_v17 }
 0x8be   : > { %v3703_v55 = vpop.permute.xlu1 %3702  ;;  %v3533_v49 = vpop.permute.xlu0 %3532  ;;  %3826 = vmatprep.subr.mxu0 %v3564_v42  ;;  %3904 = vmatpush1.msra.mxu1 %v3562_v13 }
 0x8bf   : > { %v3539_v6 = vsel %vm1122_vm12, %v3533_v49, %v3537_v23  ;;  %v3541_v15 = vsel %vm1122_vm12, %v7138_v41, %v3533_v49  ;;  %3827 = vmatpush1.msra.mxu0 %v3566_v58  ;;  %3905 = vmatprep.subr.mxu1 %v7860_v17  ;;  %v3717_v21 = vsel %vm7943_vm9, %v3711_v8, %v3703_v55  ;;  %v7368_v49 = vld [vmem:[%s7752_s17] sm:$0x3] }
 0x8c0   : > { %3828 = vmatprep.subr.mxu0 %v3541_v15  ;;  %3906 = vmatpush1.msra.mxu1 %v3539_v6  ;;  %v4241_v6 = vrot.slane %v7368_v49, %v5292_v28  ;;  %v4223_v28 = vld [vmem:[#allocation5] sm:$0x1] }
 0x8c1   : > { %3829 = vmatpush1.msra.mxu0 %v3543_v19  ;;  %3907 = vmatprep.subr.mxu1 %v7860_v17 }
 0x8c2   : > { %v3707_v33 = vpop.permute.xlu1 %3706  ;;  %v3705_v59 = vpop.permute.xlu0 %3704  ;;  %3830 = vmatprep.subr.mxu0 %v3540_v0  ;;  %3908 = vmatpush1.msra.mxu1 %v3538_v53 }
 0x8c3   : > { %v3713_v32 = vsel %vm7941_vm1, %v3707_v33, %v3711_v8  ;;  %v3715_v5 = vsel %vm7942_vm5, %v3703_v55, %v3707_v33  ;;  %3831 = vmatpush1.msra.mxu0 %v3542_v29  ;;  %3937 = vmatprep.subr.mxu1 %v7860_v17  ;;  %vm7950_vm1 = vmmov %vm7947_vm3  ;;  %vm7951_vm5 = vcmp.lt.s32.totalorder %v5354_v48, 127 }
 0x8c4   : > { %3860 = vmatprep.subr.mxu0 %v3713_v32  ;;  %3938 = vmatpush2.msra.mxu1 %v3717_v21  ;;  %vm7952_vm9 = vmmov %vm7951_vm5 }
 0x8c5   : > { %3861 = vmatpush2.msra.mxu0 %v3715_v5  ;;  %3939 = vmatprep.subr.mxu1 %v7860_v17 }
 0x8c6   : > { %v3709_v62 = vpop.permute.xlu1 %3708  ;;  %v3701_v20 = vpop.permute.xlu0 %3700 }
 0x8c7   : > { %v3712_v46 = vsel %vm7944_vm15, %v3705_v59, %v3709_v62  ;;  %v3714_v16 = vsel %vm7945_vm10, %v3701_v20, %v3705_v59  ;;  %v3716_v57 = vsel %vm7946_vm2, %v3709_v62, %v3701_v20  ;;  %vm7953_vm15 = vmmov %vm7951_vm5 }
 0x8c8   : > { %3862 = vmatprep.subr.mxu0 %v3712_v46  ;;  %3940 = vmatpush2.msra.mxu1 %v3716_v57  ;;  %vm7954_vm10 = vmmov %vm7951_vm5 }
 0x8c9   : > { %3863 = vmatpush2.msra.mxu0 %v3714_v16  ;;  %3942 = vmatmul.mubr.f32.vlgmr.msra.gmra.mxu1 %v3724_v10  ;;  %vm7955_vm2 = vmmov %vm7951_vm5 }
 0x8ca   : > { %3865 = vmatmul.mubr.f32.vlgmr.msra.gmra.mxu0 %v3724_v10  ;;  %4869 = vmatprep.mubr.msk.f32.mxu1 %vm7947_vm3, %v3727_v3  ;;  %vm7956_vm3 = vmmov %vm7955_vm2 }
 0x8cb   : > { %4867 = vmatprep.mubr.msk.f32.mxu0 %vm7948_vm4, %v3727_v3  ;;  %4316 = vmatprep.subr.mxu1 %v7860_v17  ;;  %vm4427_vm4 = vcmask 131072  }
 0x8cd   : > { %3947 = vmatmul.mubr.f32.gmra.mxu1 %v3726_v7 }
 0x8ce   : > { %3871 = vmatmul.mubr.f32.gmra.mxu0 %v3726_v7  ;;  %4871 = vmatprep.mubr.msk.f32.mxu1 %vm7949_vm8, %v4241_v6  ;;  %vm4483_vm8 = vcmask 105472  }
 0x8cf   : > { %4870 = vmatprep.mubr.msk.f32.mxu0 %vm7950_vm1, %v4241_v6  ;;  %vm7964_vm1 = vcmask 64512  }
 0x8d3   : > { %v3787_v63 = vpop.permute.xlu0 %3786  ;;  %v3792_v60 = vpop.permute.xlu1 %3791 }
 0x989   : > { %v3943_v30 = vpop.f32.mrf.mxu1 }
 0x98a   : > { %v3944_v43 = vadd.f32 %v3943_v30, %v3787_v63  ;;  %v3866_v56 = vpop.f32.mrf.mxu0 }
 0x98b   : > { %v3867_v44 = vadd.f32 %v3866_v56, %v3787_v63  ;;  %v3945_v39 = vpop.f32.mrf.mxu1 }
 0x98c   : > { %v3954_v50 = vmul.f32 0.01, %v3944_v43  ;;  %v3868_v41 = vpop.f32.mrf.mxu0 }
 0x98d   : > { %v3952_v23 = vmul.f32 0.01, %v3867_v44  ;;  %v3869_v61 = vadd.f32 %v3868_v41, %v3787_v63  ;;  %v3948_v22 = vpop.f32.mrf.mxu1 }
 0x98e   : > { %v3960_v31 = vmax.f32 %v3944_v43, %v3954_v50  ;;  %v3949_v45 = vadd.f32 %v3948_v22, %v3792_v60  ;;  %v3872_v37 = vpop.f32.mrf.mxu0 }
 0x98f   : > { %v3958_v24 = vmax.f32 %v3867_v44, %v3952_v23  ;;  %v3953_v36 = vmul.f32 0.01, %v3869_v61  ;;  %v3873_v25 = vadd.f32 %v3872_v37, %v3792_v60  ;;  %v3950_v8 = vpop.f32.mrf.mxu1 }
 0x990   : > { %v7265_v51 = vmul.f32 %v3960_v31, %v5556_v26  ;;  %v3957_v9 = vmul.f32 0.01, %v3949_v45  ;;  %v3874_v14 = vpop.f32.mrf.mxu0 }
 0x991   : > { %v7268_v54 = vmul.f32 %v3958_v24, %v5496_v4  ;;  %v3959_v2 = vmax.f32 %v3869_v61, %v3953_v36  ;;  %v3955_v40 = vmul.f32 0.01, %v3873_v25  ;;  %v3875_v1 = vadd.f32 %v3874_v14, %v3792_v60 }
 0x992   : > { %4068 = vst [vmem:[#allocation3 + $0xd0] sm:$0xff] %v7265_v51  ;;  %v3963_v35 = vmax.f32 %v3949_v45, %v3957_v9  ;;  %4104 = vrot.lane.b32.xlu0 %v7265_v51, %s5010_s27  ;;  %4128 = vrot.lane.b32.xlu1 %v7265_v51, %s7896_s21 }
 0x993   : > { %4066 = vst [vmem:[#allocation3 + $0xc0] sm:$0xff] %v7268_v54  ;;  %v7277_v18 = vmul.f32 %v3959_v2, %v5499_v12  ;;  %v3961_v11 = vmax.f32 %v3873_v25, %v3955_v40  ;;  %v3956_v47 = vmul.f32 0.01, %v3875_v1 }
 0x994   : > { %v7280_v42 = vmul.f32 %v3963_v35, %v5556_v26 }
 0x995   : > { %4067 = vst [vmem:[#allocation3 + $0xc8] sm:$0xff] %v7277_v18  ;;  %v7284_v58 = vmul.f32 %v3961_v11, %v5496_v4  ;;  %v3962_v13 = vmax.f32 %v3875_v1, %v3956_v47 }
 0x996   : > { %4050 = vrot.lane.b32.xlu0 %v7265_v51, %s5008_s18  ;;  %4080 = vrot.lane.b32.xlu1 %v7265_v51, %s5009_s26 }
 0x997   : > { %v7291_v55 = vmul.f32 %v3962_v13, %v5499_v12 }
 0x99a   : > { %4026 = vrot.lane.b32.xlu1 %v7265_v51, %s7890_s1  ;;  %4120 = vrot.lane.b32.xlu0 %v7268_v54, %s7896_s21 }
 0x99e   : > { %4106 = vrot.lane.b32.xlu1 %v7280_v42, %s5010_s27  ;;  %4096 = vrot.lane.b32.xlu0 %v7268_v54, %s5010_s27 }
 0x9a2   : > { %4052 = vrot.lane.b32.xlu1 %v7280_v42, %s5008_s18  ;;  %4072 = vrot.lane.b32.xlu0 %v7268_v54, %s5009_s26 }
 0x9a6   : > { %4004 = vrot.lane.b32.xlu1 %v7280_v42, %s7891_s2  ;;  %4042 = vrot.lane.b32.xlu0 %v7268_v54, %s5008_s18 }
 0x9aa   : > { %4100 = vrot.lane.b32.xlu1 %v7277_v18, %s5010_s27  ;;  %4018 = vrot.lane.b32.xlu0 %v7268_v54, %s7890_s1 }
 0x9ae   : > { %4046 = vrot.lane.b32.xlu1 %v7277_v18, %s5008_s18  ;;  %3994 = vrot.lane.b32.xlu0 %v7268_v54, %s7891_s2 }
 0x9b2   : > { %4122 = vrot.lane.b32.xlu1 %v7284_v58, %s7896_s21  ;;  %4130 = vrot.lane.b32.xlu0 %v7280_v42, %s7896_s21 }
 0x9b6   : > { %4098 = vrot.lane.b32.xlu1 %v7284_v58, %s5010_s27  ;;  %4082 = vrot.lane.b32.xlu0 %v7280_v42, %s5009_s26 }
 0x9ba   : > { %4074 = vrot.lane.b32.xlu1 %v7284_v58, %s5009_s26  ;;  %4028 = vrot.lane.b32.xlu0 %v7280_v42, %s7890_s1 }
 0x9be   : > { %4044 = vrot.lane.b32.xlu1 %v7284_v58, %s5008_s18  ;;  %4124 = vrot.lane.b32.xlu0 %v7277_v18, %s7896_s21 }
 0x9c2   : > { %4020 = vrot.lane.b32.xlu1 %v7284_v58, %s7890_s1  ;;  %4076 = vrot.lane.b32.xlu0 %v7277_v18, %s5009_s26 }
 0x9c6   : > { %3996 = vrot.lane.b32.xlu1 %v7284_v58, %s7891_s2  ;;  %4022 = vrot.lane.b32.xlu0 %v7277_v18, %s7890_s1 }
 0x9ca   : > { %4126 = vrot.lane.b32.xlu1 %v7291_v55, %s7896_s21  ;;  %4002 = vrot.lane.b32.xlu0 %v7265_v51, %s7891_s2  ;;  %s7963_s21 = sld [smem:[#allocation18_spill]] }
 0x9ce   : > { %3998 = vrot.lane.b32.xlu1 %v7277_v18, %s7891_s2  ;;  %4102 = vrot.lane.b32.xlu0 %v7291_v55, %s5010_s27  ;;  %s5019_s27 = smov 84  }
 0x9d2   : > { %4078 = vrot.lane.b32.xlu1 %v7291_v55, %s5009_s26  ;;  %3970 = vrot.lane.b32.xlu0 %v7268_v54, %s7932_s0  ;;  %s5024_s26 = smov 27  }
 0x9d6   : > { %3972 = vrot.lane.b32.xlu1 %v7284_v58, %s7932_s0  ;;  %4048 = vrot.lane.b32.xlu0 %v7291_v55, %s5008_s18  ;;  %s4915_s18 = smul.u32 3, %s7978_s24 }
 0x9d8   : > { %s651_s28 = scalar_lea.vmem %s7754_s19, %s4915_s18  ;;  %s5015_s18 = smov 51  }
 0x9da   : > { %3980 = vrot.lane.b32.xlu1 %v7280_v42, %s7932_s0  ;;  %3978 = vrot.lane.b32.xlu0 %v7265_v51, %s7932_s0 }
 0x9de   : > { %4024 = vrot.lane.b32.xlu1 %v7291_v55, %s7890_s1  ;;  %4154 = vrot.lane.b32.xlu0 %v7280_v42, %s7892_s25  ;;  %s5020_s1 = smov 103  }
 0x9e2   : > { %3974 = vrot.lane.b32.xlu1 %v7277_v18, %s7932_s0  ;;  %4000 = vrot.lane.b32.xlu0 %v7291_v55, %s7891_s2  ;;  %s5016_s2 = smov 70  }
 0x9e6   : > { %4146 = vrot.lane.b32.xlu1 %v7284_v58, %s7892_s25  ;;  %3976 = vrot.lane.b32.xlu0 %v7291_v55, %s7932_s0  ;;  %s5022_s0 = smov 65  }
 0x9ea   : > { %4150 = vrot.lane.b32.xlu1 %v7291_v55, %s7892_s25  ;;  %4148 = vrot.lane.b32.xlu0 %v7277_v18, %s7892_s25 }
 0x9ee   : > { %4152 = vrot.lane.b32.xlu1 %v7265_v51, %s7892_s25  ;;  %4144 = vrot.lane.b32.xlu0 %v7268_v54, %s7892_s25 }
 0x9f2   : > { %4226 = vperm.xlu1 %4969, %v4223_v28  }
 0xa04   : > { %v4105_v15 = vpop.permute.xlu0 %4104  ;;  %v4129_v19 = vpop.permute.xlu1 %4128 }
 0xa08   : > { %v4051_v0 = vpop.permute.xlu0 %4050  ;;  %v4081_v29 = vpop.permute.xlu1 %4080 }
 0xa0c   : > { %v4027_v53 = vpop.permute.xlu1 %4026  ;;  %v4121_v33 = vpop.permute.xlu0 %4120 }
 0xa0d   : > { %v4136_v59 = vsel %vm7951_vm5, %v4129_v19, %v4121_v33  ;;  %vm4616_vm5 = vcmask 138240  }
 0xa10   : > { %v7392_v32 = vpop.permute.xlu1 %4106  ;;  %v4097_v5 = vpop.permute.xlu0 %4096 }
 0xa11   : > { %v7396_v21 = vsel %vm1328_vm14, %v4105_v15, %v4097_v5 }
 0xa14   : > { %v7398_v62 = vpop.permute.xlu1 %4052  ;;  %v4073_v20 = vpop.permute.xlu0 %4072 }
 0xa15   : > { %v7402_v10 = vsel %vm1288_vm7, %v4081_v29, %v4073_v20 }
 0xa18   : > { %v7404_v46 = vpop.permute.xlu1 %4004  ;;  %v4043_v16 = vpop.permute.xlu0 %4042 }
 0xa19   : > { %v7408_v57 = vsel %vm1245_vm0, %v4051_v0, %v4043_v16 }
 0xa1a   : > { %4060 = vst [vmem:[#allocation3 + $0x90] sm:$0xff] %v7408_v57 }
 0xa1c   : > { %v4101_v3 = vpop.permute.xlu1 %4100  ;;  %v4019_v7 = vpop.permute.xlu0 %4018 }
 0xa1d   : > { %v7413_v63 = vsel %vm1328_vm14, %v4101_v3, %v4105_v15  ;;  %v7417_v30 = vsel %vm1328_vm14, %v4097_v5, %v4101_v3  ;;  %v7421_v43 = vsel %vm1205_vm11, %v4027_v53, %v4019_v7 }
 0xa1e   : > { %4038 = vst [vmem:[#allocation3 + $0x70] sm:$0xff] %v7421_v43 }
 0xa20   : > { %v4047_v56 = vpop.permute.xlu1 %4046  ;;  %v3995_v44 = vpop.permute.xlu0 %3994 }
 0xa21   : > { %v7426_v39 = vsel %vm1245_vm0, %v4047_v56, %v4051_v0  ;;  %v7430_v50 = vsel %vm1245_vm0, %v4043_v16, %v4047_v56 }
 0xa22   : > { %4061 = vst [vmem:[#allocation3 + $0x98] sm:$0xff] %v7430_v50  ;;  %4062 = vst [vmem:[#allocation3 + $0xa0] sm:$0xff] %v7426_v39 }
 0xa24   : > { %v4123_v41 = vpop.permute.xlu1 %4122  ;;  %v4131_v60 = vpop.permute.xlu0 %4130 }
 0xa25   : > { %v4137_v23 = vsel %vm7952_vm9, %v4131_v60, %v4123_v41  ;;  %vm7975_vm9 = vcmask 261120  }
 0xa26   : > { %4143 = vst [vmem:[#allocation3 + $0x178] sm:$0xff] %v4137_v23  ;;  %4317 = vmatpush1.msra.mxu1 %v4137_v23 }
 0xa27   : > { %4318 = vmatprep.subr.mxu1 %v7860_v17 }
 0xa28   : > { %v4099_v61 = vpop.permute.xlu1 %4098  ;;  %v4083_v22 = vpop.permute.xlu0 %4082  ;;  %4319 = vmatpush1.msra.mxu1 %v4136_v59 }
 0xa29   : > { %v4113_v31 = vsel %vm1328_vm14, %v7392_v32, %v4099_v61  ;;  %4320 = vmatprep.subr.mxu1 %v7860_v17 }
 0xa2a   : > { %4117 = vst [vmem:[#allocation3 + $0x138] sm:$0xff] %v4113_v31 }
 0xa2c   : > { %v4075_v45 = vpop.permute.xlu1 %4074  ;;  %v7441_v37 = vpop.permute.xlu0 %4028 }
 0xa2d   : > { %v4089_v24 = vsel %vm1288_vm7, %v4083_v22, %v4075_v45 }
 0xa2e   : > { %4095 = vst [vmem:[#allocation3 + $0x118] sm:$0xff] %v4089_v24 }
 0xa30   : > { %v7445_v36 = vpop.permute.xlu1 %4044  ;;  %v4125_v25 = vpop.permute.xlu0 %4124 }
 0xa31   : > { %v7451_v8 = vsel %vm1245_vm0, %v7398_v62, %v7445_v36  ;;  %v4132_v9 = vsel %vm7953_vm15, %v4125_v25, %v4129_v19  ;;  %v4134_v14 = vsel %vm7954_vm10, %v4121_v33, %v4125_v25  ;;  %vm7976_vm15 = vmmov %vm7975_vm9  ;;  %vm4734_vm10 = vcmask 253952  }
 0xa34   : > { %v7457_v2 = vpop.permute.xlu1 %4020  ;;  %v4077_v40 = vpop.permute.xlu0 %4076 }
 0xa35   : > { %v7463_v1 = vsel %vm1205_vm11, %v7441_v37, %v7457_v2  ;;  %v4084_v35 = vsel %vm1288_vm7, %v4077_v40, %v4081_v29  ;;  %v4086_v11 = vsel %vm1288_vm7, %v4073_v20, %v4077_v40 }
 0xa38   : > { %v7469_v47 = vpop.permute.xlu1 %3996  ;;  %v4023_v13 = vpop.permute.xlu0 %4022 }
 0xa39   : > { %v7475_v6 = vsel %vm1165_vm13, %v7404_v46, %v7469_v47  ;;  %v7479_v28 = vsel %vm1205_vm11, %v4023_v13, %v4027_v53  ;;  %v7483_v15 = vsel %vm1205_vm11, %v4019_v7, %v4023_v13 }
 0xa3a   : > { %4036 = vst [vmem:[#allocation3 + $0x60] sm:$0xff] %v7483_v15  ;;  %4037 = vst [vmem:[#allocation3 + $0x68] sm:$0xff] %v7479_v28 }
 0xa3c   : > { %v4127_v19 = vpop.permute.xlu1 %4126  ;;  %v4003_v0 = vpop.permute.xlu0 %4002 }
 0xa3d   : > { %v4133_v29 = vsel %vm7955_vm2, %v4127_v19, %v4131_v60  ;;  %v4135_v33 = vsel %vm7956_vm3, %v4123_v41, %v4127_v19  ;;  %v7493_v53 = vsel %vm1165_vm13, %v4003_v0, %v3995_v44 }
 0xa3e   : > { %4141 = vst [vmem:[#allocation3 + $0x168] sm:$0xff] %v4135_v33  ;;  %4142 = vst [vmem:[#allocation3 + $0x170] sm:$0xff] %v4133_v29  ;;  %4245 = vmatprep.subr.mxu0 %v4133_v29 }
 0xa3f   : > { %4012 = vst [vmem:[#allocation3 + $0x30] sm:$0xff] %v7493_v53  ;;  %4246 = vmatpush1.msra.mxu0 %v4135_v33 }
 0xa40   : > { %v3999_v59 = vpop.permute.xlu1 %3998  ;;  %v4103_v5 = vpop.permute.xlu0 %4102  ;;  %4247 = vmatprep.subr.mxu0 %v4132_v9  ;;  %v4237_v9 = vrot.slane %v7368_v49, %v5289_v27 }
 0xa41   : > { %v7498_v20 = vsel %vm1165_vm13, %v3999_v59, %v4003_v0  ;;  %v7502_v16 = vsel %vm1165_vm13, %v3995_v44, %v3999_v59  ;;  %v4109_v3 = vsel %vm1328_vm14, %v4103_v5, %v7392_v32  ;;  %v4111_v7 = vsel %vm1328_vm14, %v4099_v61, %v4103_v5  ;;  %4248 = vmatpush1.msra.mxu0 %v4134_v14 }
 0xa42   : > { %4013 = vst [vmem:[#allocation3 + $0x38] sm:$0xff] %v7502_v16  ;;  %4014 = vst [vmem:[#allocation3 + $0x40] sm:$0xff] %v7498_v20  ;;  %4249 = vmatprep.subr.mxu0 %v4111_v7  ;;  %4321 = vmatpush1.msra.mxu1 %v4109_v3 }
 0xa43   : > { %4118 = vst [vmem:[#allocation3 + $0x140] sm:$0xff] %v4111_v7  ;;  %4119 = vst [vmem:[#allocation3 + $0x148] sm:$0xff] %v4109_v3  ;;  %4250 = vmatpush1.msra.mxu0 %v4113_v31  ;;  %4322 = vmatprep.subr.mxu1 %v7860_v17  ;;  %v4630_v7 = vld [vmem:[%s7963_s21 + $0x50] sm:$0xff] }
 0xa44   : > { %v4079_v56 = vpop.permute.xlu1 %4078  ;;  %v3971_v44 = vpop.permute.xlu0 %3970  ;;  %4251 = vmatprep.subr.mxu0 %v7417_v30  ;;  %4323 = vmatpush1.msra.mxu1 %v7413_v63 }
 0xa45   : > { %v4085_v32 = vsel %vm1288_vm7, %v4079_v56, %v4083_v22  ;;  %v4087_v41 = vsel %vm1288_vm7, %v4075_v45, %v4079_v56  ;;  %4252 = vmatpush1.msra.mxu0 %v7396_v21  ;;  %4324 = vmatprep.subr.mxu1 %v7860_v17  ;;  %v4629_v56 = vld [vmem:[%s7963_s21 + $0x48] sm:$0xff] }
 0xa46   : > { %4093 = vst [vmem:[#allocation3 + $0x108] sm:$0xff] %v4087_v41  ;;  %4094 = vst [vmem:[#allocation3 + $0x110] sm:$0xff] %v4085_v32  ;;  %4253 = vmatprep.subr.mxu0 %v4085_v32  ;;  %4325 = vmatpush1.msra.mxu1 %v4089_v24  ;;  %v4627_v32 = vld [vmem:[%s7963_s21 + $0x38] sm:$0xff] }
 0xa47   : > { %4254 = vmatpush1.msra.mxu0 %v4087_v41  ;;  %4326 = vmatprep.subr.mxu1 %v7860_v17  ;;  %v4626_v41 = vld [vmem:[%s7963_s21 + $0x30] sm:$0xff] }
 0xa48   : > { %v3973_v30 = vpop.permute.xlu1 %3972  ;;  %v4049_v60 = vpop.permute.xlu0 %4048  ;;  %4255 = vmatprep.subr.mxu0 %v4084_v35  ;;  %4327 = vmatpush1.msra.mxu1 %v7402_v10 }
 0xa49   : > { %v4055_v63 = vsel %vm1245_vm0, %v4049_v60, %v7398_v62  ;;  %v4057_v21 = vsel %vm1245_vm0, %v7445_v36, %v4049_v60  ;;  %4256 = vmatpush1.msra.mxu0 %v4086_v11  ;;  %4328 = vmatprep.subr.mxu1 %v7860_v17  ;;  %vm7957_vm0 = vcmp.lt.s32.totalorder %v5354_v48, 108  ;;  %v4625_v60 = vld [vmem:[%s7963_s21 + $0x28] sm:$0xff] }
 0xa4a   : > { %4257 = vmatprep.subr.mxu0 %v7291_v55  ;;  %4329 = vmatpush1.msra.mxu1 %v7280_v42  ;;  %vm7961_vm14 = vmmov %vm7957_vm0 }
 0xa4b   : > { %4258 = vmatpush1.msra.mxu0 %v7284_v58  ;;  %4330 = vmatprep.subr.mxu1 %v7860_v17  ;;  %vm7962_vm7 = vmmov %vm7957_vm0 }
 0xa4c   : > { %v3981_v10 = vpop.permute.xlu1 %3980  ;;  %v3979_v23 = vpop.permute.xlu0 %3978  ;;  %4259 = vmatprep.subr.mxu0 %v7277_v18  ;;  %4331 = vmatpush1.msra.mxu1 %v7265_v51 }
 0xa4d   : > { %v3987_v62 = vsel %vm1122_vm12, %v3981_v10, %v3973_v30  ;;  %v3986_v61 = vsel %vm1122_vm12, %v3979_v23, %v3971_v44  ;;  %4260 = vmatpush1.msra.mxu0 %v7268_v54  ;;  %4332 = vmatprep.subr.mxu1 %v7860_v17 }
 0xa4e   : > { %3991 = vst [vmem:[#allocation3 + $0x18] sm:$0xff] %v3987_v62  ;;  %3988 = vst [vmem:[#allocation3] sm:$0xff] %v3986_v61  ;;  %4261 = vmatprep.subr.mxu0 %v4057_v21  ;;  %4333 = vmatpush1.msra.mxu1 %v4055_v63  ;;  %v4624_v63 = vld [vmem:[%s7963_s21 + $0x20] sm:$0xff]  ;;  %v4623_v21 = vld [vmem:[%s7963_s21 + $0x18] sm:$0xff] }
 0xa4f   : > { %4262 = vmatpush1.msra.mxu0 %v7451_v8  ;;  %4334 = vmatprep.subr.mxu1 %v7860_v17 }
 0xa50   : > { %v4025_v18 = vpop.permute.xlu1 %4024  ;;  %v4155_v51 = vpop.permute.xlu0 %4154  ;;  %4335 = vmatpush1.msra.mxu1 %v7426_v39  ;;  %4263 = vmatprep.subr.mxu0 %v7430_v50 }
 0xa51   : > { %v4031_v54 = vsel %vm1205_vm11, %v4025_v18, %v7441_v37  ;;  %v4033_v42 = vsel %vm1205_vm11, %v7457_v2, %v4025_v18  ;;  %4264 = vmatpush1.msra.mxu0 %v7408_v57  ;;  %4336 = vmatprep.subr.mxu1 %v7860_v17  ;;  %vm7958_vm11 = vmmov %vm7957_vm0 }
 0xa52   : > { %4265 = vmatprep.subr.mxu0 %v4031_v54  ;;  %4337 = vmatpush1.msra.mxu1 %v7463_v1  ;;  %v4620_v54 = vld [vmem:[%s7963_s21] sm:$0xff] }
 0xa53   : > { %4266 = vmatpush1.msra.mxu0 %v4033_v42  ;;  %4338 = vmatprep.subr.mxu1 %v7860_v17 }
 0xa54   : > { %v3975_v58 = vpop.permute.xlu1 %3974  ;;  %v4001_v55 = vpop.permute.xlu0 %4000  ;;  %4339 = vmatpush1.msra.mxu1 %v7421_v43  ;;  %4267 = vmatprep.subr.mxu0 %v7479_v28 }
 0xa55   : > { %v3982_v39 = vsel %vm1122_vm12, %v3975_v58, %v3979_v23  ;;  %v3984_v57 = vsel %vm1122_vm12, %v3971_v44, %v3975_v58  ;;  %v4007_v50 = vsel %vm1165_vm13, %v4001_v55, %v7404_v46  ;;  %v4009_v22 = vsel %vm1165_vm13, %v7469_v47, %v4001_v55  ;;  %4268 = vmatpush1.msra.mxu0 %v7483_v15  ;;  %vm7960_vm13 = vmmov %vm7957_vm0  ;;  %v4628_v44 = vld [vmem:[%s7963_s21 + $0x40] sm:$0xff]  ;;  %v4638_v58 = vld [vmem:[%s7963_s21 + $0x90] sm:$0x1] }
 0xa56   : > { %3989 = vst [vmem:[#allocation3 + $0x8] sm:$0xff] %v3984_v57  ;;  %3990 = vst [vmem:[#allocation3 + $0x10] sm:$0xff] %v3982_v39  ;;  %4340 = vmatprep.subr.mxu1 %v7860_v17  ;;  %4269 = vmatprep.subr.mxu0 %v4009_v22 }
 0xa57   : > { %4341 = vmatpush1.msra.mxu1 %v4007_v50  ;;  %4270 = vmatpush1.msra.mxu0 %v7475_v6  ;;  %v4636_v50 = vld [vmem:[%s7963_s21 + $0x80] sm:$0xff] }
 0xa58   : > { %v4147_v43 = vpop.permute.xlu1 %4146  ;;  %v3977_v31 = vpop.permute.xlu0 %3976  ;;  %4342 = vmatprep.subr.mxu1 %v7860_v17  ;;  %4271 = vmatprep.subr.mxu0 %v7502_v16  ;;  %v4634_v16 = vld [vmem:[%s7963_s21 + $0x70] sm:$0xff] }
 0xa59   : > { %v4161_v46 = vsel %vm7957_vm0, %v4155_v51, %v4147_v43  ;;  %v3983_v45 = vsel %vm1122_vm12, %v3977_v31, %v3981_v10  ;;  %v3985_v37 = vsel %vm1122_vm12, %v3973_v30, %v3977_v31  ;;  %4343 = vmatpush1.msra.mxu1 %v7498_v20  ;;  %4272 = vmatpush1.msra.mxu0 %v7493_v53  ;;  %vm7959_vm12 = vmmov %vm7957_vm0  ;;  %v4635_v20 = vld [vmem:[%s7963_s21 + $0x78] sm:$0xff]  ;;  %v4622_v10 = vld [vmem:[%s7963_s21 + $0x10] sm:$0xff] }
 0xa5a   : > { %4167 = vst [vmem:[#allocation3 + $0x1a8] sm:$0xff] %v4161_v46  ;;  %3992 = vst [vmem:[#allocation3 + $0x20] sm:$0xff] %v3985_v37  ;;  %4344 = vmatprep.subr.mxu1 %v7860_v17  ;;  %4273 = vmatprep.subr.mxu0 %v3985_v37 }
 0xa5b   : > { %3993 = vst [vmem:[#allocation3 + $0x28] sm:$0xff] %v3983_v45  ;;  %4345 = vmatpush1.msra.mxu1 %v3983_v45  ;;  %4274 = vmatpush1.msra.mxu0 %v3987_v62 }
 0xa5c   : > { %v4151_v24 = vpop.permute.xlu1 %4150  ;;  %v4149_v36 = vpop.permute.xlu0 %4148  ;;  %4346 = vmatprep.subr.mxu1 %v7860_v17  ;;  %4275 = vmatprep.subr.mxu0 %v3984_v57  ;;  %v4637_v57 = vld [vmem:[%s7963_s21 + $0x88] sm:$0xff] }
 0xa5d   : > { %v4157_v25 = vsel %vm7958_vm11, %v4151_v24, %v4155_v51  ;;  %v4159_v8 = vsel %vm7959_vm12, %v4147_v43, %v4151_v24  ;;  %4347 = vmatpush1.msra.mxu1 %v3982_v39  ;;  %4276 = vmatpush1.msra.mxu0 %v3986_v61  ;;  %v4621_v61 = vld [vmem:[%s7963_s21 + $0x8] sm:$0xff] }
 0xa5e   : > { %4165 = vst [vmem:[#allocation3 + $0x198] sm:$0xff] %v4159_v8  ;;  %4166 = vst [vmem:[#allocation3 + $0x1a0] sm:$0xff] %v4157_v25  ;;  %4376 = vmatprep.subr.mxu1 %v7860_v17  ;;  %4305 = vmatprep.subr.mxu0 %v4157_v25 }
 0xa5f   : > { %4377 = vmatpush2.msra.mxu1 %v4161_v46  ;;  %4306 = vmatpush2.msra.mxu0 %v4159_v8 }
 0xa60   : > { %v4153_v14 = vpop.permute.xlu1 %4152  ;;  %v4145_v2 = vpop.permute.xlu0 %4144  ;;  %4378 = vmatprep.subr.mxu1 %v7860_v17 }
 0xa61   : > { %v4156_v40 = vsel %vm7960_vm13, %v4149_v36, %v4153_v14  ;;  %v4158_v1 = vsel %vm7961_vm14, %v4145_v2, %v4149_v36  ;;  %v4160_v35 = vsel %vm7962_vm7, %v4153_v14, %v4145_v2 }
 0xa62   : > { %4307 = vmatprep.subr.mxu0 %v4156_v40  ;;  %4379 = vmatpush2.msra.mxu1 %v4160_v35 }
 0xa63   : > { %4308 = vmatpush2.msra.mxu0 %v4158_v1  ;;  %4381 = vmatmul.mubr.f32.vlgmr.msra.gmra.mxu1 %v4237_v9 }
 0xa64   : > { %4310 = vmatmul.mubr.f32.vlgmr.msra.gmra.mxu0 %v4237_v9  ;;  %4652 = vmatprep.subr.mxu0 %v7860_v17 }
 0xa65   : > { %4653 = vmatpush1.msra.mxu0 %v4635_v20 }
 0xa66   : > { %4654 = vmatprep.subr.mxu0 %v7860_v17 }
 0xa67   : > { %4655 = vmatpush1.msra.mxu0 %v4634_v16 }
 0xa68   : > { %4656 = vmatprep.subr.mxu0 %v7860_v17 }
 0xa6d   : > { %v4227_v49 = vpop.permute.xlu1 %4226 }
 0xa6e   : > { %v4232_v11 = vrot.slane %v4227_v49, %v5289_v27 }
 0xb23   : > { %v4382_v47 = vpop.f32.mrf.mxu1 }
 0xb24   : > { %v4311_v13 = vpop.f32.mrf.mxu0  ;;  %v4383_v6 = vadd.f32 %v4382_v47, %v4232_v11  ;;  %v7965_v47 = vld [vmem:[#allocation11_spill] sm:$0xff] }
 0xb25   : > { %v4312_v28 = vadd.f32 %v4311_v13, %v4232_v11  ;;  %v4384_v15 = vpop.f32.mrf.mxu1 }
 0xb26   : > { %v4313_v19 = vpop.f32.mrf.mxu0  ;;  %v4388_v48 = vmul.f32 %v4383_v6, %v5556_v26  ;;  %v4632_v26 = vld [vmem:[%s7963_s21 + $0x60] sm:$0xff] }
 0xb27   : > { %v4314_v0 = vadd.f32 %v4313_v19, %v4232_v11  ;;  %v4386_v29 = vmul.f32 %v4312_v28, %v5496_v4  ;;  %v7966_v28 = vld [vmem:[#allocation6_spill] sm:$0xff]  ;;  %v7967_v19 = vld [vmem:[#allocation7_spill] sm:$0xff] }
 0xb28   : > { %v4406_v59 = vrot.slane %v4388_v48, %v5358_v52 }
 0xb29   : > { %v4387_v33 = vmul.f32 %v4314_v0, %v5499_v12  ;;  %v4633_v12 = vld [vmem:[%s7963_s21 + $0x68] sm:$0xff] }
 0xb2a   : > { %4657 = vmatpush1.msra.mxu0 %v4633_v12  ;;  %v7972_v12 = vld [vmem:[#allocation12_spill] sm:$0xff] }
 0xb2b   : > { %v4392_v53 = vcombine.low %v4386_v29, %v4387_v33  ;;  %4658 = vmatprep.subr.mxu0 %v7860_v17  ;;  %v7968_v29 = vld [vmem:[#allocation13_spill] sm:$0xff] }
 0xb2c   : > { %4659 = vmatpush1.msra.mxu0 %v4632_v26 }
 0xb2d   : > { %v4399_v5 = vrot.slane %v4392_v53, %v5358_v52  ;;  %4660 = vmatprep.subr.mxu0 %v7860_v17  ;;  %v7969_v53 = vld [vmem:[#allocation9_spill] sm:$0xff] }
 0xb2f   : > { %v4407_v3 = vcombine.low %v4399_v5, %v4406_v59  ;;  %v7970_v5 = vld [vmem:[#allocation8_spill] sm:$0xff] }
 0xb31   : > { %v4414_v4 = vrot.slane %v4407_v3, %v5358_v52  ;;  %v4631_v52 = vld [vmem:[%s7963_s21 + $0x58] sm:$0xff] }
 0xb32   : > { %4661 = vmatpush1.msra.mxu0 %v4631_v52  ;;  %v7971_v3 = vld [vmem:[#allocation14_spill] sm:$0xff] }
 0xb33   : > { %4416 = vst.msk [vmem:[%s651_s28] sm:$0x7] %vm5295_vm6, %v4414_v4  ;;  %4417 = vst.msk [vmem:[#allocation2] ss:$2 sm:$0x7] %vm5295_vm6, %v4414_v4  ;;  %4662 = vmatprep.subr.mxu0 %v7860_v17  ;;  %vm4648_vm6 = vcmask 1040384  }
 0xb34   : > { %4663 = vmatpush1.msra.mxu0 %v4630_v7  ;;  %v7973_v52 = vld [vmem:[#allocation10_spill] sm:$0xff] }
 0xb35   : > { %4664 = vmatprep.subr.mxu0 %v7860_v17 }
 0xb36   : > { %4665 = vmatpush1.msra.mxu0 %v4629_v56 }
 0xb37   : > { %4666 = vmatprep.subr.mxu0 %v7860_v17 }
 0xb38   : > { %4667 = vmatpush1.msra.mxu0 %v4628_v44 }
 0xb39   : > { %4668 = vmatprep.subr.mxu0 %v7860_v17 }
 0xb3a   : > { %v4873_v34 = vld [vmem:[#allocation2] ss:$0 sm:$0xff]  ;;  %4669 = vmatpush1.msra.mxu0 %v4627_v32  ;;  %v4877_v30 = vld [vmem:[#allocation2 + $0x2] ss:$0 sm:$0xff]  ;;  %v4883_v23 = vld [vmem:[#allocation2 + $0x4] ss:$0 sm:$0xff] }
 0xb3b   : > { %4435 = vrot.lane.b32.xlu1 %v4873_v34, %s5014_s29  ;;  %4424 = vrot.lane.b32.xlu0 %v4873_v34, %s7892_s25  ;;  %s5018_s29 = smov 32   ;;  %s5021_s25 = smov 46   ;;  %v4469_v62 = vld [vmem:[#allocation2] sm:$0x5] }
 0xb3c   : > { %4670 = vmatprep.subr.mxu0 %v7860_v17  ;;  %v4478_v18 = vrot.slane %v4469_v62, %v5309_v38  ;;  %v4474_v51 = vrot.slane %v4469_v62, %v5289_v27  ;;  %v4547_v42 = vld [vmem:[#allocation2 + $0x2] sm:$0x5] }
 0xb3d   : > { %4671 = vmatpush1.msra.mxu0 %v4626_v41  ;;  %v4552_v55 = vrot.slane %v4547_v42, %v5289_v27  ;;  %v4556_v39 = vrot.slane %v4547_v42, %v5309_v38 }
 0xb3e   : > { %4672 = vmatprep.subr.mxu0 %v7860_v17 }
 0xb3f   : > { %4455 = vrot.lane.b32.xlu1 %v4873_v34, %s5015_s18  ;;  %4445 = vrot.lane.b32.xlu0 %v4873_v34, %s5016_s2  ;;  %s5025_s18 = smov 13  }
 0xb40   : > { %4673 = vmatpush1.msra.mxu0 %v4625_v60 }
 0xb41   : > { %4674 = vmatprep.subr.mxu0 %v7860_v17 }
 0xb42   : > { %4675 = vmatpush1.msra.mxu0 %v4624_v63 }
 0xb43   : > { %4493 = vrot.lane.b32.xlu1 %v4877_v30, %s5017_s30  ;;  %4465 = vrot.lane.b32.xlu0 %v4873_v34, %s5018_s29  ;;  %s5026_s29 = smov 8  }
 0xb44   : > { %4676 = vmatprep.subr.mxu0 %v7860_v17 }
 0xb45   : > { %4677 = vmatpush1.msra.mxu0 %v4623_v21 }
 0xb46   : > { %4678 = vmatprep.subr.mxu0 %v7860_v17 }
 0xb47   : > { %4513 = vrot.lane.b32.xlu1 %v4877_v30, %s5019_s27  ;;  %4503 = vrot.lane.b32.xlu0 %v4877_v30, %s5020_s1  ;;  %s5029_s27 = smov 60   ;;  %s7974_s1 = smul.u32 24, %s7978_s24 }
 0xb48   : > { %4679 = vmatpush1.msra.mxu0 %v4622_v10 }
 0xb49   : > { %4680 = vmatprep.subr.mxu0 %v7860_v17 }
 0xb4a   : > { %4681 = vmatpush1.msra.mxu0 %v4621_v61 }
 0xb4b   : > { %4533 = vrot.lane.b32.xlu1 %v4877_v30, %s5021_s25  ;;  %4523 = vrot.lane.b32.xlu0 %v4877_v30, %s5022_s0  ;;  %s656_s25 = scalar_lea.vmem %s7755_s20, %s7974_s1 }
 0xb4c   : > { %4682 = vmatprep.subr.mxu0 %v7860_v17 }
 0xb4d   : > { %4683 = vmatpush1.msra.mxu0 %v4620_v54 }
 0xb4e   : > { %4710 = vmatprep.subr.mxu0 %v7860_v17 }
 0xb4f   : > { %4570 = vrot.lane.b32.xlu1 %v4883_v23, %s5023_s4  ;;  %4543 = vrot.lane.b32.xlu0 %v4877_v30, %s5024_s26  ;;  %s5027_s4 = smov 79   ;;  %s5028_s26 = smov 98  }
 0xb50   : > { %4887 = vmatpush2.msk.msra.mxu0 %vm4648_vm6, %v4638_v58 }
 0xb51   : > { %4712 = vmatprep.subr.mxu0 %v7860_v17 }
 0xb52   : > { %4713 = vmatpush2.msra.mxu0 %v4637_v57 }
 0xb53   : > { %4481 = vrot.lane.b32.xlu1 %v4478_v18, %s5025_s18  ;;  %4479 = vrot.lane.b32.xlu0 %v4474_v51, %s5025_s18 }
 0xb54   : > { %4714 = vmatprep.subr.mxu0 %v7860_v17 }
 0xb55   : > { %4715 = vmatpush2.msra.mxu0 %v4636_v50 }
 0xb57   : > { %4557 = vrot.lane.b32.xlu1 %v4552_v55, %s5026_s29  ;;  %4559 = vrot.lane.b32.xlu0 %v4556_v39, %s5026_s29 }
 0xb5b   : > { %4590 = vrot.lane.b32.xlu1 %v4883_v23, %s5027_s4  ;;  %4580 = vrot.lane.b32.xlu0 %v4883_v23, %s5028_s26 }
 0xb5f   : > { %4600 = vrot.lane.b32.xlu0 %v4883_v23, %s5029_s27 }
 0xbad   : > { %v4436_v27 = vpop.permute.xlu1 %4435  ;;  %v4425_v38 = vpop.permute.xlu0 %4424 }
 0xbae   : > { %4438 = vst.msk [vmem:[#allocation4 + $0x1] sm:$0x1] %vm4427_vm4, %v4436_v27  ;;  %4428 = vst.msk [vmem:[#allocation4] sm:$0x1] %vm4427_vm4, %v4425_v38 }
 0xbb1   : > { %v4456_v22 = vpop.permute.xlu1 %4455  ;;  %v4446_v43 = vpop.permute.xlu0 %4445 }
 0xbb2   : > { %4458 = vst.msk [vmem:[#allocation4 + $0x3] sm:$0x1] %vm4427_vm4, %v4456_v22  ;;  %4448 = vst.msk [vmem:[#allocation4 + $0x2] sm:$0x1] %vm4427_vm4, %v4446_v43 }
 0xbb5   : > { %v4494_v17 = vpop.permute.xlu1 %4493  ;;  %v4466_v31 = vpop.permute.xlu0 %4465 }
 0xbb6   : > { %4496 = vst.msk [vmem:[#allocation4 + $0x6] sm:$0x1] %vm4427_vm4, %v4494_v17  ;;  %4468 = vst.msk [vmem:[#allocation4 + $0x4] sm:$0x1] %vm4427_vm4, %v4466_v31 }
 0xbb9   : > { %v4514_v46 = vpop.permute.xlu1 %4513  ;;  %v4504_v45 = vpop.permute.xlu0 %4503 }
 0xbba   : > { %4516 = vst.msk [vmem:[#allocation4 + $0x8] sm:$0x1] %vm4427_vm4, %v4514_v46  ;;  %4506 = vst.msk [vmem:[#allocation4 + $0x7] sm:$0x1] %vm4427_vm4, %v4504_v45 }
 0xbbd   : > { %v4534_v37 = vpop.permute.xlu1 %4533  ;;  %v4524_v24 = vpop.permute.xlu0 %4523 }
 0xbbe   : > { %4536 = vst.msk [vmem:[#allocation4 + $0xa] sm:$0x1] %vm4427_vm4, %v4534_v37  ;;  %4526 = vst.msk [vmem:[#allocation4 + $0x9] sm:$0x1] %vm4427_vm4, %v4524_v24 }
 0xbc1   : > { %v4571_v36 = vpop.permute.xlu1 %4570  ;;  %v4544_v25 = vpop.permute.xlu0 %4543 }
 0xbc2   : > { %4573 = vst.msk [vmem:[#allocation4 + $0xd] sm:$0x1] %vm4427_vm4, %v4571_v36  ;;  %4546 = vst.msk [vmem:[#allocation4 + $0xb] sm:$0x1] %vm4427_vm4, %v4544_v25 }
 0xbc5   : > { %v4482_v8 = vpop.permute.xlu1 %4481  ;;  %v4480_v9 = vpop.permute.xlu0 %4479 }
 0xbc6   : > { %v4484_v14 = vsel %vm4483_vm8, %v4480_v9, %v4482_v8 }
 0xbc7   : > { %4486 = vst.msk [vmem:[#allocation4 + $0x5] sm:$0x1] %vm4427_vm4, %v4484_v14 }
 0xbc9   : > { %v4558_v2 = vpop.permute.xlu1 %4557  ;;  %v4560_v40 = vpop.permute.xlu0 %4559 }
 0xbca   : > { %v4561_v1 = vsel %vm7964_vm1, %v4558_v2, %v4560_v40 }
 0xbcb   : > { %4563 = vst.msk [vmem:[#allocation4 + $0xc] sm:$0x1] %vm4427_vm4, %v4561_v1 }
 0xbcd   : > { %v4591_v35 = vpop.permute.xlu1 %4590  ;;  %v4581_v49 = vpop.permute.xlu0 %4580 }
 0xbce   : > { %4593 = vst.msk [vmem:[#allocation4 + $0xf] sm:$0x1] %vm4427_vm4, %v4591_v35  ;;  %4583 = vst.msk [vmem:[#allocation4 + $0xe] sm:$0x1] %vm4427_vm4, %v4581_v49  ;;  %v4604_v11 = vld [vmem:[#allocation4] sm:$0xff] }
 0xbcf   : > { %v4607_v13 = vmul.f32 %v7965_v47, %v4604_v11 }
 0xbd1   : > { %v4601_v6 = vpop.permute.xlu0 %4600  ;;  %v4610_v15 = vmul.f32 %v4607_v13, %v7966_v28  ;;  %v4613_v0 = vmul.f32 %v4607_v13, %v7967_v19 }
 0xbd2   : > { %4603 = vst.msk [vmem:[#allocation4 + $0x10] sm:$0x1] %vm4427_vm4, %v4601_v6 }
 0xbd3   : > { %4888 = vmatprep.mubr.msk.f32.mxu0 %vm4616_vm5, %v4613_v0 }
 0xbd4   : > { %4889 = vmatmul.mubr.msk.f32.vlgmr.msra.gmra.mxu0 %vm4616_vm5, %v4610_v15 }
 0xbd5   : > { %v4605_v48 = vld [vmem:[#allocation4 + $0x8] sm:$0xff] }
 0xbd6   : > { %v4608_v33 = vmul.f32 %v7968_v29, %v4605_v48 }
 0xbd8   : > { %v4614_v59 = vmul.f32 %v4608_v33, %v7969_v53  ;;  %v4611_v20 = vmul.f32 %v4608_v33, %v7970_v5 }
 0xbd9   : > { %v4606_v16 = vld [vmem:[#allocation4 + $0x10] sm:$0x1] }
 0xbda   : > { %4890 = vmatprep.mubr.msk.f32.mxu0 %vm4616_vm5, %v4614_v59  ;;  %v4609_v4 = vmul.f32 %v7971_v3, %v4606_v16 }
 0xbdb   : > { %4891 = vmatmul.mubr.msk.f32.gmra.mxu0 %vm4616_vm5, %v4611_v20 }
 0xbdc   : > { %v4615_v26 = vmul.f32 %v4609_v4, %v7972_v12  ;;  %v4612_v7 = vmul.f32 %v4609_v4, %v7973_v52 }
 0xbde   : > { %4892 = vmatprep.mubr.msk.f32.mxu0 %vm4616_vm5, %v4615_v26 }
 0xbdf   : > { %4893 = vmatmul.mubr.msk.f32.gmra.mxu0 %vm4616_vm5, %v4612_v7 }
 0xc94   : > { %v4718_v34 = vpop.f32.mrf.mxu0 }
 0xc95   : > { %4732 = vst.msk [vmem:[%s656_s25] sm:$0xff] %vm7975_vm9, %v4718_v34 }
 0xc96   : > { %v4720_v56 = vpop.f32.mrf.mxu0 }
 0xc9b   : > { %v4723_v44 = vpop.f32.mrf.mxu0 }
 0xc9c   : > { %4733 = vst.msk [vmem:[%s656_s25 + $0x8] sm:$0xff] %vm7976_vm15, %v4723_v44 }
 0xc9d   : > { %v4725_v32 = vpop.f32.mrf.mxu0 }
 0xc9f   : > { %v4728_v41 = vpop.f32.mrf.mxu0 }
 0xca0   : > { %4735 = vst.msk [vmem:[%s656_s25 + $0x10] sm:$0x1] %vm4734_vm10, %v4728_v41 }
 0xca1   : > { %v4730_v30 = vpop.f32.mrf.mxu0 }
 0xca2 PF: > { %s33_s23 = sadd.s32 1, %s4983_s23  }
 0xca3   : > { %p30_p4 = scmp.ge.s32.totalorder %s33_s23, 4  }
 0xca5   :  { %32 = sbr.rel (!%p30_p4) target bundleno = 6 (0x6), region = 168 }

</bundles_post_ra>
